<compile_context>
chip_gen: v6e
topology: v6e:2x2x1
jax: 0.10.0
libtpu: 0.0.40
codegen_flags: <defaults>
</compile_context>

<pallas_src>
import functools

import jax
import jax.numpy as jnp
from jax.experimental import pallas as pl
from jax.experimental.pallas import tpu as pltpu

KH = KW = 5
C_IN, C_MID, C_OUT = 1, 20, 64
LANE = 128                 # lane-dense channel padding
K1 = C_IN * KH * KW        # 25 -- stage-1 contraction dim
K1_PAD = 32                # sublane-friendly pad of K1


def _make_fused_kernel(oh1, ow1, oh2, ow2):
    """Fused Conv2d(1,20,5)+ReLU+Conv2d(20,64,5)+ReLU for one image (NHWC-flat).

    Stage 1 is a single MXU matmul on pre-im2col'ed patches. Stage 2 is
    decomposed into KH*KW per-tap matmuls against padded weight slabs, where the
    row shift of each tap is applied to the bf16 *input* slice (matmul and
    row-slice commute), so the intermediate activation never leaves VMEM and no
    im2col blow-up of it is ever materialized.
    """
    m1 = oh1 * ow1                         # stage-1 rows (144)
    m2 = oh2 * ow2                         # stage-2 rows (64)
    acc_rows = (oh2 - 1) * ow1 + ow2       # shared valid row span of every tap shift

    def kernel(p1_ref, w1_ref, b1_ref, w2_ref, b2_ref, o_ref):
        # ---- Stage 1: (m1, K1_PAD) @ (K1_PAD, 128) + bias, ReLU (f32 epilogue) ----
        h1 = jnp.dot(p1_ref[...], w1_ref[...], preferred_element_type=jnp.float32)
        h1 = jnp.maximum(h1 + b1_ref[...], 0.0)          # (m1, 128) f32, padded chans = 0
        h1b = h1.astype(jnp.bfloat16)                    # MXU operand for stage 2

        # ---- Stage 2: 5x5 conv as 25 shifted-input matmuls over VMEM-resident h1 ----
        # Bias folded into the accumulator init (broadcast hoisted out of the loop).
        acc = jnp.broadcast_to(b2_ref[...], (acc_rows, LANE))
        for i in range(KH):
            for j in range(KW):
                s = i * ow1 + j                          # static row shift of this tap
                acc = acc + jnp.dot(h1b[s:s + acc_rows, :], w2_ref[i * KW + j],
                                    preferred_element_type=jnp.float32)
        # Gather the oh2 x ow2 valid rows (stride ow1) into a dense (m2, 128) tile.
        out = jnp.concatenate(
            [acc[y * ow1:y * ow1 + ow2, :] for y in range(oh2)], axis=0)
        o_ref[...] = jnp.maximum(out, 0.0).astype(o_ref.dtype)

    return kernel


def _im2col_stage1(x):
    """x: [N, 1, H, W] NCHW -> patches [N, OH*OW, K1_PAD] bf16, feature order (kh, kw)."""
    n, _, h, w = x.shape
    oh, ow = h - KH + 1, w - KW + 1
    xs = x[:, 0]                                                    # [N, H, W]
    cols = [xs[:, i:i + oh, j:j + ow] for i in range(KH) for j in range(KW)]
    p = jnp.stack(cols, axis=-1).reshape(n, oh * ow, KH * KW)       # [N, M1, 25]
    p = jnp.pad(p, ((0, 0), (0, 0), (0, K1_PAD - KH * KW)))
    return p.astype(jnp.bfloat16), oh, ow


def prepare_params(w1, b1, w2, b2):
    """One-time PyTorch -> kernel layout prep: flatten, zero-pad channels to 128, bf16."""
    # conv1 weight [20,1,5,5] -> (K1_PAD, 128); rows = (kh,kw) order, cols = Cout padded.
    w1m = w1.reshape(C_MID, K1).T
    w1m = jnp.pad(w1m, ((0, K1_PAD - K1), (0, LANE - C_MID))).astype(jnp.bfloat16)
    b1p = jnp.pad(b1, (0, LANE - C_MID)).reshape(1, LANE).astype(jnp.float32)
    # conv2 weight [64,20,5,5] -> per-tap (25, 128, 128); rows = Cin pad, cols = Cout pad.
    w2t = jnp.transpose(w2, (2, 3, 1, 0)).reshape(KH * KW, C_MID, C_OUT)
    w2p = jnp.pad(w2t, ((0, 0), (0, LANE - C_MID), (0, LANE - C_OUT))).astype(jnp.bfloat16)
    b2p = jnp.pad(b2, (0, LANE - C_OUT)).reshape(1, LANE).astype(jnp.float32)
    return w1m, b1p, w2p, b2p


def conv_relu_conv_relu(x, params):
    """Fused Sequential(Conv2d(1,20,5), ReLU, Conv2d(20,64,5), ReLU). NCHW in/out."""
    w1m, b1p, w2p, b2p = params
    n = x.shape[0]
    patches1, oh1, ow1 = _im2col_stage1(x)
    oh2, ow2 = oh1 - KH + 1, ow1 - KW + 1
    m1, m2 = oh1 * ow1, oh2 * ow2
    kernel = _make_fused_kernel(oh1, ow1, oh2, ow2)
    out = pl.pallas_call(
        kernel,
        out_shape=jax.ShapeDtypeStruct((n, m2, LANE), jnp.float32),
        grid=(n,),
        in_specs=[
            pl.BlockSpec((None, m1, K1_PAD), lambda b: (b, 0, 0)),      # patches (per image)
            pl.BlockSpec((K1_PAD, LANE), lambda b: (0, 0)),             # w1 (resident)
            pl.BlockSpec((1, LANE), lambda b: (0, 0)),                  # b1
            pl.BlockSpec((KH * KW, LANE, LANE), lambda b: (0, 0, 0)),   # w2 taps (resident)
            pl.BlockSpec((1, LANE), lambda b: (0, 0)),                  # b2
        ],
        out_specs=pl.BlockSpec((None, m2, LANE), lambda b: (b, 0, 0)),  # lane-dense (64,128)
        compiler_params=pltpu.CompilerParams(
            dimension_semantics=("parallel",),          # batch -> both TCs on v7x
            vmem_limit_bytes=32 * 1024 * 1024),
    )(patches1, w1m, b1p, w2p, b2p)
    # NHWC-flat kernel output -> NCHW once, at the module boundary.
    out = out.reshape(n, oh2, ow2, LANE)[..., :C_OUT]
    return jnp.transpose(out, (0, 3, 1, 2))


class PallasSequential:
    """Mirror of torchplus Sequential.forward: apply submodules in order."""

    def __init__(self, *fns):
        self._fns = list(fns)

    def add(self, fn):
        self._fns.append(fn)

    def __len__(self):
        return len(self._fns)

    def __getitem__(self, idx):
        return self._fns[idx]

    def __call__(self, x):
        for fn in self._fns:
            x = fn(x)
        return x


def _uniform_init(key, shape, fan_in):
    bound = 1.0 / float(fan_in) ** 0.5
    return jax.random.uniform(key, shape, jnp.float32, -bound, bound)


if __name__ == "__main__":
    key = jax.random.PRNGKey(0)
    kx, kw1, kb1, kw2, kb2 = jax.random.split(key, 5)

    # Small NCHW input consistent with Conv2d(1, 20, 5) as the first layer.
    x = jax.random.normal(kx, (2, 1, 16, 16), jnp.float32)

    # Deterministic PyTorch-style uniform init (not a checkpoint).
    w1 = _uniform_init(kw1, (C_MID, C_IN, KH, KW), fan_in=C_IN * KH * KW)
    b1 = _uniform_init(kb1, (C_MID,), fan_in=C_IN * KH * KW)
    w2 = _uniform_init(kw2, (C_OUT, C_MID, KH, KW), fan_in=C_MID * KH * KW)
    b2 = _uniform_init(kb2, (C_OUT,), fan_in=C_MID * KH * KW)

    params = prepare_params(w1, b1, w2, b2)     # one-time layout/pad/bf16 prep

    # Sequential(Conv2d(1,20,5), ReLU, Conv2d(20,64,5), ReLU): the four modules are
    # fused into a single Pallas kernel, held here as one callable stage.
    model = PallasSequential(functools.partial(conv_relu_conv_relu, params=params))

    forward = jax.jit(lambda inp: model(inp))   # single jit over the whole forward
    out = jax.block_until_ready(forward(x))
    assert out.shape == (2, C_OUT, 8, 8), out.shape

    # Cross-check against a plain-JAX f32 conv reference (kernel matmuls run in bf16).
    ref = x
    for w, b in ((w1, b1), (w2, b2)):
        ref = jax.lax.conv_general_dilated(
            ref, w, window_strides=(1, 1), padding="VALID",
            dimension_numbers=("NCHW", "OIHW", "NCHW"))
        ref = jnp.maximum(ref + b[None, :, None, None], 0.0)
    assert jnp.allclose(out, ref, atol=5e-2, rtol=5e-2), \
        float(jnp.max(jnp.abs(out - ref)))

    print("KERNEL_OK")
</pallas_src>

<mosaic_0001>
module attributes {stable_mosaic.version = 11 : i64} {
  func.func @kernel(%arg0: i32, %arg1: memref<1x144x32xbf16, #tpu.memory_space<vmem>>, %arg2: memref<32x128xbf16, #tpu.memory_space<vmem>>, %arg3: memref<1x128xf32, #tpu.memory_space<vmem>>, %arg4: memref<25x128x128xbf16, #tpu.memory_space<vmem>>, %arg5: memref<1x128xf32, #tpu.memory_space<vmem>>, %arg6: memref<1x64x128xf32, #tpu.memory_space<vmem>>) attributes {dimension_semantics = [#tpu.dimension_semantics<parallel>], iteration_bounds = array<i64: 2>, scalar_prefetch = 0 : i64, scratch_operands = 0 : i64, tpu.core_type = #tpu.core_type<tc>, window_params = [{transform_indices = @transform_0, window_bounds = array<i64: 1, 144, 32>}, {pipeline_mode = #tpu.pipeline_mode<synchronous>, transform_indices = @transform_1, window_bounds = array<i64: 32, 128>}, {pipeline_mode = #tpu.pipeline_mode<synchronous>, transform_indices = @transform_2, window_bounds = array<i64: 1, 128>}, {pipeline_mode = #tpu.pipeline_mode<synchronous>, transform_indices = @transform_3, window_bounds = array<i64: 25, 128, 128>}, {pipeline_mode = #tpu.pipeline_mode<synchronous>, transform_indices = @transform_4, window_bounds = array<i64: 1, 128>}, {transform_indices = @transform_5, window_bounds = array<i64: 1, 64, 128>}]} {
    %c0 = arith.constant 0 : index
    %c0_0 = arith.constant 0 : index
    %c0_1 = arith.constant 0 : index
    %0 = vector.load %arg1[%c0, %c0_0, %c0_1] : memref<1x144x32xbf16, #tpu.memory_space<vmem>>, vector<1x144x32xbf16>
    %1 = vector.shape_cast %0 : vector<1x144x32xbf16> to vector<144x32xbf16>
    %c0_2 = arith.constant 0 : index
    %c0_3 = arith.constant 0 : index
    %2 = vector.load %arg2[%c0_2, %c0_3] : memref<32x128xbf16, #tpu.memory_space<vmem>>, vector<32x128xbf16>
    %cst = arith.constant dense<0.000000e+00> : vector<144x128xf32>
    %3 = tpu.matmul %1, %2, %cst {dimension_numbers = #tpu.dot_dimension_numbers<[1], [0], [0], [1], [0, 0, 1, 1], [], []>} : vector<144x32xbf16>, vector<32x128xbf16>, vector<144x128xf32> -> vector<144x128xf32>
    %c0_4 = arith.constant 0 : index
    %c0_5 = arith.constant 0 : index
    %4 = vector.load %arg3[%c0_4, %c0_5] : memref<1x128xf32, #tpu.memory_space<vmem>>, vector<1x128xf32>
    %5 = vector.broadcast %4 : vector<1x128xf32> to vector<144x128xf32>
    %6 = arith.addf %3, %5 : vector<144x128xf32>
    %cst_6 = arith.constant 0.000000e+00 : f32
    %7 = vector.broadcast %cst_6 : f32 to vector<144x128xf32>
    %8 = arith.maximumf %6, %7 : vector<144x128xf32>
    %9 = arith.truncf %8 : vector<144x128xf32> to vector<144x128xbf16>
    %c0_7 = arith.constant 0 : index
    %c0_8 = arith.constant 0 : index
    %10 = vector.load %arg5[%c0_7, %c0_8] : memref<1x128xf32, #tpu.memory_space<vmem>>, vector<1x128xf32>
    %11 = vector.shape_cast %10 : vector<1x128xf32> to vector<1x128xf32>
    %12 = vector.broadcast %11 : vector<1x128xf32> to vector<92x128xf32>
    %13 = vector.extract_strided_slice %9 {offsets = [0, 0], sizes = [92, 128], strides = [1, 1]} : vector<144x128xbf16> to vector<92x128xbf16>
    %c0_9 = arith.constant 0 : index
    %c0_10 = arith.constant 0 : index
    %c0_11 = arith.constant 0 : index
    %14 = vector.load %arg4[%c0_9, %c0_10, %c0_11] : memref<25x128x128xbf16, #tpu.memory_space<vmem>>, vector<1x128x128xbf16>
    %15 = vector.shape_cast %14 : vector<1x128x128xbf16> to vector<128x128xbf16>
    %cst_12 = arith.constant dense<0.000000e+00> : vector<92x128xf32>
    %16 = tpu.matmul %13, %15, %cst_12 {dimension_numbers = #tpu.dot_dimension_numbers<[1], [0], [0], [1], [0, 0, 1, 1], [], []>} : vector<92x128xbf16>, vector<128x128xbf16>, vector<92x128xf32> -> vector<92x128xf32>
    %17 = arith.addf %12, %16 : vector<92x128xf32>
    %18 = vector.extract_strided_slice %9 {offsets = [1, 0], sizes = [92, 128], strides = [1, 1]} : vector<144x128xbf16> to vector<92x128xbf16>
    %c1 = arith.constant 1 : index
    %c0_13 = arith.constant 0 : index
    %c0_14 = arith.constant 0 : index
    %19 = vector.load %arg4[%c1, %c0_13, %c0_14] : memref<25x128x128xbf16, #tpu.memory_space<vmem>>, vector<1x128x128xbf16>
    %20 = vector.shape_cast %19 : vector<1x128x128xbf16> to vector<128x128xbf16>
    %cst_15 = arith.constant dense<0.000000e+00> : vector<92x128xf32>
    %21 = tpu.matmul %18, %20, %cst_15 {dimension_numbers = #tpu.dot_dimension_numbers<[1], [0], [0], [1], [0, 0, 1, 1], [], []>} : vector<92x128xbf16>, vector<128x128xbf16>, vector<92x128xf32> -> vector<92x128xf32>
    %22 = arith.addf %17, %21 : vector<92x128xf32>
    %23 = vector.extract_strided_slice %9 {offsets = [2, 0], sizes = [92, 128], strides = [1, 1]} : vector<144x128xbf16> to vector<92x128xbf16>
    %c2 = arith.constant 2 : index
    %c0_16 = arith.constant 0 : index
    %c0_17 = arith.constant 0 : index
    %24 = vector.load %arg4[%c2, %c0_16, %c0_17] : memref<25x128x128xbf16, #tpu.memory_space<vmem>>, vector<1x128x128xbf16>
    %25 = vector.shape_cast %24 : vector<1x128x128xbf16> to vector<128x128xbf16>
    %cst_18 = arith.constant dense<0.000000e+00> : vector<92x128xf32>
    %26 = tpu.matmul %23, %25, %cst_18 {dimension_numbers = #tpu.dot_dimension_numbers<[1], [0], [0], [1], [0, 0, 1, 1], [], []>} : vector<92x128xbf16>, vector<128x128xbf16>, vector<92x128xf32> -> vector<92x128xf32>
    %27 = arith.addf %22, %26 : vector<92x128xf32>
    %28 = vector.extract_strided_slice %9 {offsets = [3, 0], sizes = [92, 128], strides = [1, 1]} : vector<144x128xbf16> to vector<92x128xbf16>
    %c3 = arith.constant 3 : index
    %c0_19 = arith.constant 0 : index
    %c0_20 = arith.constant 0 : index
    %29 = vector.load %arg4[%c3, %c0_19, %c0_20] : memref<25x128x128xbf16, #tpu.memory_space<vmem>>, vector<1x128x128xbf16>
    %30 = vector.shape_cast %29 : vector<1x128x128xbf16> to vector<128x128xbf16>
    %cst_21 = arith.constant dense<0.000000e+00> : vector<92x128xf32>
    %31 = tpu.matmul %28, %30, %cst_21 {dimension_numbers = #tpu.dot_dimension_numbers<[1], [0], [0], [1], [0, 0, 1, 1], [], []>} : vector<92x128xbf16>, vector<128x128xbf16>, vector<92x128xf32> -> vector<92x128xf32>
    %32 = arith.addf %27, %31 : vector<92x128xf32>
    %33 = vector.extract_strided_slice %9 {offsets = [4, 0], sizes = [92, 128], strides = [1, 1]} : vector<144x128xbf16> to vector<92x128xbf16>
    %c4 = arith.constant 4 : index
    %c0_22 = arith.constant 0 : index
    %c0_23 = arith.constant 0 : index
    %34 = vector.load %arg4[%c4, %c0_22, %c0_23] : memref<25x128x128xbf16, #tpu.memory_space<vmem>>, vector<1x128x128xbf16>
    %35 = vector.shape_cast %34 : vector<1x128x128xbf16> to vector<128x128xbf16>
    %cst_24 = arith.constant dense<0.000000e+00> : vector<92x128xf32>
    %36 = tpu.matmul %33, %35, %cst_24 {dimension_numbers = #tpu.dot_dimension_numbers<[1], [0], [0], [1], [0, 0, 1, 1], [], []>} : vector<92x128xbf16>, vector<128x128xbf16>, vector<92x128xf32> -> vector<92x128xf32>
    %37 = arith.addf %32, %36 : vector<92x128xf32>
    %38 = vector.extract_strided_slice %9 {offsets = [12, 0], sizes = [92, 128], strides = [1, 1]} : vector<144x128xbf16> to vector<92x128xbf16>
    %c5 = arith.constant 5 : index
    %c0_25 = arith.constant 0 : index
    %c0_26 = arith.constant 0 : index
    %39 = vector.load %arg4[%c5, %c0_25, %c0_26] : memref<25x128x128xbf16, #tpu.memory_space<vmem>>, vector<1x128x128xbf16>
    %40 = vector.shape_cast %39 : vector<1x128x128xbf16> to vector<128x128xbf16>
    %cst_27 = arith.constant dense<0.000000e+00> : vector<92x128xf32>
    %41 = tpu.matmul %38, %40, %cst_27 {dimension_numbers = #tpu.dot_dimension_numbers<[1], [0], [0], [1], [0, 0, 1, 1], [], []>} : vector<92x128xbf16>, vector<128x128xbf16>, vector<92x128xf32> -> vector<92x128xf32>
    %42 = arith.addf %37, %41 : vector<92x128xf32>
    %43 = vector.extract_strided_slice %9 {offsets = [13, 0], sizes = [92, 128], strides = [1, 1]} : vector<144x128xbf16> to vector<92x128xbf16>
    %c6 = arith.constant 6 : index
    %c0_28 = arith.constant 0 : index
    %c0_29 = arith.constant 0 : index
    %44 = vector.load %arg4[%c6, %c0_28, %c0_29] : memref<25x128x128xbf16, #tpu.memory_space<vmem>>, vector<1x128x128xbf16>
    %45 = vector.shape_cast %44 : vector<1x128x128xbf16> to vector<128x128xbf16>
    %cst_30 = arith.constant dense<0.000000e+00> : vector<92x128xf32>
    %46 = tpu.matmul %43, %45, %cst_30 {dimension_numbers = #tpu.dot_dimension_numbers<[1], [0], [0], [1], [0, 0, 1, 1], [], []>} : vector<92x128xbf16>, vector<128x128xbf16>, vector<92x128xf32> -> vector<92x128xf32>
    %47 = arith.addf %42, %46 : vector<92x128xf32>
    %48 = vector.extract_strided_slice %9 {offsets = [14, 0], sizes = [92, 128], strides = [1, 1]} : vector<144x128xbf16> to vector<92x128xbf16>
    %c7 = arith.constant 7 : index
    %c0_31 = arith.constant 0 : index
    %c0_32 = arith.constant 0 : index
    %49 = vector.load %arg4[%c7, %c0_31, %c0_32] : memref<25x128x128xbf16, #tpu.memory_space<vmem>>, vector<1x128x128xbf16>
    %50 = vector.shape_cast %49 : vector<1x128x128xbf16> to vector<128x128xbf16>
    %cst_33 = arith.constant dense<0.000000e+00> : vector<92x128xf32>
    %51 = tpu.matmul %48, %50, %cst_33 {dimension_numbers = #tpu.dot_dimension_numbers<[1], [0], [0], [1], [0, 0, 1, 1], [], []>} : vector<92x128xbf16>, vector<128x128xbf16>, vector<92x128xf32> -> vector<92x128xf32>
    %52 = arith.addf %47, %51 : vector<92x128xf32>
    %53 = vector.extract_strided_slice %9 {offsets = [15, 0], sizes = [92, 128], strides = [1, 1]} : vector<144x128xbf16> to vector<92x128xbf16>
    %c8 = arith.constant 8 : index
    %c0_34 = arith.constant 0 : index
    %c0_35 = arith.constant 0 : index
    %54 = vector.load %arg4[%c8, %c0_34, %c0_35] : memref<25x128x128xbf16, #tpu.memory_space<vmem>>, vector<1x128x128xbf16>
    %55 = vector.shape_cast %54 : vector<1x128x128xbf16> to vector<128x128xbf16>
    %cst_36 = arith.constant dense<0.000000e+00> : vector<92x128xf32>
    %56 = tpu.matmul %53, %55, %cst_36 {dimension_numbers = #tpu.dot_dimension_numbers<[1], [0], [0], [1], [0, 0, 1, 1], [], []>} : vector<92x128xbf16>, vector<128x128xbf16>, vector<92x128xf32> -> vector<92x128xf32>
    %57 = arith.addf %52, %56 : vector<92x128xf32>
    %58 = vector.extract_strided_slice %9 {offsets = [16, 0], sizes = [92, 128], strides = [1, 1]} : vector<144x128xbf16> to vector<92x128xbf16>
    %c9 = arith.constant 9 : index
    %c0_37 = arith.constant 0 : index
    %c0_38 = arith.constant 0 : index
    %59 = vector.load %arg4[%c9, %c0_37, %c0_38] : memref<25x128x128xbf16, #tpu.memory_space<vmem>>, vector<1x128x128xbf16>
    %60 = vector.shape_cast %59 : vector<1x128x128xbf16> to vector<128x128xbf16>
    %cst_39 = arith.constant dense<0.000000e+00> : vector<92x128xf32>
    %61 = tpu.matmul %58, %60, %cst_39 {dimension_numbers = #tpu.dot_dimension_numbers<[1], [0], [0], [1], [0, 0, 1, 1], [], []>} : vector<92x128xbf16>, vector<128x128xbf16>, vector<92x128xf32> -> vector<92x128xf32>
    %62 = arith.addf %57, %61 : vector<92x128xf32>
    %63 = vector.extract_strided_slice %9 {offsets = [24, 0], sizes = [92, 128], strides = [1, 1]} : vector<144x128xbf16> to vector<92x128xbf16>
    %c10 = arith.constant 10 : index
    %c0_40 = arith.constant 0 : index
    %c0_41 = arith.constant 0 : index
    %64 = vector.load %arg4[%c10, %c0_40, %c0_41] : memref<25x128x128xbf16, #tpu.memory_space<vmem>>, vector<1x128x128xbf16>
    %65 = vector.shape_cast %64 : vector<1x128x128xbf16> to vector<128x128xbf16>
    %cst_42 = arith.constant dense<0.000000e+00> : vector<92x128xf32>
    %66 = tpu.matmul %63, %65, %cst_42 {dimension_numbers = #tpu.dot_dimension_numbers<[1], [0], [0], [1], [0, 0, 1, 1], [], []>} : vector<92x128xbf16>, vector<128x128xbf16>, vector<92x128xf32> -> vector<92x128xf32>
    %67 = arith.addf %62, %66 : vector<92x128xf32>
    %68 = vector.extract_strided_slice %9 {offsets = [25, 0], sizes = [92, 128], strides = [1, 1]} : vector<144x128xbf16> to vector<92x128xbf16>
    %c11 = arith.constant 11 : index
    %c0_43 = arith.constant 0 : index
    %c0_44 = arith.constant 0 : index
    %69 = vector.load %arg4[%c11, %c0_43, %c0_44] : memref<25x128x128xbf16, #tpu.memory_space<vmem>>, vector<1x128x128xbf16>
    %70 = vector.shape_cast %69 : vector<1x128x128xbf16> to vector<128x128xbf16>
    %cst_45 = arith.constant dense<0.000000e+00> : vector<92x128xf32>
    %71 = tpu.matmul %68, %70, %cst_45 {dimension_numbers = #tpu.dot_dimension_numbers<[1], [0], [0], [1], [0, 0, 1, 1], [], []>} : vector<92x128xbf16>, vector<128x128xbf16>, vector<92x128xf32> -> vector<92x128xf32>
    %72 = arith.addf %67, %71 : vector<92x128xf32>
    %73 = vector.extract_strided_slice %9 {offsets = [26, 0], sizes = [92, 128], strides = [1, 1]} : vector<144x128xbf16> to vector<92x128xbf16>
    %c12 = arith.constant 12 : index
    %c0_46 = arith.constant 0 : index
    %c0_47 = arith.constant 0 : index
    %74 = vector.load %arg4[%c12, %c0_46, %c0_47] : memref<25x128x128xbf16, #tpu.memory_space<vmem>>, vector<1x128x128xbf16>
    %75 = vector.shape_cast %74 : vector<1x128x128xbf16> to vector<128x128xbf16>
    %cst_48 = arith.constant dense<0.000000e+00> : vector<92x128xf32>
    %76 = tpu.matmul %73, %75, %cst_48 {dimension_numbers = #tpu.dot_dimension_numbers<[1], [0], [0], [1], [0, 0, 1, 1], [], []>} : vector<92x128xbf16>, vector<128x128xbf16>, vector<92x128xf32> -> vector<92x128xf32>
    %77 = arith.addf %72, %76 : vector<92x128xf32>
    %78 = vector.extract_strided_slice %9 {offsets = [27, 0], sizes = [92, 128], strides = [1, 1]} : vector<144x128xbf16> to vector<92x128xbf16>
    %c13 = arith.constant 13 : index
    %c0_49 = arith.constant 0 : index
    %c0_50 = arith.constant 0 : index
    %79 = vector.load %arg4[%c13, %c0_49, %c0_50] : memref<25x128x128xbf16, #tpu.memory_space<vmem>>, vector<1x128x128xbf16>
    %80 = vector.shape_cast %79 : vector<1x128x128xbf16> to vector<128x128xbf16>
    %cst_51 = arith.constant dense<0.000000e+00> : vector<92x128xf32>
    %81 = tpu.matmul %78, %80, %cst_51 {dimension_numbers = #tpu.dot_dimension_numbers<[1], [0], [0], [1], [0, 0, 1, 1], [], []>} : vector<92x128xbf16>, vector<128x128xbf16>, vector<92x128xf32> -> vector<92x128xf32>
    %82 = arith.addf %77, %81 : vector<92x128xf32>
    %83 = vector.extract_strided_slice %9 {offsets = [28, 0], sizes = [92, 128], strides = [1, 1]} : vector<144x128xbf16> to vector<92x128xbf16>
    %c14 = arith.constant 14 : index
    %c0_52 = arith.constant 0 : index
    %c0_53 = arith.constant 0 : index
    %84 = vector.load %arg4[%c14, %c0_52, %c0_53] : memref<25x128x128xbf16, #tpu.memory_space<vmem>>, vector<1x128x128xbf16>
    %85 = vector.shape_cast %84 : vector<1x128x128xbf16> to vector<128x128xbf16>
    %cst_54 = arith.constant dense<0.000000e+00> : vector<92x128xf32>
    %86 = tpu.matmul %83, %85, %cst_54 {dimension_numbers = #tpu.dot_dimension_numbers<[1], [0], [0], [1], [0, 0, 1, 1], [], []>} : vector<92x128xbf16>, vector<128x128xbf16>, vector<92x128xf32> -> vector<92x128xf32>
    %87 = arith.addf %82, %86 : vector<92x128xf32>
    %88 = vector.extract_strided_slice %9 {offsets = [36, 0], sizes = [92, 128], strides = [1, 1]} : vector<144x128xbf16> to vector<92x128xbf16>
    %c15 = arith.constant 15 : index
    %c0_55 = arith.constant 0 : index
    %c0_56 = arith.constant 0 : index
    %89 = vector.load %arg4[%c15, %c0_55, %c0_56] : memref<25x128x128xbf16, #tpu.memory_space<vmem>>, vector<1x128x128xbf16>
    %90 = vector.shape_cast %89 : vector<1x128x128xbf16> to vector<128x128xbf16>
    %cst_57 = arith.constant dense<0.000000e+00> : vector<92x128xf32>
    %91 = tpu.matmul %88, %90, %cst_57 {dimension_numbers = #tpu.dot_dimension_numbers<[1], [0], [0], [1], [0, 0, 1, 1], [], []>} : vector<92x128xbf16>, vector<128x128xbf16>, vector<92x128xf32> -> vector<92x128xf32>
    %92 = arith.addf %87, %91 : vector<92x128xf32>
    %93 = vector.extract_strided_slice %9 {offsets = [37, 0], sizes = [92, 128], strides = [1, 1]} : vector<144x128xbf16> to vector<92x128xbf16>
    %c16 = arith.constant 16 : index
    %c0_58 = arith.constant 0 : index
    %c0_59 = arith.constant 0 : index
    %94 = vector.load %arg4[%c16, %c0_58, %c0_59] : memref<25x128x128xbf16, #tpu.memory_space<vmem>>, vector<1x128x128xbf16>
    %95 = vector.shape_cast %94 : vector<1x128x128xbf16> to vector<128x128xbf16>
    %cst_60 = arith.constant dense<0.000000e+00> : vector<92x128xf32>
    %96 = tpu.matmul %93, %95, %cst_60 {dimension_numbers = #tpu.dot_dimension_numbers<[1], [0], [0], [1], [0, 0, 1, 1], [], []>} : vector<92x128xbf16>, vector<128x128xbf16>, vector<92x128xf32> -> vector<92x128xf32>
    %97 = arith.addf %92, %96 : vector<92x128xf32>
    %98 = vector.extract_strided_slice %9 {offsets = [38, 0], sizes = [92, 128], strides = [1, 1]} : vector<144x128xbf16> to vector<92x128xbf16>
    %c17 = arith.constant 17 : index
    %c0_61 = arith.constant 0 : index
    %c0_62 = arith.constant 0 : index
    %99 = vector.load %arg4[%c17, %c0_61, %c0_62] : memref<25x128x128xbf16, #tpu.memory_space<vmem>>, vector<1x128x128xbf16>
    %100 = vector.shape_cast %99 : vector<1x128x128xbf16> to vector<128x128xbf16>
    %cst_63 = arith.constant dense<0.000000e+00> : vector<92x128xf32>
    %101 = tpu.matmul %98, %100, %cst_63 {dimension_numbers = #tpu.dot_dimension_numbers<[1], [0], [0], [1], [0, 0, 1, 1], [], []>} : vector<92x128xbf16>, vector<128x128xbf16>, vector<92x128xf32> -> vector<92x128xf32>
    %102 = arith.addf %97, %101 : vector<92x128xf32>
    %103 = vector.extract_strided_slice %9 {offsets = [39, 0], sizes = [92, 128], strides = [1, 1]} : vector<144x128xbf16> to vector<92x128xbf16>
    %c18 = arith.constant 18 : index
    %c0_64 = arith.constant 0 : index
    %c0_65 = arith.constant 0 : index
    %104 = vector.load %arg4[%c18, %c0_64, %c0_65] : memref<25x128x128xbf16, #tpu.memory_space<vmem>>, vector<1x128x128xbf16>
    %105 = vector.shape_cast %104 : vector<1x128x128xbf16> to vector<128x128xbf16>
    %cst_66 = arith.constant dense<0.000000e+00> : vector<92x128xf32>
    %106 = tpu.matmul %103, %105, %cst_66 {dimension_numbers = #tpu.dot_dimension_numbers<[1], [0], [0], [1], [0, 0, 1, 1], [], []>} : vector<92x128xbf16>, vector<128x128xbf16>, vector<92x128xf32> -> vector<92x128xf32>
    %107 = arith.addf %102, %106 : vector<92x128xf32>
    %108 = vector.extract_strided_slice %9 {offsets = [40, 0], sizes = [92, 128], strides = [1, 1]} : vector<144x128xbf16> to vector<92x128xbf16>
    %c19 = arith.constant 19 : index
    %c0_67 = arith.constant 0 : index
    %c0_68 = arith.constant 0 : index
    %109 = vector.load %arg4[%c19, %c0_67, %c0_68] : memref<25x128x128xbf16, #tpu.memory_space<vmem>>, vector<1x128x128xbf16>
    %110 = vector.shape_cast %109 : vector<1x128x128xbf16> to vector<128x128xbf16>
    %cst_69 = arith.constant dense<0.000000e+00> : vector<92x128xf32>
    %111 = tpu.matmul %108, %110, %cst_69 {dimension_numbers = #tpu.dot_dimension_numbers<[1], [0], [0], [1], [0, 0, 1, 1], [], []>} : vector<92x128xbf16>, vector<128x128xbf16>, vector<92x128xf32> -> vector<92x128xf32>
    %112 = arith.addf %107, %111 : vector<92x128xf32>
    %113 = vector.extract_strided_slice %9 {offsets = [48, 0], sizes = [92, 128], strides = [1, 1]} : vector<144x128xbf16> to vector<92x128xbf16>
    %c20 = arith.constant 20 : index
    %c0_70 = arith.constant 0 : index
    %c0_71 = arith.constant 0 : index
    %114 = vector.load %arg4[%c20, %c0_70, %c0_71] : memref<25x128x128xbf16, #tpu.memory_space<vmem>>, vector<1x128x128xbf16>
    %115 = vector.shape_cast %114 : vector<1x128x128xbf16> to vector<128x128xbf16>
    %cst_72 = arith.constant dense<0.000000e+00> : vector<92x128xf32>
    %116 = tpu.matmul %113, %115, %cst_72 {dimension_numbers = #tpu.dot_dimension_numbers<[1], [0], [0], [1], [0, 0, 1, 1], [], []>} : vector<92x128xbf16>, vector<128x128xbf16>, vector<92x128xf32> -> vector<92x128xf32>
    %117 = arith.addf %112, %116 : vector<92x128xf32>
    %118 = vector.extract_strided_slice %9 {offsets = [49, 0], sizes = [92, 128], strides = [1, 1]} : vector<144x128xbf16> to vector<92x128xbf16>
    %c21 = arith.constant 21 : index
    %c0_73 = arith.constant 0 : index
    %c0_74 = arith.constant 0 : index
    %119 = vector.load %arg4[%c21, %c0_73, %c0_74] : memref<25x128x128xbf16, #tpu.memory_space<vmem>>, vector<1x128x128xbf16>
    %120 = vector.shape_cast %119 : vector<1x128x128xbf16> to vector<128x128xbf16>
    %cst_75 = arith.constant dense<0.000000e+00> : vector<92x128xf32>
    %121 = tpu.matmul %118, %120, %cst_75 {dimension_numbers = #tpu.dot_dimension_numbers<[1], [0], [0], [1], [0, 0, 1, 1], [], []>} : vector<92x128xbf16>, vector<128x128xbf16>, vector<92x128xf32> -> vector<92x128xf32>
    %122 = arith.addf %117, %121 : vector<92x128xf32>
    %123 = vector.extract_strided_slice %9 {offsets = [50, 0], sizes = [92, 128], strides = [1, 1]} : vector<144x128xbf16> to vector<92x128xbf16>
    %c22 = arith.constant 22 : index
    %c0_76 = arith.constant 0 : index
    %c0_77 = arith.constant 0 : index
    %124 = vector.load %arg4[%c22, %c0_76, %c0_77] : memref<25x128x128xbf16, #tpu.memory_space<vmem>>, vector<1x128x128xbf16>
    %125 = vector.shape_cast %124 : vector<1x128x128xbf16> to vector<128x128xbf16>
    %cst_78 = arith.constant dense<0.000000e+00> : vector<92x128xf32>
    %126 = tpu.matmul %123, %125, %cst_78 {dimension_numbers = #tpu.dot_dimension_numbers<[1], [0], [0], [1], [0, 0, 1, 1], [], []>} : vector<92x128xbf16>, vector<128x128xbf16>, vector<92x128xf32> -> vector<92x128xf32>
    %127 = arith.addf %122, %126 : vector<92x128xf32>
    %128 = vector.extract_strided_slice %9 {offsets = [51, 0], sizes = [92, 128], strides = [1, 1]} : vector<144x128xbf16> to vector<92x128xbf16>
    %c23 = arith.constant 23 : index
    %c0_79 = arith.constant 0 : index
    %c0_80 = arith.constant 0 : index
    %129 = vector.load %arg4[%c23, %c0_79, %c0_80] : memref<25x128x128xbf16, #tpu.memory_space<vmem>>, vector<1x128x128xbf16>
    %130 = vector.shape_cast %129 : vector<1x128x128xbf16> to vector<128x128xbf16>
    %cst_81 = arith.constant dense<0.000000e+00> : vector<92x128xf32>
    %131 = tpu.matmul %128, %130, %cst_81 {dimension_numbers = #tpu.dot_dimension_numbers<[1], [0], [0], [1], [0, 0, 1, 1], [], []>} : vector<92x128xbf16>, vector<128x128xbf16>, vector<92x128xf32> -> vector<92x128xf32>
    %132 = arith.addf %127, %131 : vector<92x128xf32>
    %133 = vector.extract_strided_slice %9 {offsets = [52, 0], sizes = [92, 128], strides = [1, 1]} : vector<144x128xbf16> to vector<92x128xbf16>
    %c24 = arith.constant 24 : index
    %c0_82 = arith.constant 0 : index
    %c0_83 = arith.constant 0 : index
    %134 = vector.load %arg4[%c24, %c0_82, %c0_83] : memref<25x128x128xbf16, #tpu.memory_space<vmem>>, vector<1x128x128xbf16>
    %135 = vector.shape_cast %134 : vector<1x128x128xbf16> to vector<128x128xbf16>
    %cst_84 = arith.constant dense<0.000000e+00> : vector<92x128xf32>
    %136 = tpu.matmul %133, %135, %cst_84 {dimension_numbers = #tpu.dot_dimension_numbers<[1], [0], [0], [1], [0, 0, 1, 1], [], []>} : vector<92x128xbf16>, vector<128x128xbf16>, vector<92x128xf32> -> vector<92x128xf32>
    %137 = arith.addf %132, %136 : vector<92x128xf32>
    %138 = vector.extract_strided_slice %137 {offsets = [0, 0], sizes = [8, 128], strides = [1, 1]} : vector<92x128xf32> to vector<8x128xf32>
    %139 = vector.extract_strided_slice %137 {offsets = [12, 0], sizes = [8, 128], strides = [1, 1]} : vector<92x128xf32> to vector<8x128xf32>
    %140 = vector.extract_strided_slice %137 {offsets = [24, 0], sizes = [8, 128], strides = [1, 1]} : vector<92x128xf32> to vector<8x128xf32>
    %141 = vector.extract_strided_slice %137 {offsets = [36, 0], sizes = [8, 128], strides = [1, 1]} : vector<92x128xf32> to vector<8x128xf32>
    %142 = vector.extract_strided_slice %137 {offsets = [48, 0], sizes = [8, 128], strides = [1, 1]} : vector<92x128xf32> to vector<8x128xf32>
    %143 = vector.extract_strided_slice %137 {offsets = [60, 0], sizes = [8, 128], strides = [1, 1]} : vector<92x128xf32> to vector<8x128xf32>
    %144 = vector.extract_strided_slice %137 {offsets = [72, 0], sizes = [8, 128], strides = [1, 1]} : vector<92x128xf32> to vector<8x128xf32>
    %145 = vector.extract_strided_slice %137 {offsets = [84, 0], sizes = [8, 128], strides = [1, 1]} : vector<92x128xf32> to vector<8x128xf32>
    %146 = tpu.concatenate %138, %139, %140, %141, %142, %143, %144, %145 in 0 : vector<8x128xf32>, vector<8x128xf32>, vector<8x128xf32>, vector<8x128xf32>, vector<8x128xf32>, vector<8x128xf32>, vector<8x128xf32>, vector<8x128xf32> -> vector<64x128xf32>
    %cst_85 = arith.constant 0.000000e+00 : f32
    %147 = vector.broadcast %cst_85 : f32 to vector<64x128xf32>
    %148 = arith.maximumf %146, %147 : vector<64x128xf32>
    %c0_86 = arith.constant 0 : index
    %c0_87 = arith.constant 0 : index
    %c0_88 = arith.constant 0 : index
    %149 = vector.load %arg6[%c0_86, %c0_87, %c0_88] : memref<1x64x128xf32, #tpu.memory_space<vmem>>, vector<1x64x128xf32>
    %150 = vector.shape_cast %149 : vector<1x64x128xf32> to vector<64x128xf32>
    %151 = vector.shape_cast %148 : vector<64x128xf32> to vector<1x64x128xf32>
    tpu.vector_store %arg6[%c0_86, %c0_87, %c0_88], %151 {strides = array<i32>} : memref<1x64x128xf32, #tpu.memory_space<vmem>>, vector<1x64x128xf32>,
    return
  }
  func.func @transform_0(%arg0: i32) -> (i32, i32, i32) {
    %c0_i32 = arith.constant 0 : i32
    %c0_i32_0 = arith.constant 0 : i32
    %c0_i32_1 = arith.constant 0 : i32
    return %arg0, %c0_i32, %c0_i32_0 : i32, i32, i32
  }
  func.func @transform_1(%arg0: i32) -> (i32, i32) {
    %c0_i32 = arith.constant 0 : i32
    %c0_i32_0 = arith.constant 0 : i32
    %c0_i32_1 = arith.constant 0 : i32
    return %c0_i32, %c0_i32_0 : i32, i32
  }
  func.func @transform_2(%arg0: i32) -> (i32, i32) {
    %c0_i32 = arith.constant 0 : i32
    %c0_i32_0 = arith.constant 0 : i32
    %c0_i32_1 = arith.constant 0 : i32
    return %c0_i32, %c0_i32_0 : i32, i32
  }
  func.func @transform_3(%arg0: i32) -> (i32, i32, i32) {
    %c0_i32 = arith.constant 0 : i32
    %c0_i32_0 = arith.constant 0 : i32
    %c0_i32_1 = arith.constant 0 : i32
    %c0_i32_2 = arith.constant 0 : i32
    return %c0_i32, %c0_i32_0, %c0_i32_1 : i32, i32, i32
  }
  func.func @transform_4(%arg0: i32) -> (i32, i32) {
    %c0_i32 = arith.constant 0 : i32
    %c0_i32_0 = arith.constant 0 : i32
    %c0_i32_1 = arith.constant 0 : i32
    return %c0_i32, %c0_i32_0 : i32, i32
  }
  func.func @transform_5(%arg0: i32) -> (i32, i32, i32) {
    %c0_i32 = arith.constant 0 : i32
    %c0_i32_0 = arith.constant 0 : i32
    %c0_i32_1 = arith.constant 0 : i32
    return %arg0, %c0_i32, %c0_i32_0 : i32, i32, i32
  }
}

</mosaic_0001>

<bundles_post_ra>
// kernel: _lambda_.1
= control target key start
LH: loop header
LB: loop body
LE: loop exit
PB: predicated region body
PF: predicated region fallthrough
CT: control target
= control target key end

     0   :  { %s6998_s18 = smov 0   ;;  %s8966_s0 = inlined_call_operand.vmem [shape: bf16[2,144,32], index: 0, kind: input, shape index: {}]   ;;  %s8967_s1 = inlined_call_operand.vmem [shape: bf16[32,128], index: 1, kind: input, shape index: {}]   ;;  %s8968_s2 = inlined_call_operand.vmem [shape: f32[1,128], index: 2, kind: input, shape index: {}]   ;;  %s8969_s3 = inlined_call_operand.vmem [shape: bf16[25,128,128], index: 3, kind: input, shape index: {}]   ;;  %s8970_s4 = inlined_call_operand.vmem [shape: f32[1,128], index: 4, kind: input, shape index: {}]   ;;  %s8971_s5 = inlined_call_operand.vmem [shape: f32[2,64,128], index: 5, kind: output, shape index: {}]  }
   0x1 LB: > { %s5018_s19 = sadd.s32 4294967295, %s6964_s18   ;;  %p5022_p0 = scmp.ge.s32.totalorder %s6964_s18, 1  ;;  %s6964_s18 = sphi %s6998_s18, %s15_s18  }
   0x2   : > { %p187_p1 = scmp.lt.s32.totalorder %s6964_s18, 3 }
   0x4   : > { %p188_p2 = pnand %p5022_p0, %p187_p1 }
   0x6   : > { %191 = sbr.rel (%p188_p2) target bundleno = 846 (0x34e), region = 40 }
   0xb   : > { %v6747_v0 = vld [vmem:[%s8967_s1 + $0x8] sm:$0xff]   ;;  %v6966_v1 = vmov 0.0   ;;  %v6748_v2 = vld [vmem:[%s8967_s1] sm:$0xff]   ;;  %vm6967_vm0 = vmmov 0   ;;  %p215_p3 = scmp.lt.s32.totalorder %s5018_s19, 1  ;;  %v6757_v3 = vld [vmem:[%s8969_s3 + $0x38] sm:$0xff]  }
   0xc   : > { %5996 = vmatprep.subr.bf16.mxu0 %v6966_v1  ;;  %6000 = vmatprep.mubr.msk.bf16.mxu0 %vm6967_vm0, %v6966_v1  ;;  %v6758_v4 = vld [vmem:[%s8969_s3 + $0xb8] sm:$0xff]   ;;  %v6759_v5 = vld [vmem:[%s8969_s3 + $0x30] sm:$0xff]   ;;  %v6760_v6 = vld [vmem:[%s8969_s3 + $0x28] sm:$0xff]   ;;  %vm312_vm1 = vcmask 261120   ;;  %vm871_vm2 = vcmask 1046528   ;;  %vm1235_vm5 = vcmask 1045504  }
   0xd   : > { %5997 = vmatpush3.bf16.msra.mxu0 %v6747_v0  ;;  %s9103_s19 = smov (!%p215_p3, %s5018_s19), 1  ;;  %6036 = vmatprep.subr.bf16.mxu1 %v6757_v3  ;;  %v6761_v7 = vld [vmem:[%s8969_s3 + $0xb0] sm:$0xff]   ;;  %v6762_v9 = vld [vmem:[%s8969_s3 + $0x20] sm:$0xff]   ;;  %v6764_v18 = vld [vmem:[%s8969_s3 + $0x18] sm:$0xff]   ;;  %vm1965_vm3 = vsmask.f32 256 }
   0xe   : > { %5998 = vmatprep.subr.bf16.mxu0 %v6966_v1  ;;  %s6736_s30 = smul.u32 72, %s9103_s19  ;;  %6037 = vmatpush3.bf16.msra.mxu1 %v6757_v3  ;;  %v6765_v19 = vld [vmem:[%s8969_s3 + $0xa8] sm:$0xff]   ;;  %v6766_v20 = vld [vmem:[%s8969_s3 + $0x10] sm:$0xff]   ;;  %v6767_v21 = vld [vmem:[%s8969_s3 + $0xa0] sm:$0xff]   ;;  %vm653_vm4 = vsmask.f32 7424 }
   0xf   : > { %6038 = vmatprep.subr.bf16.mxu1 %v6759_v5  ;;  %v6768_v22 = vld [vmem:[%s8969_s3 + $0x8] sm:$0xff]   ;;  %v6769_v23 = vld [vmem:[%s8969_s3 + $0x98] sm:$0xff]   ;;  %v6770_v24 = vld [vmem:[%s8969_s3] sm:$0xff]   ;;  %vm1047_vm6 = vsmask.f32 6400  ;;  %vm1412_vm9 = vcmask 1041408  }
  0x10   : > { %s7031_s10 = scalar_lea.vmem %s8966_s0, %s6736_s30  ;;  %v6771_v25 = vld [vmem:[%s8969_s3 + $0x90] sm:$0xff]   ;;  %v6772_v26 = vld [vmem:[%s8969_s3 + $0x88] sm:$0xff]   ;;  %v6773_v27 = vld [vmem:[%s8969_s3 + $0x78] sm:$0xff]   ;;  %vm1590_vm7 = vsmask.f32 1280  ;;  %vm1787_vm13 = vcmask 1040384  }
  0x11   : > { %5999 = vmatpush3.bf16.msra.mxu0 %v6748_v2  ;;  %v6749_v8 = vld [vmem:[%s7031_s10] sm:$0xff]   ;;  %v6750_v10 = vld [vmem:[%s7031_s10 + $0x8] sm:$0xff]   ;;  %v6751_v11 = vld [vmem:[%s7031_s10 + $0x10] sm:$0xff]   ;;  %vm2486_vm8 = vsmask.f32 3328  ;;  %vm2308_vm14 = vcmask 1043456  }
  0x12   : > { %6092 = vmatprep.subr.bf16.mxu0 %v6758_v4  ;;  %6039 = vmatpush3.bf16.msra.mxu1 %v6759_v5  ;;  %v6752_v12 = vld [vmem:[%s7031_s10 + $0x18] sm:$0xff]   ;;  %v6753_v13 = vld [vmem:[%s7031_s10 + $0x20] sm:$0xff]   ;;  %v6754_v14 = vld [vmem:[%s7031_s10 + $0x28] sm:$0xff]   ;;  %vm2861_vm10 = vsmask.f32 2304  ;;  %vm2683_vm15 = vcmask 1042432  }
  0x13   : > { %6040 = vmatprep.subr.bf16.mxu1 %v6760_v6  ;;  %v6755_v15 = vld [vmem:[%s7031_s10 + $0x30] sm:$0xff]   ;;  %v6756_v16 = vld [vmem:[%s7031_s10 + $0x38] sm:$0xff]   ;;  %v6763_v17 = vld [vmem:[%s7031_s10 + $0x40] sm:$0xff]   ;;  %vm3379_vm11 = vsmask.f32 5376  ;;  %s5634_s16 = sshll.u32 %s9103_s19, 6 }
  0x14   : > { %6001 = vmatmul.mubr.msk.bf16.vlgmr.msra.gmra.mxu0 %vm312_vm1, %v6749_v8  ;;  %v6774_v28 = vld [vmem:[%s8969_s3 + $0x80] sm:$0xff]   ;;  %v7101_v29 = vld [vmem:[%s8969_s3 + $0x138] sm:$0xff]   ;;  %v6775_v50 = vld [vmem:[%s8969_s3 + $0x70] sm:$0xff]   ;;  %vm3751_vm12 = vsmask.f32 4352  ;;  %s8923_s20 = scalar_lea.vmem %s8971_s5, %s5634_s16 }
  0x15   : > { %6004 = vmatprep.mubr.msk.bf16.mxu0 %vm6967_vm0, %v6966_v1  ;;  %6093 = vmatpush3.bf16.msra.mxu0 %v6758_v4  ;;  %v7107_v30 = vld [vmem:[%s8968_s2] ss:$0 sm:$0xff]  ;;  %v6777_v58 = vld [vmem:[%s8969_s3 + $0x68] sm:$0xff]  }
  0x16   : > { %6094 = vmatprep.subr.bf16.mxu0 %v6761_v7  ;;  %6041 = vmatpush3.bf16.msra.mxu1 %v6760_v6  ;;  %v6779_v0 = vld [vmem:[%s8969_s3 + $0x60] sm:$0xff]  }
  0x17   : > { %6042 = vmatprep.subr.bf16.mxu1 %v6762_v9 }
  0x19   : > { %6095 = vmatpush3.bf16.msra.mxu0 %v6761_v7  ;;  %v6778_v7 = vld [vmem:[%s8969_s3 + $0x130] sm:$0xff]  }
  0x1a   : > { %6043 = vmatpush3.bf16.msra.mxu1 %v6762_v9  ;;  %6096 = vmatprep.subr.bf16.mxu0 %v6765_v19 }
  0x1b   : > { %6044 = vmatprep.subr.bf16.mxu1 %v6764_v18 }
  0x1c   : > { %6005 = vmatmul.mubr.msk.bf16.gmra.mxu0 %vm312_vm1, %v6750_v10 }
  0x1d   : > { %6008 = vmatprep.mubr.msk.bf16.mxu0 %vm6967_vm0, %v6966_v1  ;;  %6097 = vmatpush3.bf16.msra.mxu0 %v6765_v19 }
  0x1e   : > { %6045 = vmatpush3.bf16.msra.mxu1 %v6764_v18  ;;  %6098 = vmatprep.subr.bf16.mxu0 %v6767_v21  ;;  %v6780_v18 = vld [vmem:[%s8969_s3 + $0x128] sm:$0xff]  }
  0x1f   : > { %6046 = vmatprep.subr.bf16.mxu1 %v6766_v20 }
  0x21   : > { %6099 = vmatpush3.bf16.msra.mxu0 %v6767_v21 }
  0x22   : > { %6047 = vmatpush3.bf16.msra.mxu1 %v6766_v20  ;;  %6100 = vmatprep.subr.bf16.mxu0 %v6769_v23 }
  0x23   : > { %6048 = vmatprep.subr.bf16.mxu1 %v6768_v22 }
  0x24   : > { %6009 = vmatmul.mubr.msk.bf16.gmra.mxu0 %vm312_vm1, %v6751_v11  ;;  %v6781_v11 = vld [vmem:[%s8969_s3 + $0x58] sm:$0xff]  }
  0x25   : > { %6012 = vmatprep.mubr.msk.bf16.mxu0 %vm6967_vm0, %v6966_v1  ;;  %6101 = vmatpush3.bf16.msra.mxu0 %v6769_v23 }
  0x26   : > { %6049 = vmatpush3.bf16.msra.mxu1 %v6768_v22  ;;  %6102 = vmatprep.subr.bf16.mxu0 %v6771_v25  ;;  %v6783_v22 = vld [vmem:[%s8969_s3 + $0x50] sm:$0xff]  }
  0x27   : > { %6050 = vmatprep.subr.bf16.mxu1 %v6770_v24 }
  0x29   : > { %6103 = vmatpush3.bf16.msra.mxu0 %v6771_v25 }
  0x2a   : > { %6051 = vmatpush3.bf16.msra.mxu1 %v6770_v24  ;;  %6104 = vmatprep.subr.bf16.mxu0 %v6772_v26 }
  0x2b   : > { %6064 = vmatprep.subr.bf16.mxu1 %v6773_v27 }
  0x2c   : > { %6013 = vmatmul.mubr.msk.bf16.gmra.mxu0 %vm312_vm1, %v6752_v12 }
  0x2d   : > { %6016 = vmatprep.mubr.msk.bf16.mxu0 %vm6967_vm0, %v6966_v1  ;;  %6105 = vmatpush3.bf16.msra.mxu0 %v6772_v26 }
  0x2e   : > { %6106 = vmatprep.subr.bf16.mxu0 %v6774_v28 }
  0x31   : > { %6107 = vmatpush3.bf16.msra.mxu0 %v6774_v28 }
  0x32   : > { %6148 = vmatprep.subr.bf16.mxu0 %v7101_v29 }
  0x34   : > { %6017 = vmatmul.mubr.msk.bf16.gmra.mxu0 %vm312_vm1, %v6753_v13 }
  0x35   : > { %6020 = vmatprep.mubr.msk.bf16.mxu0 %vm6967_vm0, %v6966_v1 }
  0x3c   : > { %6021 = vmatmul.mubr.msk.bf16.gmra.mxu0 %vm312_vm1, %v6754_v14 }
  0x3d   : > { %6024 = vmatprep.mubr.msk.bf16.mxu0 %vm6967_vm0, %v6966_v1 }
  0x44   : > { %6025 = vmatmul.mubr.msk.bf16.gmra.mxu0 %vm312_vm1, %v6755_v15 }
  0x45   : > { %6028 = vmatprep.mubr.msk.bf16.mxu0 %vm6967_vm0, %v6966_v1 }
  0x4c   : > { %6029 = vmatmul.mubr.msk.bf16.gmra.mxu0 %vm312_vm1, %v6756_v16 }
  0x4d   : > { %6032 = vmatprep.mubr.msk.bf16.mxu0 %vm6967_vm0, %v6966_v1  ;;  %vm3573_vm0 = vcmask 1044480  }
  0x54   : > { %6033 = vmatmul.mubr.msk.bf16.gmra.mxu0 %vm312_vm1, %v6763_v17 }
  0xd4   : > { %v374_v31 = vpop.f32.mrf.mxu0 }
  0xd5   : > { %v375_v33 = vadd.f32 %v7107_v30, %v374_v31 }
  0xd6   : > { %v6002_v32 = vpop.f32.mrf.mxu0 }
  0xd7   : > { %v445_v37 = vmax.f32 %v375_v33, 0.0 }
  0xd8   : > { %v377_v34 = vpop.f32.mrf.mxu0 }
  0xd9   : > { %v378_v35 = vadd.f32 %v7107_v30, %v377_v34  ;;  %v6785_v34 = vld [vmem:[%s8969_s3 + $0x48] sm:$0xff]  }
  0xda   : > { %v6003_v36 = vpop.f32.mrf.mxu0 }
  0xdb   : > { %v446_v38 = vmax.f32 %v378_v35, 0.0 }
  0xdc   : > { %v382_v39 = vpop.f32.mrf.mxu0 }
  0xdd   : > { %v7111_v40 = vpack.c.bf16 %v446_v38, %v445_v37  ;;  %v383_v42 = vadd.f32 %v7107_v30, %v382_v39  ;;  %v6784_v39 = vld [vmem:[%s8969_s3 + $0x118] sm:$0xff]  }
  0xde   : > { %v6006_v41 = vpop.f32.mrf.mxu0 }
  0xdf   : > { %6052 = vmatprep.mubr.bf16.mxu1 %v7111_v40  ;;  %v447_v46 = vmax.f32 %v383_v42, 0.0  ;;  %v872_v53 = vrot.slane %v7111_v40, 1 }
  0xe0   : > { %v385_v43 = vpop.f32.mrf.mxu0 }
  0xe1   : > { %v386_v44 = vadd.f32 %v7107_v30, %v385_v43 }
  0xe2   : > { %v6007_v45 = vpop.f32.mrf.mxu0 }
  0xe3   : > { %v448_v47 = vmax.f32 %v386_v44, 0.0  ;;  %v7199_v44 = vshll.u32 %v7111_v40, 16  ;;  %v6787_v45 = vld [vmem:[%s8969_s3 + $0x40] sm:$0xff]  }
  0xe4   : > { %v390_v48 = vpop.f32.mrf.mxu0 }
  0xe5   : > { %v7116_v49 = vpack.c.bf16 %v448_v47, %v447_v46  ;;  %v391_v52 = vadd.f32 %v7107_v30, %v390_v48 }
  0xe6   : > { %v6010_v51 = vpop.f32.mrf.mxu0 }
  0xe7   : > { %6053 = vmatmul.mubr.bf16.vlgmr.msra.gmra.mxu1 %v7116_v49  ;;  %v873_v54 = vrot.slane %v7116_v49, 1  ;;  %v449_v60 = vmax.f32 %v391_v52, 0.0  ;;  %v7136_v2 = vshll.u32 %v7116_v49, 16  ;;  %v7139_v3 = vshrl.u32 %v7116_v49, 16  ;;  %v6786_v52 = vld [vmem:[%s8969_s3 + $0x110] sm:$0xff]  }
  0xe8   : > { %v393_v55 = vpop.f32.mrf.mxu0  ;;  %6065 = vmatpush3.bf16.msra.mxu1 %v6773_v27 }
  0xe9   : > { %v394_v56 = vadd.f32 %v7107_v30, %v393_v55  ;;  %v874_v57 = vsel %vm871_vm2, %v872_v53, %v873_v54  ;;  %6066 = vmatprep.subr.bf16.mxu1 %v6775_v50  ;;  %v2487_v13 = vrot.slane %v7139_v3, 4  ;;  %v2488_v14 = vrot.slane %v7136_v2, 5 }
  0xea   : > { %v6011_v59 = vpop.f32.mrf.mxu0  ;;  %6108 = vmatprep.mubr.bf16.mxu0 %v874_v57  ;;  %v659_v57 = vrot.slane %v7199_v44, 1 }
  0xeb   : > { %v450_v61 = vmax.f32 %v394_v56, 0.0  ;;  %v7173_v25 = vor.u32 %v2488_v14, %v2487_v13 }
  0xec   : > { %v398_v62 = vpop.f32.mrf.mxu0  ;;  %6067 = vmatpush3.bf16.msra.mxu1 %v6775_v50 }
  0xed   : > { %v7130_v63 = vpack.c.bf16 %v450_v61, %v449_v60  ;;  %6068 = vmatprep.subr.bf16.mxu1 %v6777_v58  ;;  %v399_v4 = vadd.f32 %v7107_v30, %v398_v62  ;;  %v7231_v60 = vshrl.u32 %v7111_v40, 16 }
  0xee   : > { %v6014_v1 = vpop.f32.mrf.mxu0 }
  0xef   : > { %6056 = vmatprep.mubr.bf16.mxu1 %v7130_v63  ;;  %v875_v5 = vrot.slane %v7130_v63, 1  ;;  %v7148_v8 = vshrl.u32 %v7130_v63, 16  ;;  %v451_v15 = vmax.f32 %v399_v4, 0.0  ;;  %v7162_v19 = vshll.u32 %v7130_v63, 16  ;;  %v6788_v4 = vld [vmem:[%s8969_s3 + $0x108] sm:$0xff]  }
  0xf0   : > { %v401_v6 = vpop.f32.mrf.mxu0  ;;  %6069 = vmatpush3.bf16.msra.mxu1 %v6777_v58  ;;  %v7227_v58 = vld [vmem:[%s8969_s3 + $0xf8] sm:$0xff]  }
  0xf1   : > { %v402_v9 = vadd.f32 %v7107_v30, %v401_v6  ;;  %v876_v10 = vsel %vm871_vm2, %v873_v54, %v875_v5  ;;  %6070 = vmatprep.subr.bf16.mxu1 %v6779_v0  ;;  %v1970_v20 = vrot.slane %v7148_v8, 7 }
  0xf2   : > { %v6015_v12 = vpop.f32.mrf.mxu0  ;;  %6109 = vmatmul.mubr.bf16.vlgmr.msra.gmra.mxu0 %v876_v10 }
  0xf3   : > { %v452_v16 = vmax.f32 %v402_v9, 0.0  ;;  %6149 = vmatpush3.bf16.msra.mxu0 %v7101_v29  ;;  %v7171_v24 = vor.u32 %v1970_v20, %v7162_v19  ;;  %v6782_v29 = vld [vmem:[%s8969_s3 + $0x120] sm:$0xff]   ;;  %v660_v9 = vor.u32 %v659_v57, %v7231_v60 }
  0xf4   : > { %v406_v17 = vpop.f32.mrf.mxu0  ;;  %6150 = vmatprep.subr.bf16.mxu0 %v6778_v7  ;;  %6071 = vmatpush3.bf16.msra.mxu1 %v6779_v0  ;;  %v664_v0 = vrot.slane %v7136_v2, 1 }
  0xf5   : > { %v7165_v21 = vpack.c.bf16 %v452_v16, %v451_v15  ;;  %6072 = vmatprep.subr.bf16.mxu1 %v6781_v11  ;;  %v407_v26 = vadd.f32 %v7107_v30, %v406_v17  ;;  %v1237_v15 = vrot.slane %v7116_v49, 2  ;;  %v1049_v16 = vrot.slane %v7199_v44, 2 }
  0xf6   : > { %v6018_v23 = vpop.f32.mrf.mxu0  ;;  %v665_v13 = vsel %vm653_vm4, %v660_v9, %v664_v0 }
  0xf7   : > { %6057 = vmatmul.mubr.bf16.gmra.mxu1 %v7165_v21  ;;  %6151 = vmatpush3.bf16.msra.mxu0 %v6778_v7  ;;  %v877_v27 = vrot.slane %v7165_v21, 1  ;;  %v7182_v31 = vshrl.u32 %v7165_v21, 16  ;;  %v453_v36 = vmax.f32 %v407_v26, 0.0  ;;  %v7193_v41 = vshll.u32 %v7165_v21, 16 }
  0xf8   : > { %v409_v28 = vpop.f32.mrf.mxu0  ;;  %6152 = vmatprep.subr.bf16.mxu0 %v6780_v18  ;;  %6073 = vmatpush3.bf16.msra.mxu1 %v6781_v11  ;;  %v1048_v11 = vrot.slane %v7231_v60, 1  ;;  %v1052_v23 = vrot.slane %v7136_v2, 2 }
  0xf9   : > { %v410_v32 = vadd.f32 %v7107_v30, %v409_v28  ;;  %v878_v33 = vsel %vm871_vm2, %v875_v5, %v877_v27  ;;  %6074 = vmatprep.subr.bf16.mxu1 %v6783_v22  ;;  %v8973_v42 = vrot.slane %v7182_v31, 7  ;;  %v672_v28 = vrot.slane %v7162_v19, 1 }
  0xfa   : > { %v6019_v35 = vpop.f32.mrf.mxu0  ;;  %6112 = vmatprep.mubr.bf16.mxu0 %v878_v33 }
  0xfb   : > { %v454_v37 = vmax.f32 %v410_v32, 0.0  ;;  %6153 = vmatpush3.bf16.msra.mxu0 %v6780_v18  ;;  %v1974_v47 = vor.u32 %v8973_v42, %v7193_v41  ;;  %v1236_v18 = vrot.slane %v7111_v40, 2  ;;  %v1595_v32 = vrot.slane %v7136_v2, 7 }
  0xfc   : > { %v414_v38 = vpop.f32.mrf.mxu0  ;;  %6154 = vmatprep.subr.bf16.mxu0 %v6782_v29  ;;  %6075 = vmatpush3.bf16.msra.mxu1 %v6783_v22  ;;  %v1051_v22 = vrot.slane %v7139_v3, 1  ;;  %v1591_v35 = vrot.slane %v7231_v60, 6  ;;  %v2863_v42 = vrot.slane %v7136_v2, 6 }
  0xfd   : > { %v7196_v43 = vpack.c.bf16 %v454_v37, %v453_v36  ;;  %6076 = vmatprep.subr.bf16.mxu1 %v6785_v34  ;;  %v415_v48 = vadd.f32 %v7107_v30, %v414_v38  ;;  %v7217_v54 = vsel %vm1965_vm3, %v1970_v20, %v1974_v47  ;;  %v668_v37 = vor.u32 %v7139_v3, %v664_v0 }
  0xfe   : > { %v6022_v46 = vpop.f32.mrf.mxu0  ;;  %v1238_v38 = vsel %vm1235_vm5, %v1236_v18, %v1237_v15  ;;  %v676_v0 = vor.u32 %v7148_v8, %v672_v28 }
  0xff   : > { %6060 = vmatprep.mubr.bf16.mxu1 %v7196_v43  ;;  %6155 = vmatpush3.bf16.msra.mxu0 %v6782_v29  ;;  %v879_v50 = vrot.slane %v7196_v43, 1  ;;  %v7214_v53 = vshrl.u32 %v7196_v43, 16  ;;  %v455_v61 = vmax.f32 %v415_v48, 0.0  ;;  %v7238_v5 = vshll.u32 %v7196_v43, 16 }
 0x100   : > { %v417_v51 = vpop.f32.mrf.mxu0  ;;  %6156 = vmatprep.subr.bf16.mxu0 %v6784_v39  ;;  %6077 = vmatpush3.bf16.msra.mxu1 %v6785_v34  ;;  %v1594_v29 = vrot.slane %v7139_v3, 6  ;;  %v680_v46 = vrot.slane %v7193_v41, 1  ;;  %v7288_v48 = vor.u32 %v1052_v23, %v1051_v22 }
 0x101   : > { %v418_v55 = vadd.f32 %v7107_v30, %v417_v51  ;;  %v7221_v56 = vsel %vm871_vm2, %v877_v27, %v879_v50  ;;  %6078 = vmatprep.subr.bf16.mxu1 %v6787_v45  ;;  %v1976_v6 = vrot.slane %v7214_v53, 7  ;;  %v6790_v27 = vld [vmem:[%s8969_s3 + $0x100] sm:$0xff]   ;;  %v688_v22 = vrot.slane %v7238_v5, 1 }
 0x102   : > { %8993 = vst [vmem:[#allocation2_spill] sm:$0xff] %v7221_v56  ;;  %v6023_v59 = vpop.f32.mrf.mxu0  ;;  %6113 = vmatmul.mubr.bf16.gmra.mxu0 %v7221_v56  ;;  %v7296_v57 = vor.u32 %v1595_v32, %v1594_v29  ;;  %v6794_v32 = vld [vmem:[%s8969_s3 + $0x1b0] sm:$0xff]  }
 0x103   : > { %v456_v62 = vmax.f32 %v418_v55, 0.0  ;;  %6157 = vmatpush3.bf16.msra.mxu0 %v6784_v39  ;;  %v7249_v12 = vor.u32 %v1976_v6, %v7238_v5  ;;  %v1050_v39 = vor.u32 %v1049_v16, %v1048_v11  ;;  %v6791_v55 = vld [vmem:[%s8969_s3 + $0xf0] sm:$0xff]  }
 0x104   : > { %v422_v1 = vpop.f32.mrf.mxu0  ;;  %6158 = vmatprep.subr.bf16.mxu0 %v6786_v52  ;;  %6079 = vmatpush3.bf16.msra.mxu1 %v6787_v45  ;;  %v1592_v45 = vrot.slane %v7199_v44, 7  ;;  %v1239_v44 = vrot.slane %v7130_v63, 2 }
 0x105   : > { %v7241_v7 = vpack.c.bf16 %v456_v62, %v455_v61  ;;  %6120 = vmatprep.subr.bf16.mxu1 %v7227_v58  ;;  %v423_v33 = vadd.f32 %v7107_v30, %v422_v1  ;;  %v6792_v1 = vld [vmem:[%s8969_s3 + $0x1b8] sm:$0xff]   ;;  %v7311_v16 = vsel %vm1047_vm6, %v1050_v39, %v7288_v48 }
 0x106   : > { %v6026_v10 = vpop.f32.mrf.mxu0  ;;  %v1593_v11 = vor.u32 %v1592_v45, %v1591_v35  ;;  %v1243_v45 = vrot.slane %v7196_v43, 2 }
 0x107   : > { %6061 = vmatmul.mubr.bf16.gmra.mxu1 %v7241_v7  ;;  %6159 = vmatpush3.bf16.msra.mxu0 %v6786_v52  ;;  %v7254_v14 = vrot.slane %v7241_v7, 1  ;;  %v7260_v20 = vshrl.u32 %v7241_v7, 16  ;;  %v7286_v47 = vshll.u32 %v7241_v7, 16  ;;  %v673_v52 = vsel %vm653_vm4, %v668_v37, %v672_v28 }
 0x108   : > { %v425_v17 = vpop.f32.mrf.mxu0  ;;  %6080 = vmatprep.mubr.bf16.mxu1 %v665_v13  ;;  %6160 = vmatprep.subr.bf16.mxu0 %v6788_v4  ;;  %v457_v61 = vmax.f32 %v423_v33, 0.0  ;;  %v1241_v10 = vrot.slane %v7165_v21, 2  ;;  %v681_v13 = vsel %vm653_vm4, %v676_v0, %v680_v46  ;;  %v7324_v23 = vsel %vm1590_vm7, %v1593_v11, %v7296_v57 }
 0x109   : > { %8994 = vst [vmem:[#allocation3_spill] sm:$0xff] %v7254_v14  ;;  %v7266_v26 = vsel %vm871_vm2, %v879_v50, %v7254_v14  ;;  %v426_v34 = vadd.f32 %v7107_v30, %v425_v17  ;;  %v8972_v51 = vrot.slane %v7260_v20, 7  ;;  %v1055_v33 = vrot.slane %v7148_v8, 1 }
 0x10a   : > { %8995 = vst [vmem:[#allocation4_spill] sm:$0xff] %v7266_v26  ;;  %6116 = vmatprep.mubr.bf16.mxu0 %v7266_v26  ;;  %v6027_v36 = vpop.f32.mrf.mxu0  ;;  %v684_v37 = vor.u32 %v7182_v31, %v680_v46  ;;  %v696_v39 = vrot.slane %v7286_v47, 1  ;;  %v692_v46 = vor.u32 %v7214_v53, %v688_v22  ;;  %v7371_v11 = vrot.slane %v7241_v7, 2 }
 0x10b   : > { %6117 = vmatmul.mubr.bf16.gmra.mxu0 %v7254_v14  ;;  %v458_v62 = vmax.f32 %v426_v34, 0.0  ;;  %v1980_v9 = vor.u32 %v8972_v51, %v7286_v47  ;;  %v1056_v34 = vrot.slane %v7162_v19, 2  ;;  %v7340_v36 = vsel %vm1235_vm5, %v1239_v44, %v1241_v10  ;;  %v6803_v14 = vld [vmem:[%s8969_s3 + $0xc0] sm:$0xff]  }
 0x10c   : > { %6161 = vmatpush3.bf16.msra.mxu0 %v6788_v4  ;;  %6164 = vmatprep.mubr.bf16.mxu0 %v1238_v38  ;;  %v430_v50 = vpop.f32.mrf.mxu0  ;;  %8996 = vst [vmem:[#allocation5_spill] sm:$0xff] %v7340_v36  ;;  %8998 = vst [vmem:[#allocation7_spill] sm:$0xff] %v7371_v11  ;;  %v2862_v51 = vrot.slane %v7139_v3, 5  ;;  %v2866_v38 = vrot.slane %v7162_v19, 6  ;;  %v2877_v26 = vrot.slane %v7260_v20, 5 }
 0x10d   : > { %6162 = vmatprep.subr.bf16.mxu0 %v6790_v27  ;;  %v431_v59 = vadd.f32 %v7107_v30, %v430_v50  ;;  %v7316_v18 = vsel %vm1965_vm3, %v1976_v6, %v1980_v9  ;;  %v7327_v29 = vpack.c.bf16 %v458_v62, %v457_v61  ;;  %v1240_v6 = vsel %vm1235_vm5, %v1237_v15, %v1239_v44  ;;  %v6796_v62 = vld [vmem:[%s8969_s3 + $0x1a8] sm:$0xff]  }
 0x10e   : > { %v6030_v4 = vpop.f32.mrf.mxu0  ;;  %v2490_v50 = vrot.slane %v7148_v8, 4  ;;  %v7350_v44 = vsel %vm653_vm4, %v684_v37, %v688_v22  ;;  %v2494_v61 = vrot.slane %v7182_v31, 4  ;;  %v2495_v9 = vrot.slane %v7193_v41, 5 }
 0x10f   : > { %6081 = vmatmul.mubr.bf16.vlgmr.msra.gmra.mxu1 %v673_v52  ;;  %v2491_v52 = vrot.slane %v7162_v19, 5  ;;  %8997 = vst [vmem:[#allocation6_spill] sm:$0xff] %v7350_v44  ;;  %v7363_v0 = vshrl.u32 %v7327_v29, 16  ;;  %v2498_v22 = vrot.slane %v7214_v53, 4  ;;  %v2502_v37 = vrot.slane %v7260_v20, 4 }
 0x110   : > { %6121 = vmatpush3.bf16.msra.mxu1 %v7227_v58  ;;  %6163 = vmatpush3.bf16.msra.mxu0 %v6790_v27  ;;  %v433_v17 = vpop.f32.mrf.mxu0  ;;  %v6793_v58 = vld [vmem:[%s8969_s3 + $0xe8] sm:$0xff]   ;;  %v459_v27 = vmax.f32 %v431_v59, 0.0 }
 0x111   : > { %6084 = vmatprep.mubr.bf16.mxu1 %v681_v13  ;;  %6122 = vmatprep.subr.bf16.mxu1 %v6791_v55  ;;  %v434_v28 = vadd.f32 %v7107_v30, %v433_v17  ;;  %v2492_v4 = vor.u32 %v2491_v52, %v2490_v50  ;;  %v7388_v50 = vor.u32 %v1056_v34, %v1055_v33  ;;  %v2506_v34 = vrot.slane %v7363_v0, 4 }
 0x112   : > { %6204 = vmatprep.subr.bf16.mxu0 %v6792_v1  ;;  %v6031_v35 = vpop.f32.mrf.mxu0  ;;  %v2865_v13 = vrot.slane %v7148_v8, 5 }
 0x113   : > { %6165 = vmatmul.mubr.bf16.vlgmr.msra.gmra.mxu0 %v1240_v6  ;;  %v460_v15 = vmax.f32 %v434_v28, 0.0  ;;  %v7377_v28 = vsel %vm653_vm4, %v692_v46, %v696_v39  ;;  %v7381_v6 = vsel %vm2486_vm8, %v7173_v25, %v2492_v4  ;;  %v2496_v35 = vor.u32 %v2495_v9, %v2494_v61  ;;  %v6798_v61 = vld [vmem:[%s8969_s3 + $0x1a0] sm:$0xff]  }
 0x114   : > { %6123 = vmatpush3.bf16.msra.mxu1 %v6791_v55  ;;  %6205 = vmatpush3.bf16.msra.mxu0 %v6792_v1  ;;  %v6795_v55 = vld [vmem:[%s8969_s3 + $0xe0] sm:$0xff]   ;;  %v7366_v1 = vshll.u32 %v7327_v29, 16  ;;  %v438_v17 = vpop.f32.mrf.mxu0  ;;  %8999 = vst [vmem:[#allocation8_spill] sm:$0xff] %v7377_v28  ;;  %v2503_v46 = vrot.slane %v7286_v47, 5  ;;  %v7395_v25 = vsel %vm1235_vm5, %v1241_v10, %v1243_v45  ;;  %v7411_v10 = vor.u32 %v7260_v20, %v696_v39  ;;  %v6799_v39 = vld [vmem:[%s8969_s3 + $0xd0] sm:$0xff]  }
 0x115   : > { %6168 = vmatprep.mubr.bf16.mxu0 %v7340_v36  ;;  %6124 = vmatprep.subr.bf16.mxu1 %v6793_v58  ;;  %v7356_v59 = vpack.c.bf16 %v460_v15, %v459_v27  ;;  %v2499_v27 = vrot.slane %v7238_v5, 5  ;;  %v6797_v15 = vld [vmem:[%s8969_s3 + $0xd8] sm:$0xff]   ;;  %9000 = vst [vmem:[#allocation9_spill] sm:$0xff] %v7395_v25  ;;  %v7401_v33 = vsel %vm2486_vm8, %v2492_v4, %v2496_v35 }
 0x116   : > { %6206 = vmatprep.subr.bf16.mxu0 %v6794_v32  ;;  %v2507_v9 = vrot.slane %v7366_v1, 5 }
 0x117   : > { %6085 = vmatmul.mubr.bf16.gmra.mxu1 %v7350_v44  ;;  %v2500_v52 = vor.u32 %v2499_v27, %v2498_v22  ;;  %v2504_v27 = vor.u32 %v2503_v46, %v2502_v37  ;;  %v6800_v37 = vld [vmem:[%s8969_s3 + $0x198] sm:$0xff]   ;;  %v2873_v44 = vrot.slane %v7214_v53, 5 }
 0x118   : > { %6125 = vmatpush3.bf16.msra.mxu1 %v6793_v58  ;;  %6207 = vmatpush3.bf16.msra.mxu0 %v6794_v32  ;;  %v439_v58 = vadd.f32 %v7107_v30, %v438_v17  ;;  %v6034_v32 = vpop.f32.mrf.mxu0  ;;  %v7408_v17 = vsel %vm1235_vm5, %v1243_v45, %v7371_v11  ;;  %v3381_v45 = vrot.slane %v7162_v19, 3 }
 0x119   : > { %6088 = vmatprep.mubr.bf16.mxu1 %v7377_v28  ;;  %6126 = vmatprep.subr.bf16.mxu1 %v6795_v55  ;;  %9001 = vst [vmem:[#allocation10_spill] sm:$0xff] %v7408_v17  ;;  %v7414_v22 = vsel %vm2486_vm8, %v2496_v35, %v2500_v52  ;;  %v7416_v32 = vor.u32 %v2507_v9, %v2506_v34  ;;  %v3384_v28 = vrot.slane %v7193_v41, 3 }
 0x11a   : > { %6208 = vmatprep.subr.bf16.mxu0 %v6796_v62  ;;  %v441_v4 = vpop.f32.mrf.mxu0  ;;  %v7428_v35 = vsel %vm2486_vm8, %v2500_v52, %v2504_v27  ;;  %v2864_v9 = vor.u32 %v2863_v42, %v2862_v51  ;;  %v3383_v51 = vrot.slane %v7182_v31, 2 }
 0x11b   : > { %6169 = vmatmul.mubr.bf16.gmra.mxu0 %v7395_v25  ;;  %v7435_v34 = vsel %vm2486_vm8, %v2504_v27, %v7416_v32  ;;  %v9002_v27 = vrot.slane %v7327_v29, 6 }
 0x11c   : > { %6127 = vmatpush3.bf16.msra.mxu1 %v6795_v55  ;;  %6209 = vmatpush3.bf16.msra.mxu0 %v6796_v62  ;;  %v461_v55 = vmax.f32 %v439_v58, 0.0  ;;  %v442_v62 = vadd.f32 %v7107_v30, %v441_v4  ;;  %v6035_v46 = vpop.f32.mrf.mxu0  ;;  %v3053_v58 = vrot.slane %v7356_v59, 6  ;;  %v3380_v4 = vrot.slane %v7148_v8, 2 }
 0x11d   : > { %6172 = vmatprep.mubr.bf16.mxu0 %v7408_v17  ;;  %6128 = vmatprep.subr.bf16.mxu1 %v6797_v15  ;;  %v2867_v46 = vor.u32 %v2866_v38, %v2865_v13  ;;  %v2869_v13 = vrot.slane %v7182_v31, 5  ;;  %v2870_v30 = vrot.slane %v7193_v41, 6  ;;  %v3395_v17 = vrot.slane %v7363_v0, 2 }
 0x11e   : > { %6210 = vmatprep.subr.bf16.mxu0 %v6798_v61  ;;  %v462_v52 = vmax.f32 %v442_v62, 0.0  ;;  %v7446_v42 = vsel %vm1412_vm9, %v9002_v27, %v3053_v58  ;;  %v6801_v62 = vld [vmem:[%s8969_s3 + $0xc8] sm:$0xff]   ;;  %v3382_v38 = vor.u32 %v3381_v45, %v3380_v4  ;;  %v6802_v58 = vld [vmem:[%s8969_s3 + $0x190] sm:$0xff]   ;;  %v3387_v45 = vrot.slane %v7214_v53, 2 }
 0x11f   : > { %6089 = vmatmul.mubr.bf16.gmra.mxu1 %v7411_v10  ;;  %v7462_v27 = vsel %vm2861_vm10, %v2864_v9, %v2867_v46  ;;  %v3391_v4 = vrot.slane %v7260_v20, 2 }
 0x120   : > { %6129 = vmatpush3.bf16.msra.mxu1 %v6797_v15  ;;  %6211 = vmatpush3.bf16.msra.mxu0 %v6798_v61  ;;  %v1060_v15 = vrot.slane %v7193_v41, 2  ;;  %v7455_v61 = vpack.c.bf16 %v462_v52, %v461_v55  ;;  %v2874_v55 = vrot.slane %v7238_v5, 6  ;;  %v3388_v52 = vrot.slane %v7238_v5, 3 }
 0x121   : > { %6136 = vmatprep.mubr.bf16.mxu1 %v7311_v16  ;;  %6130 = vmatprep.subr.bf16.mxu1 %v6799_v39  ;;  %v3385_v16 = vor.u32 %v3384_v28, %v3383_v51  ;;  %v2871_v28 = vor.u32 %v2870_v30, %v2869_v13  ;;  %v3392_v51 = vrot.slane %v7286_v47, 3  ;;  %v2881_v30 = vrot.slane %v7363_v0, 5 }
 0x122   : > { %6212 = vmatprep.subr.bf16.mxu0 %v6800_v37  ;;  %v3389_v56 = vor.u32 %v3388_v52, %v3387_v45  ;;  %v9005_v45 = vrot.slane %v7148_v8, 6 }
 0x123   : > { %6173 = vmatmul.mubr.bf16.gmra.mxu0 %v7371_v11  ;;  %v7472_v9 = vsel %vm3379_vm11, %v3382_v38, %v3385_v16  ;;  %v2878_v38 = vrot.slane %v7286_v47, 6  ;;  %v7486_v13 = vsel %vm2861_vm10, %v2867_v46, %v2871_v28  ;;  %v2882_v11 = vrot.slane %v7366_v1, 6 }
 0x124   : > { %6131 = vmatpush3.bf16.msra.mxu1 %v6799_v39  ;;  %6213 = vmatpush3.bf16.msra.mxu0 %v6800_v37  ;;  %v6804_v39 = vld [vmem:[%s8969_s3 + $0x188] sm:$0xff]   ;;  %v2875_v37 = vor.u32 %v2874_v55, %v2873_v44  ;;  %v7494_v36 = vsel %vm3379_vm11, %v3385_v16, %v3389_v56  ;;  %v3396_v55 = vrot.slane %v7366_v1, 3  ;;  %v9006_v46 = vrot.slane %v7162_v19, 7 }
 0x125   : > { %6220 = vmatprep.mubr.bf16.mxu0 %v7324_v23  ;;  %6132 = vmatprep.subr.bf16.mxu1 %v6801_v62  ;;  %v3393_v23 = vor.u32 %v3392_v51, %v3391_v4  ;;  %9004 = vst [vmem:[#allocation12_spill] sm:$0xff] %v7494_v36  ;;  %v2879_v44 = vor.u32 %v2878_v38, %v2877_v26  ;;  %v3752_v38 = vrot.slane %v7148_v8, 3  ;;  %v3759_v8 = vrot.slane %v7214_v53, 3 }
 0x126   : > { %6214 = vmatprep.subr.bf16.mxu0 %v6802_v58  ;;  %v7491_v25 = vsel %vm2861_vm10, %v2871_v28, %v2875_v37  ;;  %v7501_v52 = vor.u32 %v9006_v46, %v9005_v45  ;;  %v7506_v51 = vor.u32 %v2882_v11, %v2881_v30  ;;  %v1058_v26 = vsel %vm1047_vm6, %v7288_v48, %v7388_v50 }
 0x127   : > { %9003 = vst [vmem:[#allocation11_spill] sm:$0xff] %v7491_v25  ;;  %v7504_v4 = vsel %vm3379_vm11, %v3389_v56, %v3393_v23  ;;  %v1602_v56 = vrot.slane %v7182_v31, 6  ;;  %v7519_v11 = vsel %vm2861_vm10, %v2875_v37, %v2879_v44  ;;  %v7521_v16 = vor.u32 %v3396_v55, %v3395_v17 }
 0x128   : > { %6133 = vmatpush3.bf16.msra.mxu1 %v6801_v62  ;;  %6215 = vmatpush3.bf16.msra.mxu0 %v6802_v58  ;;  %9007 = vst [vmem:[#allocation13_spill] sm:$0xff] %v7504_v4  ;;  %9008 = vst [vmem:[#allocation14_spill] sm:$0xff] %v7506_v51  ;;  %v6805_v62 = vld [vmem:[%s8969_s3 + $0x178] sm:$0xff]   ;;  %v6806_v58 = vld [vmem:[%s8969_s3 + $0x180] sm:$0xff]   ;;  %v1603_v28 = vrot.slane %v7193_v41, 7  ;;  %v7526_v48 = vsel %vm2861_vm10, %v2879_v44, %v7506_v51  ;;  %v3753_v30 = vrot.slane %v7162_v19, 4 }
 0x129   : > { %6134 = vmatprep.subr.bf16.mxu1 %v6803_v14  ;;  %6216 = vmatprep.subr.bf16.mxu0 %v6804_v39  ;;  %9009 = vst [vmem:[#allocation15_spill] sm:$0xff] %v7519_v11  ;;  %9010 = vst [vmem:[#allocation16_spill] sm:$0xff] %v7521_v16  ;;  %v9012_v45 = vrot.slane %v7182_v31, 1  ;;  %v7534_v4 = vsel %vm3379_vm11, %v3393_v23, %v7521_v16  ;;  %v3755_v17 = vrot.slane %v7182_v31, 3  ;;  %v3756_v37 = vrot.slane %v7193_v41, 4 }
 0x12a   : > { %9011 = vst [vmem:[#allocation17_spill] sm:$0xff] %v7526_v48  ;;  %9013 = vst [vmem:[#allocation18_spill] sm:$0xff] %v7534_v4  ;;  %v1063_v44 = vrot.slane %v7214_v53, 1  ;;  %v3754_v55 = vor.u32 %v3753_v30, %v3752_v38  ;;  %v3760_v19 = vrot.slane %v7238_v5, 4  ;;  %v1064_v23 = vrot.slane %v7238_v5, 2 }
 0x12b   : > { %v1061_v46 = vor.u32 %v1060_v15, %v9012_v45  ;;  %v6807_v15 = vld [vmem:[%s8969_s3 + $0x170] sm:$0xff]   ;;  %v3757_v45 = vor.u32 %v3756_v37, %v3755_v17  ;;  %v3763_v41 = vrot.slane %v7260_v20, 3  ;;  %v1067_v38 = vrot.slane %v7260_v20, 1 }
 0x12c   : > { %6135 = vmatpush3.bf16.msra.mxu1 %v6803_v14  ;;  %6217 = vmatpush3.bf16.msra.mxu0 %v6804_v39  ;;  %v3764_v14 = vrot.slane %v7286_v47, 4  ;;  %v6808_v39 = vld [vmem:[%s8969_s3 + $0x238] sm:$0xff]   ;;  %v1068_v30 = vrot.slane %v7286_v47, 2  ;;  %v3761_v51 = vor.u32 %v3760_v19, %v3759_v8  ;;  %v3767_v16 = vrot.slane %v7363_v0, 3 }
 0x12d   : > { %6176 = vmatprep.subr.bf16.mxu1 %v6805_v62  ;;  %6218 = vmatprep.subr.bf16.mxu0 %v6806_v58  ;;  %v1062_v4 = vsel %vm1047_vm6, %v7388_v50, %v1061_v46  ;;  %v7556_v17 = vsel %vm3751_vm12, %v3754_v55, %v3757_v45  ;;  %v3768_v48 = vrot.slane %v7366_v1, 4  ;;  %v1604_v11 = vor.u32 %v1603_v28, %v1602_v56 }
 0x12e   : > { %v3765_v37 = vor.u32 %v3764_v14, %v3763_v41  ;;  %v1606_v36 = vrot.slane %v7214_v53, 6  ;;  %v7561_v25 = vsel %vm3751_vm12, %v3757_v45, %v3761_v51  ;;  %v1607_v8 = vrot.slane %v7238_v5, 7  ;;  %v6810_v53 = vld [vmem:[%s8969_s3 + $0x230] sm:$0xff]  }
 0x12f   : > { %6137 = vmatmul.mubr.bf16.vlgmr.msra.gmra.mxu1 %v1058_v26  ;;  %v1065_v26 = vor.u32 %v1064_v23, %v1063_v44  ;;  %v7567_v55 = vor.u32 %v3768_v48, %v3767_v16  ;;  %v1601_v5 = vsel %vm1590_vm7, %v7296_v57, %v7501_v52  ;;  %v1605_v16 = vsel %vm1590_vm7, %v7501_v52, %v1604_v11  ;;  %v6811_v44 = vld [vmem:[%s8969_s3 + $0x160] sm:$0xff]  }
 0x130   : > { %6140 = vmatprep.mubr.bf16.mxu1 %v1062_v4  ;;  %6177 = vmatpush3.bf16.msra.mxu1 %v6805_v62  ;;  %v7565_v50 = vsel %vm3751_vm12, %v3761_v51, %v3765_v37  ;;  %v6809_v4 = vld [vmem:[%s8969_s3 + $0x168] sm:$0xff]   ;;  %v1069_v62 = vor.u32 %v1068_v30, %v1067_v38  ;;  %v7582_v51 = vshrl.u32 %v7356_v59, 16  ;;  %v1610_v28 = vrot.slane %v7260_v20, 6 }
 0x131   : > { %6219 = vmatpush3.bf16.msra.mxu0 %v6806_v58  ;;  %6178 = vmatprep.subr.bf16.mxu1 %v6807_v15  ;;  %v7576_v58 = vshll.u32 %v7356_v59, 16  ;;  %v7586_v56 = vsel %vm3751_vm12, %v3765_v37, %v7567_v55  ;;  %v1611_v48 = vrot.slane %v7286_v47, 7  ;;  %v7593_v57 = vsel %vm1047_vm6, %v1061_v46, %v1065_v26  ;;  %v6812_v47 = vld [vmem:[%s8969_s3 + $0x228] sm:$0xff]  }
 0x132   : > { %6260 = vmatprep.subr.bf16.mxu0 %v6808_v39  ;;  %9014 = vst [vmem:[#allocation19_spill] sm:$0xff] %v7593_v57  ;;  %v1608_v19 = vor.u32 %v1607_v8, %v1606_v36  ;;  %v4264_v23 = vrot.slane %v7366_v1, 1  ;;  %v7600_v52 = vsel %vm1047_vm6, %v1065_v26, %v1069_v62  ;;  %v4603_v46 = vrot.slane %v7363_v0, 1  ;;  %v6813_v26 = vld [vmem:[%s8969_s3 + $0x158] sm:$0xff]   ;;  %v6814_v8 = vld [vmem:[%s8969_s3 + $0x220] sm:$0xff]  }
 0x133   : > { %9015 = vst [vmem:[#allocation20_spill] sm:$0xff] %v7600_v52  ;;  %v4604_v45 = vrot.slane %v7366_v1, 2  ;;  %v4607_v14 = vrot.slane %v7582_v51, 1  ;;  %v1612_v38 = vor.u32 %v1611_v48, %v1610_v28  ;;  %v1620_v28 = vrot.slane %v7366_v1, 7 }
 0x134   : > { %6221 = vmatmul.mubr.bf16.vlgmr.msra.gmra.mxu0 %v1601_v5  ;;  %6179 = vmatpush3.bf16.msra.mxu1 %v6807_v15  ;;  %v4267_v15 = vrot.slane %v7576_v58, 1  ;;  %v7611_v36 = vsel %vm653_vm4, %v7411_v10, %v4264_v23  ;;  %v4266_v41 = vor.u32 %v4264_v23, %v7363_v0  ;;  %v1609_v5 = vsel %vm1590_vm7, %v1604_v11, %v1608_v19  ;;  %v6815_v11 = vld [vmem:[%s8969_s3 + $0x150] sm:$0xff]  }
 0x135   : > { %6224 = vmatprep.mubr.bf16.mxu0 %v1605_v16  ;;  %6261 = vmatpush3.bf16.msra.mxu0 %v6808_v39  ;;  %9016 = vst [vmem:[#allocation21_spill] sm:$0xff] %v7611_v36  ;;  %v4608_v39 = vrot.slane %v7576_v58, 2  ;;  %v4605_v30 = vor.u32 %v4604_v45, %v4603_v46  ;;  %v1617_v16 = vrot.slane %v7363_v0, 6  ;;  %v1613_v23 = vsel %vm1590_vm7, %v1608_v19, %v1612_v38 }
 0x136   : > { %6180 = vmatprep.subr.bf16.mxu1 %v6809_v4  ;;  %6262 = vmatprep.subr.bf16.mxu0 %v6810_v53  ;;  %v7620_v37 = vsel %vm653_vm4, %v4266_v41, %v4267_v15  ;;  %v1967_v46 = vrot.slane %v7139_v3, 7  ;;  %v1413_v45 = vrot.slane %v7111_v40, 6  ;;  %v6816_v41 = vld [vmem:[%s8969_s3 + $0x218] sm:$0xff]  }
 0x137   : > { %6141 = vmatmul.mubr.bf16.gmra.mxu1 %v7593_v57  ;;  %9017 = vst [vmem:[#allocation22_spill] sm:$0xff] %v7620_v37  ;;  %v7622_v10 = vor.u32 %v4608_v39, %v4607_v14  ;;  %v1621_v19 = vor.u32 %v1620_v28, %v1617_v16  ;;  %v6817_v14 = vld [vmem:[%s8969_s3 + $0x148] sm:$0xff]   ;;  %v6823_v16 = vld [vmem:[%s8969_s3 + $0x1f0] sm:$0xff]  }
 0x138   : > { %6144 = vmatprep.mubr.bf16.mxu1 %v7600_v52  ;;  %6181 = vmatpush3.bf16.msra.mxu1 %v6809_v4  ;;  %v1414_v4 = vrot.slane %v7116_v49, 6  ;;  %v1968_v3 = vor.u32 %v1967_v46, %v7136_v2  ;;  %v6819_v2 = vld [vmem:[%s8969_s3 + $0x140] sm:$0xff]   ;;  %v9030_v52 = vld [vmem:[#allocation13_spill] sm:$0xff] }
 0x139   : > { %6263 = vmatpush3.bf16.msra.mxu0 %v6810_v53  ;;  %6182 = vmatprep.subr.bf16.mxu1 %v6811_v44  ;;  %v7632_v53 = vsel %vm1047_vm6, %v1069_v62, %v4605_v30  ;;  %v7639_v48 = vsel %vm1047_vm6, %v4605_v30, %v7622_v10  ;;  %v1622_v39 = vsel %vm1590_vm7, %v1612_v38, %v1621_v19  ;;  %v6821_v38 = vld [vmem:[%s8969_s3 + $0x1f8] sm:$0xff]   ;;  %v1422_v19 = vrot.slane %v7241_v7, 6 }
 0x13a   : > { %6264 = vmatprep.subr.bf16.mxu0 %v6812_v47  ;;  %9018 = vst [vmem:[#allocation23_spill] sm:$0xff] %v7632_v53  ;;  %9019 = vst [vmem:[#allocation24_spill] sm:$0xff] %v7639_v48 }
 0x13c   : > { %6225 = vmatmul.mubr.bf16.gmra.mxu0 %v1609_v5  ;;  %6183 = vmatpush3.bf16.msra.mxu1 %v6811_v44  ;;  %v1415_v44 = vsel %vm1412_vm9, %v1413_v45, %v1414_v4  ;;  %v1418_v5 = vrot.slane %v7165_v21, 6 }
 0x13d   : > { %6228 = vmatprep.mubr.bf16.mxu0 %v1613_v23  ;;  %6265 = vmatpush3.bf16.msra.mxu0 %v6812_v47  ;;  %v1966_v47 = vrot.slane %v7231_v60, 7  ;;  %v6820_v60 = vld [vmem:[%s8969_s3 + $0x208] sm:$0xff]   ;;  %v6824_v23 = vld [vmem:[%s8969_s3 + $0x2b8] sm:$0xff]  }
 0x13e   : > { %6184 = vmatprep.subr.bf16.mxu1 %v6813_v26  ;;  %6266 = vmatprep.subr.bf16.mxu0 %v6814_v8 }
 0x13f   : > { %6145 = vmatmul.mubr.bf16.gmra.mxu1 %v1069_v62  ;;  %v6818_v62 = vld [vmem:[%s8969_s3 + $0x210] sm:$0xff]   ;;  %v1969_v30 = vsel %vm1965_vm3, %v1966_v47, %v1968_v3  ;;  %v6827_v3 = vld [vmem:[%s8969_s3 + $0x1e0] sm:$0xff]  }
 0x140   : > { %6185 = vmatpush3.bf16.msra.mxu1 %v6813_v26  ;;  %6192 = vmatprep.mubr.bf16.mxu1 %v1415_v44  ;;  %v1416_v26 = vrot.slane %v7130_v63, 6  ;;  %v1972_v44 = vsel %vm1965_vm3, %v1967_v46, %v7171_v24  ;;  %v6828_v24 = vld [vmem:[%s8969_s3 + $0x2a8] sm:$0xff]  }
 0x141   : > { %6267 = vmatpush3.bf16.msra.mxu0 %v6814_v8  ;;  %6186 = vmatprep.subr.bf16.mxu1 %v6815_v11  ;;  %v6822_v8 = vld [vmem:[%s8969_s3 + $0x200] sm:$0xff]  }
 0x142   : > { %6268 = vmatprep.subr.bf16.mxu0 %v6816_v41  ;;  %v7679_v28 = vsel %vm1412_vm9, %v1414_v4, %v1416_v26  ;;  %v7686_v45 = vsel %vm1412_vm9, %v1416_v26, %v1418_v5  ;;  %v6825_v4 = vld [vmem:[%s8969_s3 + $0x1e8] sm:$0xff]   ;;  %v2310_v26 = vrot.slane %v7130_v63, 4 }
 0x144   : > { %6229 = vmatmul.mubr.bf16.gmra.mxu0 %v1622_v39  ;;  %6187 = vmatpush3.bf16.msra.mxu1 %v6815_v11  ;;  %v1420_v11 = vrot.slane %v7196_v43, 6 }
 0x145   : > { %6269 = vmatpush3.bf16.msra.mxu0 %v6816_v41  ;;  %6276 = vmatprep.mubr.bf16.mxu0 %v1969_v30  ;;  %v6826_v41 = vld [vmem:[%s8969_s3 + $0x2b0] sm:$0xff]   ;;  %v1789_v30 = vrot.slane %v7116_v49, 7 }
 0x146   : > { %6188 = vmatprep.subr.bf16.mxu1 %v6817_v14  ;;  %6270 = vmatprep.subr.bf16.mxu0 %v6818_v62  ;;  %v7704_v47 = vsel %vm1412_vm9, %v1418_v5, %v1420_v11  ;;  %v7711_v46 = vsel %vm1412_vm9, %v1420_v11, %v1422_v19  ;;  %v6833_v5 = vld [vmem:[%s8969_s3 + $0x1c8] sm:$0xff]   ;;  %v7754_v11 = vshll.u32 %v7455_v61, 16 }
 0x148   : > { %6189 = vmatpush3.bf16.msra.mxu1 %v6817_v14  ;;  %v6830_v14 = vld [vmem:[%s8969_s3 + $0x2a0] sm:$0xff]  }
 0x149   : > { %6271 = vmatpush3.bf16.msra.mxu0 %v6818_v62  ;;  %6190 = vmatprep.subr.bf16.mxu1 %v6819_v2  ;;  %v9020_v62 = vrot.slane %v7182_v31, 7  ;;  %v9021_v31 = vrot.slane %v7327_v29, 6 }
 0x14a   : > { %6272 = vmatprep.subr.bf16.mxu0 %v6820_v60 }
 0x14b   : > { %v1978_v39 = vsel %vm1965_vm3, %v9020_v62, %v7249_v12  ;;  %v7734_v12 = vsel %vm1412_vm9, %v1422_v19, %v9021_v31  ;;  %v4269_v19 = vor.u32 %v4267_v15, %v7582_v51  ;;  %v1791_v15 = vrot.slane %v7130_v63, 7  ;;  %v6839_v31 = vld [vmem:[%s8969_s3 + $0x270] sm:$0xff]  }
 0x14c   : > { %6191 = vmatpush3.bf16.msra.mxu1 %v6819_v2  ;;  %v1982_v2 = vrot.slane %v7363_v0, 7  ;;  %v6832_v0 = vld [vmem:[%s8969_s3 + $0x298] sm:$0xff]  }
 0x14d   : > { %6273 = vmatpush3.bf16.msra.mxu0 %v6820_v60  ;;  %6232 = vmatprep.subr.bf16.mxu1 %v6821_v38  ;;  %v1788_v60 = vrot.slane %v7111_v40, 7 }
 0x14e   : > { %6274 = vmatprep.subr.bf16.mxu0 %v6822_v8  ;;  %v1983_v40 = vor.u32 %v1982_v2, %v7366_v1  ;;  %v9022_v1 = vrot.slane %v7260_v20, 7  ;;  %v6836_v20 = vld [vmem:[%s8969_s3 + $0x288] sm:$0xff]  }
 0x14f   : > { %6193 = vmatmul.mubr.bf16.vlgmr.msra.gmra.mxu1 %v7679_v28 }
 0x150   : > { %6196 = vmatprep.mubr.bf16.mxu1 %v7686_v45  ;;  %6233 = vmatpush3.bf16.msra.mxu1 %v6821_v38  ;;  %v6831_v38 = vld [vmem:[%s8969_s3 + $0x1d0] sm:$0xff]  }
 0x151   : > { %6275 = vmatpush3.bf16.msra.mxu0 %v6822_v8  ;;  %6234 = vmatprep.subr.bf16.mxu1 %v6823_v16  ;;  %v2309_v8 = vrot.slane %v7116_v49, 4 }
 0x152   : > { %6316 = vmatprep.subr.bf16.mxu0 %v6824_v23 }
 0x154   : > { %6277 = vmatmul.mubr.bf16.vlgmr.msra.gmra.mxu0 %v1972_v44  ;;  %6235 = vmatpush3.bf16.msra.mxu1 %v6823_v16  ;;  %v6834_v16 = vld [vmem:[%s8969_s3 + $0x290] sm:$0xff]   ;;  %v6835_v44 = vld [vmem:[%s8969_s3 + $0x1c0] sm:$0xff]  }
 0x155   : > { %6280 = vmatprep.mubr.bf16.mxu0 %v7217_v54  ;;  %6317 = vmatpush3.bf16.msra.mxu0 %v6824_v23  ;;  %v6829_v54 = vld [vmem:[%s8969_s3 + $0x1d8] sm:$0xff]   ;;  %v1984_v23 = vsel %vm1965_vm3, %v9022_v1, %v1983_v40 }
 0x156   : > { %6236 = vmatprep.subr.bf16.mxu1 %v6825_v4  ;;  %6318 = vmatprep.subr.bf16.mxu0 %v6826_v41 }
 0x157   : > { %6197 = vmatmul.mubr.bf16.gmra.mxu1 %v7704_v47 }
 0x158   : > { %6200 = vmatprep.mubr.bf16.mxu1 %v7711_v46  ;;  %6237 = vmatpush3.bf16.msra.mxu1 %v6825_v4  ;;  %v2311_v4 = vsel %vm2308_vm14, %v2309_v8, %v2310_v26  ;;  %v2312_v8 = vrot.slane %v7165_v21, 4 }
 0x159   : > { %6319 = vmatpush3.bf16.msra.mxu0 %v6826_v41  ;;  %6238 = vmatprep.subr.bf16.mxu1 %v6827_v3  ;;  %v7758_v41 = vshrl.u32 %v7455_v61, 16 }
 0x15a   : > { %6320 = vmatprep.subr.bf16.mxu0 %v6828_v24  ;;  %v7810_v1 = vsel %vm2308_vm14, %v2310_v26, %v2312_v8  ;;  %v6844_v26 = vld [vmem:[%s8969_s3 + $0x328] sm:$0xff]  }
 0x15c   : > { %6281 = vmatmul.mubr.bf16.gmra.mxu0 %v1978_v39  ;;  %6239 = vmatpush3.bf16.msra.mxu1 %v6827_v3  ;;  %v4270_v3 = vrot.slane %v7754_v11, 1  ;;  %v6838_v39 = vld [vmem:[%s8969_s3 + $0x280] sm:$0xff]  }
 0x15d   : > { %6284 = vmatprep.mubr.bf16.mxu0 %v7316_v18  ;;  %6321 = vmatpush3.bf16.msra.mxu0 %v6828_v24  ;;  %v1790_v18 = vsel %vm1787_vm13, %v1788_v60, %v1789_v30  ;;  %v4611_v24 = vrot.slane %v7758_v41, 1  ;;  %v1793_v60 = vrot.slane %v7165_v21, 7 }
 0x15e   : > { %6240 = vmatprep.subr.bf16.mxu1 %v6829_v54  ;;  %6322 = vmatprep.subr.bf16.mxu0 %v6830_v14  ;;  %v7778_v62 = vsel %vm653_vm4, %v4269_v19, %v4270_v3 }
 0x15f   : > { %6201 = vmatmul.mubr.bf16.gmra.mxu1 %v7734_v12  ;;  %9023 = vst [vmem:[#allocation25_spill] sm:$0xff] %v7778_v62  ;;  %v1794_v40 = vsel %vm1787_vm13, %v1791_v15, %v1793_v60  ;;  %v9032_v62 = vld [vmem:[#allocation17_spill] sm:$0xff] }
 0x160   : > { %6241 = vmatpush3.bf16.msra.mxu1 %v6829_v54  ;;  %6248 = vmatprep.mubr.bf16.mxu1 %v1790_v18  ;;  %v4612_v54 = vrot.slane %v7754_v11, 2  ;;  %v6840_v18 = vld [vmem:[%s8969_s3 + $0x338] sm:$0xff]  }
 0x161   : > { %6323 = vmatpush3.bf16.msra.mxu0 %v6830_v14  ;;  %6242 = vmatprep.subr.bf16.mxu1 %v6831_v38  ;;  %v6837_v14 = vld [vmem:[%s8969_s3 + $0x278] sm:$0xff]  }
 0x162   : > { %6324 = vmatprep.subr.bf16.mxu0 %v6832_v0  ;;  %v7784_v2 = vor.u32 %v4612_v54, %v4611_v24  ;;  %v2316_v24 = vrot.slane %v7241_v7, 4  ;;  %v2318_v54 = vrot.slane %v7327_v29, 4 }
 0x164   : > { %6285 = vmatmul.mubr.bf16.gmra.mxu0 %v1984_v23  ;;  %6243 = vmatpush3.bf16.msra.mxu1 %v6831_v38  ;;  %9024 = vst [vmem:[#allocation26_spill] sm:$0xff] %v7784_v2  ;;  %v7790_v38 = vsel %vm1047_vm6, %v7622_v10, %v7784_v2  ;;  %v2314_v10 = vrot.slane %v7196_v43, 4  ;;  %v1797_v23 = vrot.slane %v7241_v7, 7  ;;  %v9028_v2 = vld [vmem:[#allocation11_spill] sm:$0xff] }
 0x165   : > { %6325 = vmatpush3.bf16.msra.mxu0 %v6832_v0  ;;  %6332 = vmatprep.mubr.bf16.mxu0 %v2311_v4  ;;  %9025 = vst [vmem:[#allocation27_spill] sm:$0xff] %v7790_v38  ;;  %v1792_v0 = vsel %vm1787_vm13, %v1789_v30, %v1791_v15  ;;  %v6841_v30 = vld [vmem:[%s8969_s3 + $0x268] sm:$0xff]   ;;  %v6845_v15 = vld [vmem:[%s8969_s3 + $0x258] sm:$0xff]  }
 0x166   : > { %6244 = vmatprep.subr.bf16.mxu1 %v6833_v5  ;;  %6326 = vmatprep.subr.bf16.mxu0 %v6834_v16  ;;  %v7815_v4 = vsel %vm2308_vm14, %v2312_v8, %v2314_v10  ;;  %v8987_v8 = vrot.slane %v7356_v59, 4 }
 0x168   : > { %6245 = vmatpush3.bf16.msra.mxu1 %v6833_v5  ;;  %v1795_v5 = vrot.slane %v7196_v43, 7 }
 0x169   : > { %6327 = vmatpush3.bf16.msra.mxu0 %v6834_v16  ;;  %6246 = vmatprep.subr.bf16.mxu1 %v6835_v44  ;;  %v6842_v16 = vld [vmem:[%s8969_s3 + $0x330] sm:$0xff]  }
 0x16a   : > { %6328 = vmatprep.subr.bf16.mxu0 %v6836_v20  ;;  %v1798_v19 = vsel %vm1787_vm13, %v1795_v5, %v1797_v23 }
 0x16c   : > { %6247 = vmatpush3.bf16.msra.mxu1 %v6835_v44  ;;  %v6843_v44 = vld [vmem:[%s8969_s3 + $0x260] sm:$0xff]  }
 0x16d   : > { %6329 = vmatpush3.bf16.msra.mxu0 %v6836_v20  ;;  %6288 = vmatprep.subr.bf16.mxu1 %v6837_v14  ;;  %v1796_v20 = vsel %vm1787_vm13, %v1793_v60, %v1795_v5  ;;  %v7836_v60 = vsel %vm2308_vm14, %v2314_v10, %v2316_v24  ;;  %v2685_v10 = vrot.slane %v7130_v63, 5  ;;  %v2684_v5 = vrot.slane %v7116_v49, 5 }
 0x16e   : > { %6330 = vmatprep.subr.bf16.mxu0 %v6838_v39 }
 0x16f   : > { %6249 = vmatmul.mubr.bf16.vlgmr.msra.gmra.mxu1 %v1792_v0  ;;  %v6847_v0 = vld [vmem:[%s8969_s3 + $0x250] sm:$0xff]  }
 0x170   : > { %6252 = vmatprep.mubr.bf16.mxu1 %v1794_v40  ;;  %6289 = vmatpush3.bf16.msra.mxu1 %v6837_v14  ;;  %v1799_v14 = vrot.slane %v7327_v29, 7  ;;  %v6848_v40 = vld [vmem:[%s8969_s3 + $0x318] sm:$0xff]  }
 0x171   : > { %6331 = vmatpush3.bf16.msra.mxu0 %v6838_v39  ;;  %6290 = vmatprep.subr.bf16.mxu1 %v6839_v31  ;;  %v6846_v39 = vld [vmem:[%s8969_s3 + $0x320] sm:$0xff]  }
 0x172   : > { %6372 = vmatprep.subr.bf16.mxu0 %v6840_v18 }
 0x174   : > { %6333 = vmatmul.mubr.bf16.vlgmr.msra.gmra.mxu0 %v7810_v1  ;;  %6291 = vmatpush3.bf16.msra.mxu1 %v6839_v31  ;;  %v7840_v31 = vsel %vm2308_vm14, %v2316_v24, %v2318_v54  ;;  %v6855_v24 = vld [vmem:[%s8969_s3 + $0x2f0] sm:$0xff]  }
 0x175   : > { %6336 = vmatprep.mubr.bf16.mxu0 %v7815_v4  ;;  %6373 = vmatpush3.bf16.msra.mxu0 %v6840_v18  ;;  %v1800_v18 = vsel %vm1787_vm13, %v1797_v23, %v1799_v14  ;;  %v7863_v23 = vsel %vm2308_vm14, %v2318_v54, %v8987_v8  ;;  %v6856_v54 = vld [vmem:[%s8969_s3 + $0x3b8] sm:$0xff]   ;;  %v2687_v14 = vrot.slane %v7165_v21, 5 }
 0x176   : > { %6292 = vmatprep.subr.bf16.mxu1 %v6841_v30  ;;  %6374 = vmatprep.subr.bf16.mxu0 %v6842_v16  ;;  %9026 = vst [vmem:[#allocation28_spill] sm:$0xff] %v7863_v23 }
 0x177   : > { %6253 = vmatmul.mubr.bf16.gmra.mxu1 %v1796_v20  ;;  %v6852_v20 = vld [vmem:[%s8969_s3 + $0x308] sm:$0xff]  }
 0x178   : > { %6256 = vmatprep.mubr.bf16.mxu1 %v1798_v19  ;;  %6293 = vmatpush3.bf16.msra.mxu1 %v6841_v30  ;;  %v6849_v30 = vld [vmem:[%s8969_s3 + $0x248] sm:$0xff]   ;;  %v6854_v19 = vld [vmem:[%s8969_s3 + $0x300] sm:$0xff]  }
 0x179   : > { %6375 = vmatpush3.bf16.msra.mxu0 %v6842_v16  ;;  %6294 = vmatprep.subr.bf16.mxu1 %v6843_v44  ;;  %v6850_v16 = vld [vmem:[%s8969_s3 + $0x310] sm:$0xff]  }
 0x17a   : > { %6376 = vmatprep.subr.bf16.mxu0 %v6844_v26 }
 0x17c   : > { %6337 = vmatmul.mubr.bf16.gmra.mxu0 %v7836_v60  ;;  %6295 = vmatpush3.bf16.msra.mxu1 %v6843_v44  ;;  %v2686_v44 = vsel %vm2683_vm15, %v2684_v5, %v2685_v10  ;;  %v7900_v5 = vor.u32 %v4270_v3, %v7758_v41  ;;  %v2693_v3 = vrot.slane %v7327_v29, 5 }
 0x17d   : > { %6340 = vmatprep.mubr.bf16.mxu0 %v7840_v31  ;;  %6377 = vmatpush3.bf16.msra.mxu0 %v6844_v26  ;;  %v6853_v26 = vld [vmem:[%s8969_s3 + $0x2f8] sm:$0xff]  }
 0x17e   : > { %6296 = vmatprep.subr.bf16.mxu1 %v6845_v15  ;;  %6378 = vmatprep.subr.bf16.mxu0 %v6846_v39  ;;  %9027 = vst [vmem:[#allocation29_spill] sm:$0xff] %v7900_v5 }
 0x17f   : > { %6257 = vmatmul.mubr.bf16.gmra.mxu1 %v1800_v18  ;;  %v2688_v18 = vsel %vm2683_vm15, %v2685_v10, %v2687_v14  ;;  %v6860_v10 = vld [vmem:[%s8969_s3 + $0x3a8] sm:$0xff]  }
 0x180   : > { %6297 = vmatpush3.bf16.msra.mxu1 %v6845_v15  ;;  %6304 = vmatprep.mubr.bf16.mxu1 %v7116_v49  ;;  %v6851_v49 = vld [vmem:[%s8969_s3 + $0x240] sm:$0xff]   ;;  %v2689_v15 = vrot.slane %v7196_v43, 5 }
 0x181   : > { %6379 = vmatpush3.bf16.msra.mxu0 %v6846_v39  ;;  %6298 = vmatprep.subr.bf16.mxu1 %v6847_v0  ;;  %v6857_v39 = vld [vmem:[%s8969_s3 + $0x2e8] sm:$0xff]  }
 0x182   : > { %6380 = vmatprep.subr.bf16.mxu0 %v6848_v40 }
 0x184   : > { %6341 = vmatmul.mubr.bf16.gmra.mxu0 %v7863_v23  ;;  %6299 = vmatpush3.bf16.msra.mxu1 %v6847_v0  ;;  %v6858_v0 = vld [vmem:[%s8969_s3 + $0x3b0] sm:$0xff]  }
 0x185   : > { %6381 = vmatpush3.bf16.msra.mxu0 %v6848_v40  ;;  %6388 = vmatprep.mubr.bf16.mxu0 %v2686_v44  ;;  %v2690_v40 = vsel %vm2683_vm15, %v2687_v14, %v2689_v15  ;;  %v6861_v44 = vld [vmem:[%s8969_s3 + $0x2d8] sm:$0xff]   ;;  %v6865_v14 = vld [vmem:[%s8969_s3 + $0x2c8] sm:$0xff]  }
 0x186   : > { %6300 = vmatprep.subr.bf16.mxu1 %v6849_v30  ;;  %6382 = vmatprep.subr.bf16.mxu0 %v6850_v16 }
 0x188   : > { %6301 = vmatpush3.bf16.msra.mxu1 %v6849_v30  ;;  %v6859_v30 = vld [vmem:[%s8969_s3 + $0x2e0] sm:$0xff]  }
 0x189   : > { %6383 = vmatpush3.bf16.msra.mxu0 %v6850_v16  ;;  %6302 = vmatprep.subr.bf16.mxu1 %v6851_v49  ;;  %v2691_v16 = vrot.slane %v7241_v7, 5 }
 0x18a   : > { %6384 = vmatprep.subr.bf16.mxu0 %v6852_v20 }
 0x18c   : > { %6303 = vmatpush3.bf16.msra.mxu1 %v6851_v49  ;;  %v6862_v49 = vld [vmem:[%s8969_s3 + $0x3a0] sm:$0xff]  }
 0x18d   : > { %6385 = vmatpush3.bf16.msra.mxu0 %v6852_v20  ;;  %6344 = vmatprep.subr.bf16.mxu1 %v6853_v26  ;;  %v2692_v20 = vsel %vm2683_vm15, %v2689_v15, %v2691_v16  ;;  %v6866_v15 = vld [vmem:[%s8969_s3 + $0x390] sm:$0xff]  }
 0x18e   : > { %6386 = vmatprep.subr.bf16.mxu0 %v6854_v19 }
 0x18f   : > { %6305 = vmatmul.mubr.bf16.vlgmr.msra.gmra.mxu1 %v7130_v63 }
 0x190   : > { %6308 = vmatprep.mubr.bf16.mxu1 %v7165_v21  ;;  %6345 = vmatpush3.bf16.msra.mxu1 %v6853_v26  ;;  %v2694_v26 = vsel %vm2683_vm15, %v2691_v16, %v2693_v3 }
 0x191   : > { %6387 = vmatpush3.bf16.msra.mxu0 %v6854_v19  ;;  %6346 = vmatprep.subr.bf16.mxu1 %v6855_v24  ;;  %v6863_v19 = vld [vmem:[%s8969_s3 + $0x2d0] sm:$0xff]  }
 0x192   : > { %6428 = vmatprep.subr.bf16.mxu0 %v6856_v54 }
 0x194   : > { %6389 = vmatmul.mubr.bf16.vlgmr.msra.gmra.mxu0 %v2688_v18  ;;  %6347 = vmatpush3.bf16.msra.mxu1 %v6855_v24  ;;  %v6864_v24 = vld [vmem:[%s8969_s3 + $0x398] sm:$0xff]  }
 0x195   : > { %6392 = vmatprep.mubr.bf16.mxu0 %v2690_v40  ;;  %6429 = vmatpush3.bf16.msra.mxu0 %v6856_v54  ;;  %v2695_v54 = vrot.slane %v7356_v59, 5  ;;  %v6869_v18 = vld [vmem:[%s8969_s3 + $0x378] sm:$0xff]  }
 0x196   : > { %6348 = vmatprep.subr.bf16.mxu1 %v6857_v39  ;;  %6430 = vmatprep.subr.bf16.mxu0 %v6858_v0 }
 0x197   : > { %6309 = vmatmul.mubr.bf16.gmra.mxu1 %v7196_v43 }
 0x198   : > { %6312 = vmatprep.mubr.bf16.mxu1 %v7241_v7  ;;  %6349 = vmatpush3.bf16.msra.mxu1 %v6857_v39  ;;  %v2696_v39 = vsel %vm2683_vm15, %v2693_v3, %v2695_v54  ;;  %v6873_v3 = vld [vmem:[%s8969_s3 + $0x368] sm:$0xff]  }
 0x199   : > { %6431 = vmatpush3.bf16.msra.mxu0 %v6858_v0  ;;  %6350 = vmatprep.subr.bf16.mxu1 %v6859_v30  ;;  %v6868_v0 = vld [vmem:[%s8969_s3 + $0x388] sm:$0xff]  }
 0x19a   : > { %6432 = vmatprep.subr.bf16.mxu0 %v6860_v10 }
 0x19c   : > { %6393 = vmatmul.mubr.bf16.gmra.mxu0 %v2692_v20  ;;  %6351 = vmatpush3.bf16.msra.mxu1 %v6859_v30  ;;  %v6871_v30 = vld [vmem:[%s8969_s3 + $0x370] sm:$0xff]  }
 0x19d   : > { %6396 = vmatprep.mubr.bf16.mxu0 %v2694_v26  ;;  %6433 = vmatpush3.bf16.msra.mxu0 %v6860_v10  ;;  %v6872_v10 = vld [vmem:[%s8969_s3 + $0x438] sm:$0xff]   ;;  %v2513_v26 = vrot.slane %v7582_v51, 4 }
 0x19e   : > { %6352 = vmatprep.subr.bf16.mxu1 %v6861_v44  ;;  %6434 = vmatprep.subr.bf16.mxu0 %v6862_v49 }
 0x19f   : > { %6313 = vmatmul.mubr.bf16.gmra.mxu1 %v7327_v29 }
 0x1a0   : > { %6353 = vmatpush3.bf16.msra.mxu1 %v6861_v44  ;;  %6360 = vmatprep.mubr.bf16.mxu1 %v7381_v6  ;;  %v6867_v6 = vld [vmem:[%s8969_s3 + $0x2c0] sm:$0xff]   ;;  %v6874_v44 = vld [vmem:[%s8969_s3 + $0x430] sm:$0xff]  }
 0x1a1   : > { %6435 = vmatpush3.bf16.msra.mxu0 %v6862_v49  ;;  %6354 = vmatprep.subr.bf16.mxu1 %v6863_v19 }
 0x1a2   : > { %6436 = vmatprep.subr.bf16.mxu0 %v6864_v24 }
 0x1a4   : > { %6397 = vmatmul.mubr.bf16.gmra.mxu0 %v2696_v39  ;;  %6355 = vmatpush3.bf16.msra.mxu1 %v6863_v19  ;;  %v2516_v19 = vrot.slane %v7576_v58, 5  ;;  %v6879_v39 = vld [vmem:[%s8969_s3 + $0x350] sm:$0xff]  }
 0x1a5   : > { %6437 = vmatpush3.bf16.msra.mxu0 %v6864_v24  ;;  %6444 = vmatprep.mubr.bf16.mxu0 %v7679_v28  ;;  %v6870_v28 = vld [vmem:[%s8969_s3 + $0x380] sm:$0xff]  }
 0x1a6   : > { %6356 = vmatprep.subr.bf16.mxu1 %v6865_v14  ;;  %6438 = vmatprep.subr.bf16.mxu0 %v6866_v15  ;;  %v2517_v54 = vor.u32 %v2516_v19, %v2513_v26  ;;  %v6886_v26 = vld [vmem:[%s8969_s3 + $0x400] sm:$0xff]  }
 0x1a7   : > { %v7949_v40 = vpop.f32.mrf.mxu1  ;;  %v8051_v19 = vld [vmem:[%s8970_s4] ss:$0 sm:$0xff] }
 0x1a8   : > { %6357 = vmatpush3.bf16.msra.mxu1 %v6865_v14  ;;  %v6877_v14 = vld [vmem:[%s8969_s3 + $0x358] sm:$0xff]  }
 0x1a9   : > { %6439 = vmatpush3.bf16.msra.mxu0 %v6866_v15  ;;  %6358 = vmatprep.subr.bf16.mxu1 %v6867_v6  ;;  %v7957_v16 = vpop.f32.mrf.mxu1  ;;  %v6878_v15 = vld [vmem:[%s8969_s3 + $0x420] sm:$0xff]  }
 0x1aa   : > { %6440 = vmatprep.subr.bf16.mxu0 %v6868_v0 }
 0x1ab   : > { %v7967_v49 = vpop.f32.mrf.mxu1 }
 0x1ac   : > { %6359 = vmatpush3.bf16.msra.mxu1 %v6867_v6  ;;  %v2518_v6 = vsel %vm2486_vm8, %v7416_v32, %v2517_v54  ;;  %v6881_v32 = vld [vmem:[%s8969_s3 + $0x348] sm:$0xff]   ;;  %v627_v48 = vadd.f32 %v7967_v49, %v8051_v19  ;;  %v3400_v49 = vrot.slane %v7576_v58, 3 }
 0x1ad   : > { %6441 = vmatpush3.bf16.msra.mxu0 %v6868_v0  ;;  %6400 = vmatprep.subr.bf16.mxu1 %v6869_v18  ;;  %v7981_v24 = vpop.f32.mrf.mxu1  ;;  %v6880_v0 = vld [vmem:[%s8969_s3 + $0x418] sm:$0xff]  }
 0x1ae   : > { %6442 = vmatprep.subr.bf16.mxu0 %v6870_v28 }
 0x1af   : > { %6361 = vmatmul.mubr.bf16.vlgmr.msra.gmra.mxu1 %v7401_v33  ;;  %v6875_v33 = vld [vmem:[%s8969_s3 + $0x360] sm:$0xff]  }
 0x1b0   : > { %6364 = vmatprep.mubr.bf16.mxu1 %v7414_v22  ;;  %6401 = vmatpush3.bf16.msra.mxu1 %v6869_v18  ;;  %v6876_v22 = vld [vmem:[%s8969_s3 + $0x428] sm:$0xff]  }
 0x1b1   : > { %6443 = vmatpush3.bf16.msra.mxu0 %v6870_v28  ;;  %6402 = vmatprep.subr.bf16.mxu1 %v6871_v30  ;;  %v6882_v28 = vld [vmem:[%s8969_s3 + $0x410] sm:$0xff]  }
 0x1b2   : > { %6484 = vmatprep.subr.bf16.mxu0 %v6872_v10  ;;  %v7969_v20 = vpop.f32.mrf.mxu0 }
 0x1b4   : > { %6445 = vmatmul.mubr.bf16.vlgmr.msra.gmra.mxu0 %v7686_v45  ;;  %6403 = vmatpush3.bf16.msra.mxu1 %v6871_v30  ;;  %v7984_v45 = vpop.f32.mrf.mxu0 }
 0x1b5   : > { %6448 = vmatprep.mubr.bf16.mxu0 %v7704_v47  ;;  %6485 = vmatpush3.bf16.msra.mxu0 %v6872_v10  ;;  %v6883_v10 = vld [vmem:[%s8969_s3 + $0x340] sm:$0xff]  }
 0x1b6   : > { %6404 = vmatprep.subr.bf16.mxu1 %v6873_v3  ;;  %6486 = vmatprep.subr.bf16.mxu0 %v6874_v44 }
 0x1b7   : > { %6365 = vmatmul.mubr.bf16.gmra.mxu1 %v7428_v35  ;;  %v7987_v47 = vpop.f32.mrf.mxu1  ;;  %v7995_v35 = vpop.f32.mrf.mxu0 }
 0x1b8   : > { %6368 = vmatprep.mubr.bf16.mxu1 %v7435_v34  ;;  %6405 = vmatpush3.bf16.msra.mxu1 %v6873_v3 }
 0x1b9   : > { %6487 = vmatpush3.bf16.msra.mxu0 %v6874_v44  ;;  %6406 = vmatprep.subr.bf16.mxu1 %v6875_v33  ;;  %v7998_v34 = vpop.f32.mrf.mxu1 }
 0x1ba   : > { %6488 = vmatprep.subr.bf16.mxu0 %v6876_v22 }
 0x1bc   : > { %6449 = vmatmul.mubr.bf16.gmra.mxu0 %v7711_v46  ;;  %6407 = vmatpush3.bf16.msra.mxu1 %v6875_v33  ;;  %v8009_v46 = vpop.f32.mrf.mxu0 }
 0x1bd   : > { %6452 = vmatprep.mubr.bf16.mxu0 %v7734_v12  ;;  %6489 = vmatpush3.bf16.msra.mxu0 %v6876_v22  ;;  %v8012_v12 = vpop.f32.mrf.mxu1 }
 0x1be   : > { %6408 = vmatprep.subr.bf16.mxu1 %v6877_v14  ;;  %6490 = vmatprep.subr.bf16.mxu0 %v6878_v15 }
 0x1bf   : > { %6369 = vmatmul.mubr.bf16.gmra.mxu1 %v2518_v6  ;;  %v6887_v6 = vld [vmem:[%s8969_s3 + $0x3f0] sm:$0xff]  }
 0x1c0   : > { %6409 = vmatpush3.bf16.msra.mxu1 %v6877_v14  ;;  %6416 = vmatprep.mubr.bf16.mxu1 %v7462_v27  ;;  %v8025_v27 = vpop.f32.mrf.mxu1 }
 0x1c1   : > { %6491 = vmatpush3.bf16.msra.mxu0 %v6878_v15  ;;  %6410 = vmatprep.subr.bf16.mxu1 %v6879_v39 }
 0x1c2   : > { %v8014_v18 = vpop.f32.mrf.mxu0  ;;  %6492 = vmatprep.subr.bf16.mxu0 %v6880_v0 }
 0x1c4   : > { %6453 = vmatmul.mubr.bf16.gmra.mxu0 %v7446_v42  ;;  %6411 = vmatpush3.bf16.msra.mxu1 %v6879_v39  ;;  %v8023_v30 = vpop.f32.mrf.mxu0  ;;  %v6884_v42 = vld [vmem:[%s8969_s3 + $0x408] sm:$0xff]  }
 0x1c5   : > { %6493 = vmatpush3.bf16.msra.mxu0 %v6880_v0  ;;  %6500 = vmatprep.mubr.bf16.mxu0 %v7472_v9  ;;  %v6885_v9 = vld [vmem:[%s8969_s3 + $0x3f8] sm:$0xff]   ;;  %v626_v0 = vadd.f32 %v7949_v40, %v8051_v19 }
 0x1c6   : > { %v8031_v3 = vpop.f32.mrf.mxu0  ;;  %6412 = vmatprep.subr.bf16.mxu1 %v6881_v32  ;;  %6494 = vmatprep.subr.bf16.mxu0 %v6882_v28 }
 0x1c7   : > { %v8036_v44 = vpop.f32.mrf.mxu1 }
 0x1c8   : > { %6413 = vmatpush3.bf16.msra.mxu1 %v6881_v32  ;;  %v8038_v33 = vpop.f32.mrf.mxu0  ;;  %v6888_v32 = vld [vmem:[%s8969_s3 + $0x4b8] sm:$0xff]  }
 0x1c9   : > { %6495 = vmatpush3.bf16.msra.mxu0 %v6882_v28  ;;  %v8040_v22 = vpop.f32.mrf.mxu1  ;;  %6414 = vmatprep.subr.bf16.mxu1 %v6883_v10 }
 0x1ca   : > { %6496 = vmatprep.subr.bf16.mxu0 %v6884_v42 }
 0x1cb   : > { %v8053_v54 = vpop.f32.mrf.mxu1  ;;  %v8055_v14 = vpop.f32.mrf.mxu0 }
 0x1cc   : > { %6415 = vmatpush3.bf16.msra.mxu1 %v6883_v10 }
 0x1cd   : > { %6497 = vmatpush3.bf16.msra.mxu0 %v6884_v42  ;;  %v8057_v15 = vpop.f32.mrf.mxu1  ;;  %v8059_v39 = vpop.f32.mrf.mxu0  ;;  %6456 = vmatprep.subr.bf16.mxu1 %v6885_v9  ;;  %v624_v42 = vadd.f32 %v8051_v19, %v7957_v16  ;;  %v6890_v16 = vld [vmem:[%s8969_s3 + $0x4b0] sm:$0xff]  }
 0x1ce   : > { %6498 = vmatprep.subr.bf16.mxu0 %v6886_v26 }
 0x1cf   : > { %6417 = vmatmul.mubr.bf16.vlgmr.msra.gmra.mxu1 %v7486_v13  ;;  %v6082_v28 = vpop.f32.mrf.mxu1  ;;  %v8070_v10 = vpop.f32.mrf.mxu0  ;;  %v6889_v13 = vld [vmem:[%s8969_s3 + $0x3e8] sm:$0xff]  }
 0x1d0   : > { %v838_v8 = vadd.f32 %v6082_v28, %v626_v0  ;;  %6420 = vmatprep.mubr.bf16.mxu1 %v9028_v2  ;;  %6457 = vmatpush3.bf16.msra.mxu1 %v6885_v9  ;;  %v9029_v0 = vld [vmem:[#allocation12_spill] sm:$0xff] }
 0x1d1   : > { %6499 = vmatpush3.bf16.msra.mxu0 %v6886_v26  ;;  %v789_v38 = vpop.f32.mrf.mxu1  ;;  %v8075_v40 = vpop.f32.mrf.mxu0  ;;  %6458 = vmatprep.subr.bf16.mxu1 %v6887_v6 }
 0x1d2   : > { %v836_v53 = vadd.f32 %v789_v38, %v624_v42  ;;  %6540 = vmatprep.subr.bf16.mxu0 %v6888_v32  ;;  %v8086_v2 = vadd.f32 %v7969_v20, %v838_v8  ;;  %v3399_v38 = vrot.slane %v7582_v51, 2  ;;  %v6891_v20 = vld [vmem:[%s8969_s3 + $0x3e0] sm:$0xff]  }
 0x1d3   : > { %v6083_v9 = vpop.f32.mrf.mxu1  ;;  %v8088_v26 = vpop.f32.mrf.mxu0 }
 0x1d4   : > { %6501 = vmatmul.mubr.bf16.vlgmr.msra.gmra.mxu0 %v9029_v0  ;;  %v839_v28 = vadd.f32 %v6083_v9, %v627_v48  ;;  %6459 = vmatpush3.bf16.msra.mxu1 %v6887_v6  ;;  %v8094_v42 = vadd.f32 %v7984_v45, %v836_v53  ;;  %v630_v48 = vadd.f32 %v7987_v47, %v8051_v19  ;;  %v6892_v53 = vld [vmem:[%s8969_s3 + $0x4a8] sm:$0xff]   ;;  %v2886_v45 = vrot.slane %v7576_v58, 6 }
 0x1d5   : > { %6504 = vmatprep.mubr.bf16.mxu0 %v9030_v52  ;;  %6541 = vmatpush3.bf16.msra.mxu0 %v6888_v32  ;;  %v8097_v57 = vpop.f32.mrf.mxu1  ;;  %v8099_v8 = vpop.f32.mrf.mxu0  ;;  %v2885_v52 = vrot.slane %v7582_v51, 5  ;;  %v9031_v32 = vld [vmem:[#allocation15_spill] sm:$0xff]  ;;  %v628_v47 = vadd.f32 %v8051_v19, %v7998_v34  ;;  %v3401_v37 = vor.u32 %v3400_v49, %v3399_v38  ;;  %v6893_v34 = vld [vmem:[%s8969_s3 + $0x3d8] sm:$0xff]  }
 0x1d6   : > { %6460 = vmatprep.subr.bf16.mxu1 %v6889_v13  ;;  %6542 = vmatprep.subr.bf16.mxu0 %v6890_v16  ;;  %v8112_v6 = vadd.f32 %v7995_v35, %v839_v28  ;;  %v631_v35 = vadd.f32 %v8012_v12, %v8051_v19  ;;  %v9033_v49 = vld [vmem:[#allocation18_spill] sm:$0xff] }
 0x1d7   : > { %6421 = vmatmul.mubr.bf16.gmra.mxu1 %v9031_v32  ;;  %v6086_v9 = vpop.f32.mrf.mxu1  ;;  %v8115_v0 = vpop.f32.mrf.mxu0  ;;  %v2887_v32 = vor.u32 %v2886_v45, %v2885_v52 }
 0x1d8   : > { %v842_v5 = vadd.f32 %v6086_v9, %v630_v48  ;;  %6424 = vmatprep.mubr.bf16.mxu1 %v9032_v62  ;;  %6461 = vmatpush3.bf16.msra.mxu1 %v6889_v13  ;;  %v6894_v62 = vld [vmem:[%s8969_s3 + $0x4a0] sm:$0xff]  }
 0x1d9   : > { %6543 = vmatpush3.bf16.msra.mxu0 %v6890_v16  ;;  %v805_v36 = vpop.f32.mrf.mxu1  ;;  %v8120_v23 = vpop.f32.mrf.mxu0  ;;  %6462 = vmatprep.subr.bf16.mxu1 %v6891_v20 }
 0x1da   : > { %v840_v28 = vadd.f32 %v805_v36, %v628_v47  ;;  %6544 = vmatprep.subr.bf16.mxu0 %v6892_v53  ;;  %v8131_v13 = vadd.f32 %v8014_v18, %v842_v5  ;;  %v9034_v36 = vld [vmem:[#allocation16_spill] sm:$0xff]  ;;  %v6895_v5 = vld [vmem:[%s8969_s3 + $0x3d0] sm:$0xff]   ;;  %v634_v18 = vadd.f32 %v8036_v44, %v8051_v19  ;;  %v632_v44 = vadd.f32 %v8051_v19, %v8040_v22 }
 0x1db   : > { %v6087_v16 = vpop.f32.mrf.mxu1  ;;  %v8133_v38 = vpop.f32.mrf.mxu0  ;;  %v3402_v48 = vsel %vm3379_vm11, %v9034_v36, %v3401_v37  ;;  %v6898_v22 = vld [vmem:[%s8969_s3 + $0x490] sm:$0xff]  }
 0x1dc   : > { %6505 = vmatmul.mubr.bf16.gmra.mxu0 %v9033_v49  ;;  %v843_v12 = vadd.f32 %v6087_v16, %v631_v35  ;;  %6463 = vmatpush3.bf16.msra.mxu1 %v6891_v20  ;;  %v8139_v52 = vadd.f32 %v8023_v30, %v840_v28  ;;  %v9035_v20 = vld [vmem:[#allocation14_spill] sm:$0xff]  ;;  %v3406_v16 = vrot.slane %v7754_v11, 3 }
 0x1dd   : > { %6508 = vmatprep.mubr.bf16.mxu0 %v3402_v48  ;;  %6545 = vmatpush3.bf16.msra.mxu0 %v6892_v53  ;;  %v8141_v45 = vpop.f32.mrf.mxu1  ;;  %v8143_v9 = vpop.f32.mrf.mxu0  ;;  %v2888_v47 = vsel %vm2861_vm10, %v9035_v20, %v2887_v32  ;;  %v6896_v30 = vld [vmem:[%s8969_s3 + $0x498] sm:$0xff]   ;;  %v9036_v32 = vld [vmem:[#allocation5_spill] sm:$0xff]  ;;  %v6897_v20 = vld [vmem:[%s8969_s3 + $0x3c8] sm:$0xff]  }
 0x1de   : > { %6464 = vmatprep.subr.bf16.mxu1 %v6893_v34  ;;  %6546 = vmatprep.subr.bf16.mxu0 %v6894_v62  ;;  %v8156_v53 = vadd.f32 %v8031_v3, %v843_v12  ;;  %v635_v3 = vadd.f32 %v8053_v54, %v8051_v19 }
 0x1df   : > { %6425 = vmatmul.mubr.bf16.gmra.mxu1 %v2888_v47  ;;  %v6090_v35 = vpop.f32.mrf.mxu1  ;;  %v8158_v28 = vpop.f32.mrf.mxu0 }
 0x1e0   : > { %v846_v49 = vadd.f32 %v6090_v35, %v634_v18  ;;  %6465 = vmatpush3.bf16.msra.mxu1 %v6893_v34  ;;  %6472 = vmatprep.mubr.bf16.mxu1 %v9036_v32  ;;  %v6899_v35 = vld [vmem:[%s8969_s3 + $0x3c0] sm:$0xff]  }
 0x1e1   : > { %6547 = vmatpush3.bf16.msra.mxu0 %v6894_v62  ;;  %v821_v36 = vpop.f32.mrf.mxu1  ;;  %6466 = vmatprep.subr.bf16.mxu1 %v6895_v5  ;;  %v8166_v48 = vpop.f32.mrf.mxu0  ;;  %v3407_v62 = vsel %vm3379_vm11, %v3401_v37, %v3406_v16  ;;  %v6900_v37 = vld [vmem:[%s8969_s3 + $0x488] sm:$0xff]  }
 0x1e2   : > { %v844_v12 = vadd.f32 %v821_v36, %v632_v44  ;;  %6548 = vmatprep.subr.bf16.mxu0 %v6896_v30  ;;  %v8175_v34 = vadd.f32 %v8055_v14, %v846_v49  ;;  %v6904_v49 = vld [vmem:[%s8969_s3 + $0x538] sm:$0xff]   ;;  %v9037_v36 = vld [vmem:[#allocation9_spill] sm:$0xff] }
 0x1e3   : > { %v6091_v18 = vpop.f32.mrf.mxu1  ;;  %v8185_v44 = vpop.f32.mrf.mxu0 }
 0x1e4   : > { %6509 = vmatmul.mubr.bf16.gmra.mxu0 %v3407_v62  ;;  %v847_v54 = vadd.f32 %v6091_v18, %v635_v3  ;;  %6467 = vmatpush3.bf16.msra.mxu1 %v6895_v5  ;;  %v8179_v47 = vadd.f32 %v8059_v39, %v844_v12  ;;  %v6902_v5 = vld [vmem:[%s8969_s3 + $0x480] sm:$0xff]   ;;  %v9038_v12 = vld [vmem:[#allocation10_spill] sm:$0xff]  ;;  %v3214_v18 = vrot.slane %v7327_v29, 2 }
 0x1e5   : > { %6549 = vmatpush3.bf16.msra.mxu0 %v6896_v30  ;;  %6556 = vmatprep.mubr.bf16.mxu0 %v7556_v17  ;;  %v6901_v17 = vld [vmem:[%s8969_s3 + $0x478] sm:$0xff]   ;;  %v8196_v39 = vpop.f32.mrf.mxu0  ;;  %v8201_v30 = vpop.f32.mrf.mxu1 }
 0x1e6   : > { %6468 = vmatprep.subr.bf16.mxu1 %v6897_v20  ;;  %6550 = vmatprep.subr.bf16.mxu0 %v6898_v22  ;;  %v8191_v14 = vadd.f32 %v8070_v10, %v847_v54  ;;  %v6903_v10 = vld [vmem:[%s8969_s3 + $0x470] sm:$0xff]   ;;  %v6905_v54 = vld [vmem:[%s8969_s3 + $0x468] sm:$0xff]  }
 0x1e7   : > { %v8206_v16 = vpop.f32.mrf.mxu0 }
 0x1e8   : > { %6469 = vmatpush3.bf16.msra.mxu1 %v6897_v20 }
 0x1e9   : > { %6551 = vmatpush3.bf16.msra.mxu0 %v6898_v22  ;;  %6470 = vmatprep.subr.bf16.mxu1 %v6899_v35  ;;  %v8214_v22 = vpop.f32.mrf.mxu0 }
 0x1ea   : > { %6552 = vmatprep.subr.bf16.mxu0 %v6900_v37 }
 0x1ec   : > { %6471 = vmatpush3.bf16.msra.mxu1 %v6899_v35 }
 0x1ed   : > { %6553 = vmatpush3.bf16.msra.mxu0 %v6900_v37  ;;  %6512 = vmatprep.subr.bf16.mxu1 %v6901_v17 }
 0x1ee   : > { %6554 = vmatprep.subr.bf16.mxu0 %v6902_v5 }
 0x1ef   : > { %v6138_v32 = vpop.f32.mrf.mxu1  ;;  %6473 = vmatmul.mubr.bf16.vlgmr.msra.gmra.mxu1 %v9037_v36 }
 0x1f0   : > { %v1208_v3 = vadd.f32 %v6138_v32, %v8086_v2  ;;  %6476 = vmatprep.mubr.bf16.mxu1 %v9038_v12  ;;  %6513 = vmatpush3.bf16.msra.mxu1 %v6901_v17  ;;  %v6906_v2 = vld [vmem:[%s8969_s3 + $0x530] sm:$0xff]   ;;  %v8228_v17 = vrot.slane %v7356_v59, 2  ;;  %v3771_v32 = vrot.slane %v7582_v51, 3 }
 0x1f1   : > { %6555 = vmatpush3.bf16.msra.mxu0 %v6902_v5  ;;  %v1159_v20 = vpop.f32.mrf.mxu1  ;;  %6514 = vmatprep.subr.bf16.mxu1 %v6903_v10 }
 0x1f2   : > { %v1206_v62 = vadd.f32 %v1159_v20, %v8094_v42  ;;  %6596 = vmatprep.subr.bf16.mxu0 %v6904_v49  ;;  %v8225_v35 = vadd.f32 %v8088_v26, %v1208_v3  ;;  %v3772_v20 = vrot.slane %v7576_v58, 4  ;;  %v6908_v58 = vld [vmem:[%s8969_s3 + $0x528] sm:$0xff]  }
 0x1f3   : > { %v6139_v37 = vpop.f32.mrf.mxu1 }
 0x1f4   : > { %v1209_v42 = vadd.f32 %v6139_v37, %v8112_v6  ;;  %v8231_v5 = vpop.f32.mrf.mxu0  ;;  %6557 = vmatmul.mubr.bf16.vlgmr.msra.gmra.mxu0 %v7561_v25  ;;  %6515 = vmatpush3.bf16.msra.mxu1 %v6903_v10  ;;  %v8237_v12 = vadd.f32 %v8099_v8, %v1206_v62  ;;  %v6907_v6 = vld [vmem:[%s8969_s3 + $0x460] sm:$0xff]   ;;  %v8260_v8 = vsel %vm1235_vm5, %v3214_v18, %v8228_v17 }
 0x1f5   : > { %6560 = vmatprep.mubr.bf16.mxu0 %v7565_v50  ;;  %6597 = vmatpush3.bf16.msra.mxu0 %v6904_v49  ;;  %v8240_v26 = vpop.f32.mrf.mxu1  ;;  %v9039_v25 = vld [vmem:[#allocation7_spill] sm:$0xff]  ;;  %9040 = vst [vmem:[#allocation11_spill] sm:$0xff] %v8260_v8  ;;  %v3773_v37 = vor.u32 %v3772_v20, %v3771_v32  ;;  %v3777_v32 = vrot.slane %v7758_v41, 3  ;;  %v6911_v41 = vld [vmem:[%s8969_s3 + $0x450] sm:$0xff]  }
 0x1f6   : > { %v8245_v3 = vpop.f32.mrf.mxu0  ;;  %v8249_v10 = vsel %vm1235_vm5, %v9039_v25, %v3214_v18  ;;  %6516 = vmatprep.subr.bf16.mxu1 %v6905_v54  ;;  %6598 = vmatprep.subr.bf16.mxu0 %v6906_v2  ;;  %v8255_v50 = vadd.f32 %v8115_v0, %v1209_v42  ;;  %v6909_v18 = vld [vmem:[%s8969_s3 + $0x458] sm:$0xff]  }
 0x1f7   : > { %v6142_v51 = vpop.f32.mrf.mxu1  ;;  %6477 = vmatmul.mubr.bf16.gmra.mxu1 %v8249_v10 }
 0x1f8   : > { %v1212_v49 = vadd.f32 %v6142_v51, %v8131_v13  ;;  %v8263_v62 = vpop.f32.mrf.mxu0  ;;  %6480 = vmatprep.mubr.bf16.mxu1 %v8260_v8  ;;  %6517 = vmatpush3.bf16.msra.mxu1 %v6905_v54  ;;  %v6910_v13 = vld [vmem:[%s8969_s3 + $0x520] sm:$0xff]   ;;  %v3774_v8 = vsel %vm3751_vm12, %v7567_v55, %v3773_v37  ;;  %v6912_v55 = vld [vmem:[%s8969_s3 + $0x518] sm:$0xff]  }
 0x1f9   : > { %6599 = vmatpush3.bf16.msra.mxu0 %v6906_v2  ;;  %v1175_v25 = vpop.f32.mrf.mxu1  ;;  %6518 = vmatprep.subr.bf16.mxu1 %v6907_v6  ;;  %v3575_v2 = vrot.slane %v7165_v21, 3 }
 0x1fa   : > { %v1210_v0 = vadd.f32 %v1175_v25, %v8139_v52  ;;  %v8267_v42 = vpop.f32.mrf.mxu0  ;;  %6600 = vmatprep.subr.bf16.mxu0 %v6908_v58  ;;  %v8276_v51 = vadd.f32 %v8133_v38, %v1212_v49  ;;  %v3778_v52 = vrot.slane %v7754_v11, 4  ;;  %v3574_v11 = vrot.slane %v7130_v63, 3 }
 0x1fb   : > { %v6143_v54 = vpop.f32.mrf.mxu1 }
 0x1fc   : > { %v1213_v20 = vadd.f32 %v6143_v54, %v8156_v53  ;;  %v8282_v25 = vpop.f32.mrf.mxu0  ;;  %6561 = vmatmul.mubr.bf16.gmra.mxu0 %v7586_v56  ;;  %6519 = vmatpush3.bf16.msra.mxu1 %v6907_v6  ;;  %v8288_v38 = vadd.f32 %v8143_v9, %v1210_v0  ;;  %v3576_v63 = vsel %vm3573_vm0, %v3574_v11, %v3575_v2  ;;  %v6915_v11 = vld [vmem:[%s8969_s3 + $0x440] sm:$0xff]  }
 0x1fd   : > { %6564 = vmatprep.mubr.bf16.mxu0 %v3774_v8  ;;  %6601 = vmatpush3.bf16.msra.mxu0 %v6908_v58  ;;  %v8290_v49 = vpop.f32.mrf.mxu1  ;;  %v3779_v6 = vor.u32 %v3778_v52, %v3777_v32 }
 0x1fe   : > { %v8296_v53 = vpop.f32.mrf.mxu0  ;;  %6520 = vmatprep.subr.bf16.mxu1 %v6909_v18  ;;  %6602 = vmatprep.subr.bf16.mxu0 %v6910_v13  ;;  %v8302_v56 = vadd.f32 %v8158_v28, %v1213_v20  ;;  %v6913_v20 = vld [vmem:[%s8969_s3 + $0x448] sm:$0xff]  }
 0x1ff   : > { %v6146_v9 = vpop.f32.mrf.mxu1  ;;  %6481 = vmatmul.mubr.bf16.gmra.mxu1 %v8228_v17 }
 0x200   : > { %v1216_v58 = vadd.f32 %v6146_v9, %v8175_v34  ;;  %v8309_v8 = vpop.f32.mrf.mxu0  ;;  %6521 = vmatpush3.bf16.msra.mxu1 %v6909_v18  ;;  %6528 = vmatprep.mubr.bf16.mxu1 %v3576_v63  ;;  %v6914_v34 = vld [vmem:[%s8969_s3 + $0x510] sm:$0xff]   ;;  %v3579_v63 = vrot.slane %v7241_v7, 3 }
 0x201   : > { %6603 = vmatpush3.bf16.msra.mxu0 %v6910_v13  ;;  %v1191_v0 = vpop.f32.mrf.mxu1  ;;  %6522 = vmatprep.subr.bf16.mxu1 %v6911_v41  ;;  %v3780_v13 = vsel %vm3751_vm12, %v3773_v37, %v3779_v6  ;;  %v6919_v6 = vld [vmem:[%s8969_s3 + $0x4f0] sm:$0xff]  }
 0x202   : > { %v1214_v28 = vadd.f32 %v1191_v0, %v8179_v47  ;;  %v8312_v54 = vpop.f32.mrf.mxu0  ;;  %6604 = vmatprep.subr.bf16.mxu0 %v6912_v55  ;;  %v8321_v32 = vadd.f32 %v8185_v44, %v1216_v58  ;;  %v6916_v44 = vld [vmem:[%s8969_s3 + $0x508] sm:$0xff]  }
 0x203   : > { %v6147_v18 = vpop.f32.mrf.mxu1 }
 0x204   : > { %v1217_v52 = vadd.f32 %v6147_v18, %v8191_v14  ;;  %6565 = vmatmul.mubr.bf16.gmra.mxu0 %v3780_v13  ;;  %6523 = vmatpush3.bf16.msra.mxu1 %v6911_v41  ;;  %v8326_v47 = vadd.f32 %v8196_v39, %v1214_v28  ;;  %v8332_v9 = vpop.f32.mrf.mxu0  ;;  %v6917_v39 = vld [vmem:[%s8969_s3 + $0x4f8] sm:$0xff]   ;;  %v3577_v41 = vrot.slane %v7196_v43, 3 }
 0x205   : > { %6605 = vmatpush3.bf16.msra.mxu0 %v6912_v55  ;;  %6612 = vmatprep.mubr.bf16.mxu0 %v7165_v21  ;;  %v6918_v55 = vld [vmem:[%s8969_s3 + $0x500] sm:$0xff]   ;;  %v6920_v28 = vld [vmem:[%s8969_s3 + $0x5b8] sm:$0xff]  }
 0x206   : > { %6524 = vmatprep.subr.bf16.mxu1 %v6913_v20  ;;  %6606 = vmatprep.subr.bf16.mxu0 %v6914_v34  ;;  %v8338_v14 = vadd.f32 %v8206_v16, %v1217_v52  ;;  %v8343_v37 = vpop.f32.mrf.mxu0  ;;  %v8350_v16 = vpop.f32.mrf.mxu1  ;;  %v3578_v0 = vsel %vm3573_vm0, %v3575_v2, %v3577_v41  ;;  %v3581_v2 = vrot.slane %v7327_v29, 3 }
 0x208   : > { %6525 = vmatpush3.bf16.msra.mxu1 %v6913_v20  ;;  %v8355_v58 = vpop.f32.mrf.mxu0 }
 0x209   : > { %6607 = vmatpush3.bf16.msra.mxu0 %v6914_v34  ;;  %6526 = vmatprep.subr.bf16.mxu1 %v6915_v11  ;;  %v3580_v34 = vsel %vm3573_vm0, %v3577_v41, %v3579_v63  ;;  %v3583_v41 = vrot.slane %v7356_v59, 3 }
 0x20a   : > { %6608 = vmatprep.subr.bf16.mxu0 %v6916_v44  ;;  %v8365_v52 = vpop.f32.mrf.mxu0 }
 0x20c   : > { %6527 = vmatpush3.bf16.msra.mxu1 %v6915_v11  ;;  %v6921_v11 = vld [vmem:[%s8969_s3 + $0x4e8] sm:$0xff]  }
 0x20d   : > { %6609 = vmatpush3.bf16.msra.mxu0 %v6916_v44  ;;  %6568 = vmatprep.subr.bf16.mxu1 %v6917_v39 }
 0x20e   : > { %6610 = vmatprep.subr.bf16.mxu0 %v6918_v55 }
 0x20f   : > { %v6194_v20 = vpop.f32.mrf.mxu1  ;;  %6529 = vmatmul.mubr.bf16.vlgmr.msra.gmra.mxu1 %v3578_v0 }
 0x210   : > { %v1563_v18 = vadd.f32 %v6194_v20, %v8225_v35  ;;  %6532 = vmatprep.mubr.bf16.mxu1 %v3580_v34  ;;  %6569 = vmatpush3.bf16.msra.mxu1 %v6917_v39  ;;  %v6922_v35 = vld [vmem:[%s8969_s3 + $0x5b0] sm:$0xff]  }
 0x211   : > { %6611 = vmatpush3.bf16.msra.mxu0 %v6918_v55  ;;  %v1514_v13 = vpop.f32.mrf.mxu1  ;;  %6570 = vmatprep.subr.bf16.mxu1 %v6919_v6 }
 0x212   : > { %v1561_v21 = vadd.f32 %v1514_v13, %v8237_v12  ;;  %6652 = vmatprep.subr.bf16.mxu0 %v6920_v28  ;;  %v8376_v44 = vadd.f32 %v8231_v5, %v1563_v18  ;;  %v6923_v5 = vld [vmem:[%s8969_s3 + $0x4e0] sm:$0xff]  }
 0x213   : > { %v6195_v39 = vpop.f32.mrf.mxu1 }
 0x214   : > { %v1564_v55 = vadd.f32 %v6195_v39, %v8255_v50  ;;  %v8380_v12 = vpop.f32.mrf.mxu0  ;;  %6613 = vmatmul.mubr.bf16.vlgmr.msra.gmra.mxu0 %v7196_v43  ;;  %6571 = vmatpush3.bf16.msra.mxu1 %v6919_v6  ;;  %v8384_v0 = vadd.f32 %v8245_v3, %v1561_v21  ;;  %v3582_v50 = vsel %vm3573_vm0, %v3579_v63, %v3581_v2  ;;  %v6924_v43 = vld [vmem:[%s8969_s3 + $0x5a8] sm:$0xff]  }
 0x215   : > { %6616 = vmatprep.mubr.bf16.mxu0 %v7241_v7  ;;  %6653 = vmatpush3.bf16.msra.mxu0 %v6920_v28  ;;  %v8387_v20 = vpop.f32.mrf.mxu1  ;;  %v3584_v6 = vsel %vm3573_vm0, %v3581_v2, %v3583_v41  ;;  %v633_v28 = vadd.f32 %v8051_v19, %v8057_v15  ;;  %v3585_v2 = vrot.slane %v7455_v61, 3  ;;  %v6925_v15 = vld [vmem:[%s8969_s3 + $0x4d8] sm:$0xff]  }
 0x216   : > { %v8392_v34 = vpop.f32.mrf.mxu0  ;;  %6572 = vmatprep.subr.bf16.mxu1 %v6921_v11  ;;  %6654 = vmatprep.subr.bf16.mxu0 %v6922_v35  ;;  %v8399_v3 = vadd.f32 %v8263_v62, %v1564_v55 }
 0x217   : > { %v6198_v7 = vpop.f32.mrf.mxu1  ;;  %6533 = vmatmul.mubr.bf16.gmra.mxu1 %v3582_v50  ;;  %v845_v21 = vadd.f32 %v8201_v30, %v633_v28 }
 0x218   : > { %v1567_v18 = vadd.f32 %v6198_v7, %v8276_v51  ;;  %v8405_v13 = vpop.f32.mrf.mxu0  ;;  %6536 = vmatprep.mubr.bf16.mxu1 %v3584_v6  ;;  %6573 = vmatpush3.bf16.msra.mxu1 %v6921_v11  ;;  %v6926_v51 = vld [vmem:[%s8969_s3 + $0x5a0] sm:$0xff]   ;;  %v3586_v6 = vsel %vm3573_vm0, %v3583_v41, %v3585_v2  ;;  %v625_v41 = vadd.f32 %v8051_v19, %v7981_v24 }
 0x219   : > { %6655 = vmatpush3.bf16.msra.mxu0 %v6922_v35  ;;  %v1530_v63 = vpop.f32.mrf.mxu1  ;;  %6574 = vmatprep.subr.bf16.mxu1 %v6923_v5  ;;  %v1027_v7 = vadd.f32 %v8075_v40, %v845_v21 }
 0x21a   : > { %v1565_v62 = vadd.f32 %v1530_v63, %v8288_v38  ;;  %v8409_v39 = vpop.f32.mrf.mxu0  ;;  %6656 = vmatprep.subr.bf16.mxu0 %v6924_v43  ;;  %v8419_v11 = vadd.f32 %v8282_v25, %v1567_v18  ;;  %v6927_v25 = vld [vmem:[%s8969_s3 + $0x4d0] sm:$0xff]   ;;  %v837_v24 = vadd.f32 %v8097_v57, %v625_v41 }
 0x21b   : > { %v6199_v35 = vpop.f32.mrf.mxu1  ;;  %v1215_v28 = vadd.f32 %v8350_v16, %v1027_v7  ;;  %v6930_v16 = vld [vmem:[%s8969_s3 + $0x590] sm:$0xff]   ;;  %v6933_v7 = vld [vmem:[%s8969_s3 + $0x578] sm:$0xff]  }
 0x21c   : > { %v1568_v30 = vadd.f32 %v6199_v35, %v8302_v56  ;;  %v8422_v38 = vpop.f32.mrf.mxu0  ;;  %6617 = vmatmul.mubr.bf16.gmra.mxu0 %v7327_v29  ;;  %6575 = vmatpush3.bf16.msra.mxu1 %v6923_v5  ;;  %v8426_v55 = vadd.f32 %v8296_v53, %v1565_v62  ;;  %v6928_v53 = vld [vmem:[%s8969_s3 + $0x598] sm:$0xff]  }
 0x21d   : > { %6620 = vmatprep.mubr.bf16.mxu0 %v7356_v59  ;;  %6657 = vmatpush3.bf16.msra.mxu0 %v6924_v43  ;;  %v8429_v50 = vpop.f32.mrf.mxu1 }
 0x21e   : > { %v8435_v56 = vpop.f32.mrf.mxu0  ;;  %6576 = vmatprep.subr.bf16.mxu1 %v6925_v15  ;;  %6658 = vmatprep.subr.bf16.mxu0 %v6926_v51  ;;  %v8442_v5 = vadd.f32 %v8309_v8, %v1568_v30 }
 0x21f   : > { %v6202_v43 = vpop.f32.mrf.mxu1  ;;  %6537 = vmatmul.mubr.bf16.gmra.mxu1 %v3586_v6  ;;  %v629_v6 = vadd.f32 %v8051_v19, %v8025_v27 }
 0x220   : > { %v1571_v18 = vadd.f32 %v6202_v43, %v8321_v32  ;;  %v8446_v40 = vpop.f32.mrf.mxu0  ;;  %6577 = vmatpush3.bf16.msra.mxu1 %v6925_v15  ;;  %6584 = vmatprep.mubr.bf16.mxu1 %v7810_v1  ;;  %v6929_v32 = vld [vmem:[%s8969_s3 + $0x4c8] sm:$0xff]  }
 0x221   : > { %6659 = vmatpush3.bf16.msra.mxu0 %v6926_v51  ;;  %v1546_v63 = vpop.f32.mrf.mxu1  ;;  %6578 = vmatprep.subr.bf16.mxu1 %v6927_v25  ;;  %v9041_v51 = vld [vmem:[#allocation2_spill] sm:$0xff] }
 0x222   : > { %v1569_v8 = vadd.f32 %v1546_v63, %v8326_v47  ;;  %v8452_v21 = vpop.f32.mrf.mxu0  ;;  %6660 = vmatprep.subr.bf16.mxu0 %v6928_v53  ;;  %v8461_v1 = vadd.f32 %v8332_v9, %v1571_v18  ;;  %v1391_v47 = vadd.f32 %v8214_v22, %v1215_v28  ;;  %v6931_v9 = vld [vmem:[%s8969_s3 + $0x4c0] sm:$0xff]   ;;  %v6932_v22 = vld [vmem:[%s8969_s3 + $0x588] sm:$0xff]  }
 0x223   : > { %v6203_v62 = vpop.f32.mrf.mxu1 }
 0x224   : > { %v1572_v2 = vadd.f32 %v6203_v62, %v8338_v14  ;;  %6621 = vmatmul.mubr.bf16.gmra.mxu0 %v7455_v61  ;;  %6579 = vmatpush3.bf16.msra.mxu1 %v6927_v25  ;;  %v8468_v15 = vadd.f32 %v8343_v37, %v1569_v8  ;;  %v8474_v57 = vpop.f32.mrf.mxu0  ;;  %v1019_v37 = vadd.f32 %v8009_v46, %v837_v24  ;;  %v6934_v46 = vld [vmem:[%s8969_s3 + $0x580] sm:$0xff]  }
 0x225   : > { %6661 = vmatpush3.bf16.msra.mxu0 %v6928_v53  ;;  %6668 = vmatprep.mubr.bf16.mxu0 %v9041_v51  ;;  %v1549_v35 = vpop.f32.mrf.mxu1 }
 0x226   : > { %v1570_v30 = vadd.f32 %v1549_v35, %v1391_v47  ;;  %6580 = vmatprep.subr.bf16.mxu1 %v6929_v32  ;;  %6662 = vmatprep.subr.bf16.mxu0 %v6930_v16  ;;  %v8480_v14 = vadd.f32 %v8355_v58, %v1572_v2  ;;  %v1207_v53 = vadd.f32 %v8240_v26, %v1019_v37  ;;  %v8492_v43 = vpop.f32.mrf.mxu0  ;;  %v6936_v26 = vld [vmem:[%s8969_s3 + $0x638] sm:$0xff]   ;;  %v6939_v47 = vld [vmem:[%s8969_s3 + $0x560] sm:$0xff]  }
 0x227   : > { %v841_v58 = vadd.f32 %v8141_v45, %v629_v6  ;;  %v4435_v45 = vrot.slane %v7327_v29, 1  ;;  %v6937_v29 = vld [vmem:[%s8969_s3 + $0x568] sm:$0xff]  }
 0x228   : > { %6581 = vmatpush3.bf16.msra.mxu1 %v6929_v32  ;;  %v8484_v25 = vadd.f32 %v8365_v52, %v1570_v30  ;;  %v6935_v52 = vld [vmem:[%s8969_s3 + $0x570] sm:$0xff]   ;;  %v1383_v27 = vadd.f32 %v8120_v23, %v1207_v53  ;;  %v8502_v19 = vpop.f32.mrf.mxu0  ;;  %v4437_v30 = vrot.slane %v7356_v59, 1  ;;  %v9044_v6 = vld [vmem:[#allocation28_spill] sm:$0xff] }
 0x229   : > { %6663 = vmatpush3.bf16.msra.mxu0 %v6930_v16  ;;  %6582 = vmatprep.subr.bf16.mxu1 %v6931_v9  ;;  %v1023_v18 = vadd.f32 %v8038_v33, %v841_v58  ;;  %v6938_v33 = vld [vmem:[%s8969_s3 + $0x630] sm:$0xff]   ;;  %v6942_v58 = vld [vmem:[%s8969_s3 + $0x620] sm:$0xff]  }
 0x22a   : > { %6664 = vmatprep.subr.bf16.mxu0 %v6932_v22  ;;  %v1562_v41 = vadd.f32 %v8387_v20, %v1383_v27  ;;  %v8514_v32 = vpop.f32.mrf.mxu0  ;;  %v9042_v20 = vld [vmem:[#allocation3_spill] sm:$0xff]  ;;  %v4438_v27 = vsel %vm871_vm2, %v4435_v45, %v4437_v30 }
 0x22b   : > { %v1211_v8 = vadd.f32 %v8290_v49, %v1023_v18  ;;  %v4436_v49 = vsel %vm871_vm2, %v9042_v20, %v4435_v45  ;;  %v6943_v45 = vld [vmem:[%s8969_s3 + $0x550] sm:$0xff]  }
 0x22c   : > { %6583 = vmatpush3.bf16.msra.mxu1 %v6931_v9  ;;  %v1759_v62 = vadd.f32 %v8267_v42, %v1562_v41  ;;  %v6940_v42 = vld [vmem:[%s8969_s3 + $0x628] sm:$0xff]  }
 0x22d   : > { %6665 = vmatpush3.bf16.msra.mxu0 %v6932_v22  ;;  %6624 = vmatprep.subr.bf16.mxu1 %v6933_v7  ;;  %v1387_v51 = vadd.f32 %v8166_v48, %v1211_v8  ;;  %v4439_v22 = vrot.slane %v7455_v61, 1 }
 0x22e   : > { %6666 = vmatprep.subr.bf16.mxu0 %v6934_v46 }
 0x22f   : > { %v6250_v28 = vpop.f32.mrf.mxu1  ;;  %6585 = vmatmul.mubr.bf16.vlgmr.msra.gmra.mxu1 %v7815_v4  ;;  %v1566_v48 = vadd.f32 %v8429_v50, %v1387_v51  ;;  %v3945_v50 = vrot.slane %v7455_v61, 4 }
 0x230   : > { %v1938_v63 = vadd.f32 %v6250_v28, %v8376_v44  ;;  %6588 = vmatprep.mubr.bf16.mxu1 %v7836_v60  ;;  %6625 = vmatpush3.bf16.msra.mxu1 %v6933_v7 }
 0x231   : > { %6667 = vmatpush3.bf16.msra.mxu0 %v6934_v46  ;;  %v1889_v23 = vpop.f32.mrf.mxu1  ;;  %6626 = vmatprep.subr.bf16.mxu1 %v6935_v52  ;;  %v1763_v18 = vadd.f32 %v8312_v54, %v1566_v48  ;;  %v6944_v54 = vld [vmem:[%s8969_s3 + $0x618] sm:$0xff]   ;;  %v9048_v48 = vld [vmem:[#allocation21_spill] sm:$0xff] }
 0x232   : > { %v1936_v4 = vadd.f32 %v1889_v23, %v8384_v0  ;;  %6708 = vmatprep.subr.bf16.mxu0 %v6936_v26  ;;  %v8524_v60 = vadd.f32 %v8380_v12, %v1938_v63  ;;  %v9043_v0 = vld [vmem:[#allocation4_spill] sm:$0xff] }
 0x233   : > { %v6251_v44 = vpop.f32.mrf.mxu1 }
 0x234   : > { %v1939_v16 = vadd.f32 %v6251_v44, %v8399_v3  ;;  %v8529_v24 = vpop.f32.mrf.mxu0  ;;  %6669 = vmatmul.mubr.bf16.vlgmr.msra.gmra.mxu0 %v9043_v0  ;;  %6627 = vmatpush3.bf16.msra.mxu1 %v6935_v52  ;;  %v8534_v2 = vadd.f32 %v8392_v34, %v1936_v4  ;;  %v9046_v44 = vld [vmem:[#allocation6_spill] sm:$0xff] }
 0x235   : > { %6672 = vmatprep.mubr.bf16.mxu0 %v4436_v49  ;;  %6709 = vmatpush3.bf16.msra.mxu0 %v6936_v26  ;;  %v1892_v12 = vpop.f32.mrf.mxu1 }
 0x236   : > { %v1937_v3 = vadd.f32 %v1892_v12, %v1759_v62  ;;  %v8540_v35 = vpop.f32.mrf.mxu0  ;;  %6628 = vmatprep.subr.bf16.mxu1 %v6937_v29  ;;  %6710 = vmatprep.subr.bf16.mxu0 %v6938_v33  ;;  %v8546_v34 = vadd.f32 %v8405_v13, %v1939_v16 }
 0x237   : > { %v6254_v9 = vpop.f32.mrf.mxu1  ;;  %6589 = vmatmul.mubr.bf16.gmra.mxu1 %v7840_v31 }
 0x238   : > { %v1942_v37 = vadd.f32 %v6254_v9, %v8419_v11  ;;  %v8553_v7 = vpop.f32.mrf.mxu0  ;;  %6592 = vmatprep.mubr.bf16.mxu1 %v9044_v6  ;;  %6629 = vmatpush3.bf16.msra.mxu1 %v6937_v29  ;;  %v8557_v53 = vadd.f32 %v8409_v39, %v1937_v3  ;;  %v6941_v11 = vld [vmem:[%s8969_s3 + $0x558] sm:$0xff]   ;;  %v6952_v6 = vld [vmem:[%s8969_s3 + $0x5e8] sm:$0xff]  }
 0x239   : > { %6711 = vmatpush3.bf16.msra.mxu0 %v6938_v33  ;;  %v1905_v13 = vpop.f32.mrf.mxu1  ;;  %6630 = vmatprep.subr.bf16.mxu1 %v6939_v47  ;;  %v6949_v3 = vld [vmem:[%s8969_s3 + $0x5f8] sm:$0xff]  }
 0x23a   : > { %v1940_v31 = vadd.f32 %v1905_v13, %v8426_v55  ;;  %v8560_v46 = vpop.f32.mrf.mxu0  ;;  %6712 = vmatprep.subr.bf16.mxu0 %v6940_v42  ;;  %v8570_v39 = vadd.f32 %v8422_v38, %v1942_v37  ;;  %v4440_v55 = vsel %vm871_vm2, %v4437_v30, %v4439_v22  ;;  %v9047_v30 = vld [vmem:[#allocation8_spill] sm:$0xff] }
 0x23b   : > { %v6255_v52 = vpop.f32.mrf.mxu1 }
 0x23c   : > { %v1943_v26 = vadd.f32 %v6255_v52, %v8442_v5  ;;  %v8575_v28 = vpop.f32.mrf.mxu0  ;;  %6673 = vmatmul.mubr.bf16.gmra.mxu0 %v4438_v27  ;;  %6631 = vmatpush3.bf16.msra.mxu1 %v6939_v47  ;;  %v8579_v41 = vadd.f32 %v8435_v56, %v1940_v31  ;;  %v9045_v5 = vrot.slane %v7356_v59, 4  ;;  %v6947_v47 = vld [vmem:[%s8969_s3 + $0x540] sm:$0xff]   ;;  %v9049_v52 = vld [vmem:[#allocation10_spill] sm:$0xff] }
 0x23d   : > { %6676 = vmatprep.mubr.bf16.mxu0 %v4440_v55  ;;  %6713 = vmatpush3.bf16.msra.mxu0 %v6940_v42  ;;  %v1908_v38 = vpop.f32.mrf.mxu1  ;;  %v6950_v42 = vld [vmem:[%s8969_s3 + $0x600] sm:$0xff]  }
 0x23e   : > { %v1941_v63 = vadd.f32 %v1908_v38, %v1763_v18  ;;  %v8584_v23 = vpop.f32.mrf.mxu0  ;;  %v3946_v8 = vsel %vm2308_vm14, %v9045_v5, %v3945_v50  ;;  %6632 = vmatprep.subr.bf16.mxu1 %v6941_v11  ;;  %6714 = vmatprep.subr.bf16.mxu0 %v6942_v58  ;;  %v8593_v56 = vadd.f32 %v8446_v40, %v1943_v26  ;;  %v6945_v40 = vld [vmem:[%s8969_s3 + $0x548] sm:$0xff]   ;;  %v9050_v38 = vld [vmem:[#allocation22_spill] sm:$0xff] }
 0x23f   : > { %v6258_v4 = vpop.f32.mrf.mxu1  ;;  %6593 = vmatmul.mubr.bf16.gmra.mxu1 %v3946_v8 }
 0x240   : > { %v1946_v29 = vadd.f32 %v6258_v4, %v8461_v1  ;;  %v8596_v33 = vpop.f32.mrf.mxu0  ;;  %6633 = vmatpush3.bf16.msra.mxu1 %v6941_v11  ;;  %6640 = vmatprep.mubr.bf16.mxu1 %v9046_v44  ;;  %v8600_v59 = vadd.f32 %v8452_v21, %v1941_v63  ;;  %v6946_v1 = vld [vmem:[%s8969_s3 + $0x610] sm:$0xff]   ;;  %v4777_v63 = vrot.slane %v7455_v61, 2 }
 0x241   : > { %6715 = vmatpush3.bf16.msra.mxu0 %v6942_v58  ;;  %v1921_v20 = vpop.f32.mrf.mxu1  ;;  %6634 = vmatprep.subr.bf16.mxu1 %v6943_v45 }
 0x242   : > { %v1944_v49 = vadd.f32 %v1921_v20, %v8468_v15  ;;  %v8603_v16 = vpop.f32.mrf.mxu0  ;;  %6716 = vmatprep.subr.bf16.mxu0 %v6944_v54  ;;  %v8612_v0 = vadd.f32 %v8474_v57, %v1946_v29  ;;  %v4778_v44 = vsel %vm1235_vm5, %v8228_v17, %v4777_v63 }
 0x243   : > { %v6259_v21 = vpop.f32.mrf.mxu1 }
 0x244   : > { %v1947_v62 = vadd.f32 %v6259_v21, %v8480_v14  ;;  %6677 = vmatmul.mubr.bf16.gmra.mxu0 %v4439_v22  ;;  %6635 = vmatpush3.bf16.msra.mxu1 %v6943_v45  ;;  %v8616_v15 = vadd.f32 %v8492_v43, %v1944_v49  ;;  %v8622_v51 = vpop.f32.mrf.mxu0  ;;  %v6948_v14 = vld [vmem:[%s8969_s3 + $0x608] sm:$0xff]   ;;  %v9053_v21 = vld [vmem:[#allocation29_spill] sm:$0xff] }
 0x245   : > { %6717 = vmatpush3.bf16.msra.mxu0 %v6944_v54  ;;  %6724 = vmatprep.mubr.bf16.mxu0 %v9037_v36  ;;  %v1924_v12 = vpop.f32.mrf.mxu1 }
 0x246   : > { %v1945_v57 = vadd.f32 %v1924_v12, %v8484_v25  ;;  %6636 = vmatprep.subr.bf16.mxu1 %v6945_v40  ;;  %6718 = vmatprep.subr.bf16.mxu0 %v6946_v1  ;;  %v8629_v43 = vadd.f32 %v8502_v19, %v1947_v62  ;;  %v8637_v25 = vpop.f32.mrf.mxu0  ;;  %v6951_v19 = vld [vmem:[%s8969_s3 + $0x5f0] sm:$0xff]  }
 0x248   : > { %6637 = vmatpush3.bf16.msra.mxu1 %v6945_v40  ;;  %v8632_v36 = vadd.f32 %v8514_v32, %v1945_v57  ;;  %v8645_v32 = vpop.f32.mrf.mxu0 }
 0x249   : > { %6719 = vmatpush3.bf16.msra.mxu0 %v6946_v1  ;;  %6638 = vmatprep.subr.bf16.mxu1 %v6947_v47 }
 0x24a   : > { %6720 = vmatprep.subr.bf16.mxu0 %v6948_v14  ;;  %v8653_v13 = vpop.f32.mrf.mxu0 }
 0x24c   : > { %6639 = vmatpush3.bf16.msra.mxu1 %v6947_v47 }
 0x24d   : > { %6721 = vmatpush3.bf16.msra.mxu0 %v6948_v14  ;;  %6680 = vmatprep.subr.bf16.mxu1 %v6949_v3 }
 0x24e   : > { %6722 = vmatprep.subr.bf16.mxu0 %v6950_v42 }
 0x24f   : > { %v6306_v9 = vpop.f32.mrf.mxu1  ;;  %6641 = vmatmul.mubr.bf16.vlgmr.msra.gmra.mxu1 %v9047_v30 }
 0x250   : > { %v2280_v22 = vadd.f32 %v6306_v9, %v8524_v60  ;;  %6644 = vmatprep.mubr.bf16.mxu1 %v9048_v48  ;;  %6681 = vmatpush3.bf16.msra.mxu1 %v6949_v3 }
 0x251   : > { %6723 = vmatpush3.bf16.msra.mxu0 %v6950_v42  ;;  %v2231_v37 = vpop.f32.mrf.mxu1  ;;  %6682 = vmatprep.subr.bf16.mxu1 %v6951_v19 }
 0x252   : > { %v2278_v31 = vadd.f32 %v2231_v37, %v8534_v2  ;;  %v8657_v50 = vadd.f32 %v8529_v24, %v2280_v22  ;;  %v6953_v24 = vld [vmem:[%s8969_s3 + $0x5e0] sm:$0xff]  }
 0x253   : > { %v6307_v11 = vpop.f32.mrf.mxu1 }
 0x254   : > { %v2281_v60 = vadd.f32 %v6307_v11, %v8546_v34  ;;  %v8660_v58 = vpop.f32.mrf.mxu0  ;;  %6725 = vmatmul.mubr.bf16.vlgmr.msra.gmra.mxu0 %v9049_v52  ;;  %6683 = vmatpush3.bf16.msra.mxu1 %v6951_v19  ;;  %v8664_v27 = vadd.f32 %v8540_v35, %v2278_v31 }
 0x255   : > { %6728 = vmatprep.mubr.bf16.mxu0 %v8249_v10  ;;  %v2234_v55 = vpop.f32.mrf.mxu1  ;;  %6684 = vmatprep.subr.bf16.mxu1 %v6952_v6  ;;  %v9051_v10 = vld [vmem:[#allocation25_spill] sm:$0xff] }
 0x256   : > { %v2279_v2 = vadd.f32 %v2234_v55, %v8557_v53  ;;  %v8671_v26 = vpop.f32.mrf.mxu0  ;;  %v8674_v34 = vadd.f32 %v8553_v7, %v2281_v60  ;;  %v6954_v7 = vld [vmem:[%s8969_s3 + $0x5d8] sm:$0xff]  }
 0x257   : > { %v6310_v18 = vpop.f32.mrf.mxu1  ;;  %6645 = vmatmul.mubr.bf16.gmra.mxu1 %v9050_v38 }
 0x258   : > { %v2284_v35 = vadd.f32 %v6310_v18, %v8570_v39  ;;  %v8678_v45 = vpop.f32.mrf.mxu0  ;;  %6648 = vmatprep.mubr.bf16.mxu1 %v9051_v10  ;;  %6685 = vmatpush3.bf16.msra.mxu1 %v6952_v6  ;;  %v8683_v5 = vadd.f32 %v8560_v46, %v2279_v2  ;;  %v9052_v46 = vld [vmem:[#allocation11_spill] sm:$0xff] }
 0x259   : > { %v2247_v53 = vpop.f32.mrf.mxu1  ;;  %6686 = vmatprep.subr.bf16.mxu1 %v6953_v24  ;;  %v9056_v6 = vld [vmem:[#allocation23_spill] sm:$0xff] }
 0x25a   : > { %v2282_v8 = vadd.f32 %v2247_v53, %v8579_v41  ;;  %v8689_v54 = vpop.f32.mrf.mxu0  ;;  %v8692_v39 = vadd.f32 %v8575_v28, %v2284_v35  ;;  %v6955_v28 = vld [vmem:[%s8969_s3 + $0x5d0] sm:$0xff]   ;;  %v9057_v35 = vld [vmem:[#allocation24_spill] sm:$0xff] }
 0x25b   : > { %v6311_v4 = vpop.f32.mrf.mxu1 }
 0x25c   : > { %v2285_v29 = vadd.f32 %v6311_v4, %v8593_v56  ;;  %v8695_v61 = vpop.f32.mrf.mxu0  ;;  %6729 = vmatmul.mubr.bf16.gmra.mxu0 %v9052_v46  ;;  %6687 = vmatpush3.bf16.msra.mxu1 %v6953_v24  ;;  %v2461_v20 = vadd.f32 %v8584_v23, %v2282_v8  ;;  %v9054_v23 = vld [vmem:[#allocation19_spill] sm:$0xff] }
 0x25d   : > { %6732 = vmatprep.mubr.bf16.mxu0 %v4778_v44  ;;  %v2250_v41 = vpop.f32.mrf.mxu1  ;;  %6688 = vmatprep.subr.bf16.mxu1 %v6954_v7 }
 0x25e   : > { %v2283_v49 = vadd.f32 %v2250_v41, %v8600_v59  ;;  %v2801_v56 = vpop.f32.mrf.mxu0  ;;  %v2464_v40 = vadd.f32 %v8596_v33, %v2285_v29  ;;  %v6956_v59 = vld [vmem:[%s8969_s3 + $0x5c8] sm:$0xff]  }
 0x25f   : > { %v6314_v1 = vpop.f32.mrf.mxu1  ;;  %6649 = vmatmul.mubr.bf16.gmra.mxu1 %v9053_v21 }
 0x260   : > { %v2288_v62 = vadd.f32 %v6314_v1, %v8612_v0  ;;  %v6395_v17 = vpop.f32.mrf.mxu0  ;;  %6689 = vmatpush3.bf16.msra.mxu1 %v6954_v7  ;;  %6696 = vmatprep.mubr.bf16.mxu1 %v9054_v23  ;;  %v2462_v12 = vadd.f32 %v8603_v16, %v2283_v49  ;;  %v6957_v16 = vld [vmem:[%s8969_s3 + $0x5c0] sm:$0xff]  }
 0x261   : > { %v2263_v47 = vpop.f32.mrf.mxu1  ;;  %6690 = vmatprep.subr.bf16.mxu1 %v6955_v28 }
 0x262   : > { %v2286_v57 = vadd.f32 %v2263_v47, %v8616_v15  ;;  %v2804_v33 = vpop.f32.mrf.mxu0  ;;  %v2467_v14 = vadd.f32 %v8622_v51, %v2288_v62 }
 0x263   : > { %v6315_v3 = vpop.f32.mrf.mxu1 }
 0x264   : > { %v2289_v0 = vadd.f32 %v6315_v3, %v8629_v43  ;;  %6733 = vmatmul.mubr.bf16.gmra.mxu0 %v4777_v63  ;;  %6691 = vmatpush3.bf16.msra.mxu1 %v6955_v28  ;;  %v2465_v42 = vadd.f32 %v8637_v25, %v2286_v57  ;;  %v6398_v9 = vpop.f32.mrf.mxu0  ;;  %v9055_v25 = vld [vmem:[#allocation20_spill] sm:$0xff]  ;;  %v9058_v63 = vld [vmem:[#allocation27_spill] sm:$0xff] }
 0x265   : > { %v2266_v19 = vpop.f32.mrf.mxu1  ;;  %6692 = vmatprep.subr.bf16.mxu1 %v6956_v59 }
 0x266   : > { %v2287_v30 = vadd.f32 %v2266_v19, %v8632_v36  ;;  %v2468_v15 = vadd.f32 %v8645_v32, %v2289_v0  ;;  %v2817_v43 = vpop.f32.mrf.mxu0 }
 0x268   : > { %6693 = vmatpush3.bf16.msra.mxu1 %v6956_v59  ;;  %v2466_v51 = vadd.f32 %v8653_v13, %v2287_v30  ;;  %v6399_v22 = vpop.f32.mrf.mxu0 }
 0x269   : > { %6694 = vmatprep.subr.bf16.mxu1 %v6957_v16 }
 0x26a   : > { %v2820_v11 = vpop.f32.mrf.mxu0 }
 0x26c   : > { %6695 = vmatpush3.bf16.msra.mxu1 %v6957_v16 }
 0x26f   : > { %v6362_v48 = vpop.f32.mrf.mxu1  ;;  %6697 = vmatmul.mubr.bf16.vlgmr.msra.gmra.mxu1 %v9055_v25 }
 0x270   : > { %v2656_v37 = vadd.f32 %v6362_v48, %v8657_v50  ;;  %6700 = vmatprep.mubr.bf16.mxu1 %v9056_v6 }
 0x271   : > { %v2607_v31 = vpop.f32.mrf.mxu1 }
 0x272   : > { %v2654_v36 = vadd.f32 %v2607_v31, %v8664_v27  ;;  %v2834_v32 = vadd.f32 %v8660_v58, %v2656_v37 }
 0x273   : > { %v6363_v60 = vpop.f32.mrf.mxu1 }
 0x274   : > { %v2657_v13 = vadd.f32 %v6363_v60, %v8674_v34  ;;  %v6446_v52 = vpop.f32.mrf.mxu0  ;;  %v2832_v55 = vadd.f32 %v8671_v26, %v2654_v36 }
 0x275   : > { %v2610_v24 = vpop.f32.mrf.mxu1 }
 0x276   : > { %v2655_v2 = vadd.f32 %v2610_v24, %v8683_v5  ;;  %v3138_v18 = vpop.f32.mrf.mxu0  ;;  %v2835_v50 = vadd.f32 %v8678_v45, %v2657_v13 }
 0x277   : > { %v6366_v38 = vpop.f32.mrf.mxu1  ;;  %6701 = vmatmul.mubr.bf16.gmra.mxu1 %v9057_v35 }
 0x278   : > { %v2660_v10 = vadd.f32 %v6366_v38, %v8692_v39  ;;  %v6447_v27 = vpop.f32.mrf.mxu0  ;;  %6704 = vmatprep.mubr.bf16.mxu1 %v9058_v63  ;;  %v2833_v58 = vadd.f32 %v8689_v54, %v2655_v2  ;;  %v9059_v39 = vld [vmem:[#allocation26_spill] sm:$0xff] }
 0x279   : > { %v2623_v34 = vpop.f32.mrf.mxu1 }
 0x27a   : > { %v2658_v53 = vadd.f32 %v2623_v34, %v2461_v20  ;;  %v3141_v7 = vpop.f32.mrf.mxu0  ;;  %v2838_v26 = vadd.f32 %v8695_v61, %v2660_v10 }
 0x27b   : > { %v6367_v8 = vpop.f32.mrf.mxu1 }
 0x27c   : > { %v2661_v5 = vadd.f32 %v6367_v8, %v2464_v40  ;;  %v6450_v4 = vpop.f32.mrf.mxu0  ;;  %v2836_v29 = vadd.f32 %v2801_v56, %v2658_v53 }
 0x27d   : > { %v2626_v45 = vpop.f32.mrf.mxu1 }
 0x27e   : > { %v2659_v46 = vadd.f32 %v2626_v45, %v2462_v12  ;;  %v3154_v44 = vpop.f32.mrf.mxu0  ;;  %v2839_v41 = vadd.f32 %v6395_v17, %v2661_v5 }
 0x27f   : > { %v6370_v28 = vpop.f32.mrf.mxu1  ;;  %6705 = vmatmul.mubr.bf16.gmra.mxu1 %v9059_v39 }
 0x280   : > { %v2664_v49 = vadd.f32 %v6370_v28, %v2467_v14  ;;  %v6451_v1 = vpop.f32.mrf.mxu0  ;;  %v2837_v21 = vadd.f32 %v2804_v33, %v2659_v46 }
 0x281   : > { %v2639_v54 = vpop.f32.mrf.mxu1 }
 0x282   : > { %v2662_v62 = vadd.f32 %v2639_v54, %v2465_v42  ;;  %v3157_v20 = vpop.f32.mrf.mxu0  ;;  %v2842_v23 = vadd.f32 %v6398_v9, %v2664_v49 }
 0x283   : > { %v6371_v47 = vpop.f32.mrf.mxu1 }
 0x284   : > { %v2665_v61 = vadd.f32 %v6371_v47, %v2468_v15  ;;  %v2840_v59 = vadd.f32 %v2817_v43, %v2662_v62  ;;  %v6454_v57 = vpop.f32.mrf.mxu0 }
 0x285   : > { %v2642_v40 = vpop.f32.mrf.mxu1 }
 0x286   : > { %v2663_v56 = vadd.f32 %v2642_v40, %v2466_v51  ;;  %v2843_v3 = vadd.f32 %v6399_v22, %v2665_v61  ;;  %v3170_v0 = vpop.f32.mrf.mxu0 }
 0x288   : > { %v2841_v12 = vadd.f32 %v2820_v11, %v2663_v56  ;;  %v6455_v17 = vpop.f32.mrf.mxu0 }
 0x28a   : > { %v3173_v14 = vpop.f32.mrf.mxu0 }
 0x28f   : > { %v6418_v19 = vpop.f32.mrf.mxu1 }
 0x290   : > { %v3026_v16 = vadd.f32 %v6418_v19, %v2834_v32 }
 0x291   : > { %v2977_v30 = vpop.f32.mrf.mxu1 }
 0x292   : > { %v3024_v48 = vadd.f32 %v2977_v30, %v2832_v55  ;;  %v3187_v33 = vadd.f32 %v6446_v52, %v3026_v16 }
 0x293   : > { %v6419_v25 = vpop.f32.mrf.mxu1 }
 0x294   : > { %v3027_v42 = vadd.f32 %v6419_v25, %v2835_v50  ;;  %v6502_v37 = vpop.f32.mrf.mxu0  ;;  %v3185_v9 = vadd.f32 %v3138_v18, %v3024_v48 }
 0x295   : > { %v2980_v6 = vpop.f32.mrf.mxu1 }
 0x296   : > { %v3025_v15 = vadd.f32 %v2980_v6, %v2833_v58  ;;  %v3496_v43 = vpop.f32.mrf.mxu0  ;;  %v3188_v31 = vadd.f32 %v6447_v27, %v3027_v42 }
 0x297   : > { %v6422_v36 = vpop.f32.mrf.mxu1 }
 0x298   : > { %v3030_v51 = vadd.f32 %v6422_v36, %v2838_v26  ;;  %v6503_v22 = vpop.f32.mrf.mxu0  ;;  %v3186_v11 = vadd.f32 %v3141_v7, %v3025_v15 }
 0x299   : > { %v2993_v60 = vpop.f32.mrf.mxu1 }
 0x29a   : > { %v3028_v13 = vadd.f32 %v2993_v60, %v2836_v29  ;;  %v3499_v24 = vpop.f32.mrf.mxu0  ;;  %v3191_v32 = vadd.f32 %v6450_v4, %v3030_v51 }
 0x29b   : > { %v6423_v2 = vpop.f32.mrf.mxu1 }
 0x29c   : > { %v3031_v38 = vadd.f32 %v6423_v2, %v2839_v41  ;;  %v6506_v55 = vpop.f32.mrf.mxu0  ;;  %v3189_v52 = vadd.f32 %v3154_v44, %v3028_v13 }
 0x29d   : > { %v2996_v35 = vpop.f32.mrf.mxu1 }
 0x29e   : > { %v3029_v50 = vadd.f32 %v2996_v35, %v2837_v21  ;;  %v3512_v10 = vpop.f32.mrf.mxu0  ;;  %v3192_v18 = vadd.f32 %v6451_v1, %v3031_v38 }
 0x29f   : > { %v6426_v63 = vpop.f32.mrf.mxu1 }
 0x2a0   : > { %v3034_v58 = vadd.f32 %v6426_v63, %v2842_v23  ;;  %v6507_v34 = vpop.f32.mrf.mxu0  ;;  %v3190_v27 = vadd.f32 %v3157_v20, %v3029_v50 }
 0x2a1   : > { %v3009_v53 = vpop.f32.mrf.mxu1 }
 0x2a2   : > { %v3032_v26 = vadd.f32 %v3009_v53, %v2840_v59  ;;  %v3515_v8 = vpop.f32.mrf.mxu0  ;;  %v3195_v7 = vadd.f32 %v6454_v57, %v3034_v58 }
 0x2a3   : > { %v6427_v5 = vpop.f32.mrf.mxu1 }
 0x2a4   : > { %v3035_v29 = vadd.f32 %v6427_v5, %v2843_v3  ;;  %v3193_v45 = vadd.f32 %v3170_v0, %v3032_v26  ;;  %v6510_v46 = vpop.f32.mrf.mxu0 }
 0x2a5   : > { %v3012_v4 = vpop.f32.mrf.mxu1 }
 0x2a6   : > { %v3033_v41 = vadd.f32 %v3012_v4, %v2841_v12  ;;  %v3196_v28 = vadd.f32 %v6455_v17, %v3035_v29  ;;  %v3528_v39 = vpop.f32.mrf.mxu0 }
 0x2a8   : > { %v3194_v44 = vadd.f32 %v3173_v14, %v3033_v41  ;;  %v6511_v49 = vpop.f32.mrf.mxu0 }
 0x2aa   : > { %v3531_v62 = vpop.f32.mrf.mxu0 }
 0x2af   : > { %v6474_v21 = vpop.f32.mrf.mxu1 }
 0x2b0   : > { %v3352_v1 = vadd.f32 %v6474_v21, %v3187_v33 }
 0x2b1   : > { %v3303_v54 = vpop.f32.mrf.mxu1 }
 0x2b2   : > { %v3350_v23 = vadd.f32 %v3303_v54, %v3185_v9  ;;  %v3545_v20 = vadd.f32 %v6502_v37, %v3352_v1 }
 0x2b3   : > { %v6475_v47 = vpop.f32.mrf.mxu1 }
 0x2b4   : > { %v3353_v61 = vadd.f32 %v6475_v47, %v3188_v31  ;;  %v6558_v59 = vpop.f32.mrf.mxu0  ;;  %v8738_v40 = vadd.f32 %v3496_v43, %v3350_v23 }
 0x2b5   : > { %v3306_v57 = vpop.f32.mrf.mxu1 }
 0x2b6   : > { %v3351_v56 = vadd.f32 %v3306_v57, %v3186_v11  ;;  %v8740_v3 = vpop.f32.mrf.mxu0  ;;  %v8742_v12 = vadd.f32 %v6503_v22, %v3353_v61 }
 0x2b7   : > { %v6478_v0 = vpop.f32.mrf.mxu1 }
 0x2b8   : > { %v3356_v17 = vadd.f32 %v6478_v0, %v3191_v32  ;;  %v8744_v19 = vpop.f32.mrf.mxu0  ;;  %v8746_v16 = vadd.f32 %v3499_v24, %v3351_v56 }
 0x2b9   : > { %v3319_v30 = vpop.f32.mrf.mxu1 }
 0x2ba   : > { %v3354_v14 = vadd.f32 %v3319_v30, %v3189_v52  ;;  %v8748_v48 = vpop.f32.mrf.mxu0  ;;  %v8750_v33 = vadd.f32 %v6506_v55, %v3356_v17 }
 0x2bb   : > { %v6479_v25 = vpop.f32.mrf.mxu1 }
 0x2bc   : > { %v3357_v42 = vadd.f32 %v6479_v25, %v3192_v18  ;;  %v8752_v37 = vpop.f32.mrf.mxu0  ;;  %v3547_v9 = vadd.f32 %v3512_v10, %v3354_v14 }
 0x2bd   : > { %v3322_v6 = vpop.f32.mrf.mxu1 }
 0x2be   : > { %v3355_v15 = vadd.f32 %v3322_v6, %v3190_v27  ;;  %v3885_v43 = vpop.f32.mrf.mxu0  ;;  %v3550_v31 = vadd.f32 %v6507_v34, %v3357_v42 }
 0x2bf   : > { %v6482_v36 = vpop.f32.mrf.mxu1 }
 0x2c0   : > { %v3360_v51 = vadd.f32 %v6482_v36, %v3195_v7  ;;  %v6563_v22 = vpop.f32.mrf.mxu0  ;;  %v8754_v11 = vadd.f32 %v3515_v8, %v3355_v15 }
 0x2c1   : > { %v3335_v60 = vpop.f32.mrf.mxu1 }
 0x2c2   : > { %v3358_v13 = vadd.f32 %v3335_v60, %v3193_v45  ;;  %v8756_v24 = vpop.f32.mrf.mxu0  ;;  %v3553_v32 = vadd.f32 %v6510_v46, %v3360_v51 }
 0x2c3   : > { %v6483_v2 = vpop.f32.mrf.mxu1 }
 0x2c4   : > { %v3361_v38 = vadd.f32 %v6483_v2, %v3196_v28  ;;  %v8758_v55 = vadd.f32 %v3528_v39, %v3358_v13  ;;  %v6566_v35 = vpop.f32.mrf.mxu0 }
 0x2c5   : > { %v3338_v52 = vpop.f32.mrf.mxu1 }
 0x2c6   : > { %v3359_v50 = vadd.f32 %v3338_v52, %v3194_v44  ;;  %v8760_v10 = vadd.f32 %v6511_v49, %v3361_v38  ;;  %v8764_v63 = vpop.f32.mrf.mxu0 }
 0x2c8   : > { %v8762_v18 = vadd.f32 %v3531_v62, %v3359_v50  ;;  %v8766_v58 = vpop.f32.mrf.mxu0 }
 0x2ca   : > { %v8770_v26 = vpop.f32.mrf.mxu0 }
 0x2cf   : > { %v6530_v34 = vpop.f32.mrf.mxu1 }
 0x2d0   : > { %v3724_v27 = vadd.f32 %v6530_v34, %v3545_v20 }
 0x2d1   : > { %v8768_v53 = vpop.f32.mrf.mxu1 }
 0x2d2   : > { %v8772_v8 = vadd.f32 %v6558_v59, %v3724_v27 }
 0x2d3   : > { %v8774_v7 = vpop.f32.mrf.mxu1 }
 0x2d4   : > { %v8776_v5 = vpop.f32.mrf.mxu0 }
 0x2d5   : > { %v8778_v29 = vpop.f32.mrf.mxu1 }
 0x2d6   : > { %v8780_v45 = vpop.f32.mrf.mxu0 }
 0x2d7   : > { %v8782_v4 = vpop.f32.mrf.mxu1 }
 0x2d8   : > { %v8784_v46 = vpop.f32.mrf.mxu0 }
 0x2d9   : > { %v3691_v41 = vpop.f32.mrf.mxu1 }
 0x2da   : > { %v3726_v28 = vadd.f32 %v3691_v41, %v3547_v9  ;;  %v8786_v44 = vpop.f32.mrf.mxu0 }
 0x2db   : > { %v6535_v39 = vpop.f32.mrf.mxu1 }
 0x2dc   : > { %v3729_v49 = vadd.f32 %v6535_v39, %v3550_v31  ;;  %v8788_v21 = vpop.f32.mrf.mxu0  ;;  %v8790_v1 = vadd.f32 %v3885_v43, %v3726_v28 }
 0x2dd   : > { %v8792_v54 = vpop.f32.mrf.mxu1 }
 0x2de   : > { %v8794_v62 = vpop.f32.mrf.mxu0  ;;  %v8796_v23 = vadd.f32 %v6563_v22, %v3729_v49 }
 0x2df   : > { %v6538_v20 = vpop.f32.mrf.mxu1 }
 0x2e0   : > { %v3732_v47 = vadd.f32 %v6538_v20, %v3553_v32  ;;  %v8798_v61 = vpop.f32.mrf.mxu0 }
 0x2e1   : > { %9060 = vst [vmem:[#allocation12_spill] sm:$0xff] %v8798_v61  ;;  %v8804_v56 = vpop.f32.mrf.mxu1 }
 0x2e2   : > { %v8800_v59 = vpop.f32.mrf.mxu0  ;;  %v8802_v57 = vadd.f32 %v6566_v35, %v3732_v47 }
 0x2e3   : > { %9061 = vst [vmem:[#allocation13_spill] sm:$0xff] %v8800_v59  ;;  %v8808_v17 = vpop.f32.mrf.mxu1 }
 0x2e4   : > { %v8806_v0 = vpop.f32.mrf.mxu0 }
 0x2e5   : > { %9062 = vst [vmem:[#allocation15_spill] sm:$0xff] %v8806_v0  ;;  %v8812_v14 = vpop.f32.mrf.mxu1 }
 0x2e6   : > { %v8810_v30 = vpop.f32.mrf.mxu0 }
 0x2e7   : > { %9063 = vst [vmem:[#allocation17_spill] sm:$0xff] %v8810_v30 }
 0x2e8   : > { %v8814_v25 = vpop.f32.mrf.mxu0 }
 0x2e9   : > { %9064 = vst [vmem:[#allocation18_spill] sm:$0xff] %v8814_v25 }
 0x2ea   : > { %v8816_v6 = vpop.f32.mrf.mxu0 }
 0x2eb   : > { %9065 = vst [vmem:[#allocation16_spill] sm:$0xff] %v8816_v6 }
 0x2ef   : > { %v6586_v42 = vpop.f32.mrf.mxu1 }
 0x2f0   : > { %v4079_v61 = vadd.f32 %v6586_v42, %v8772_v8  ;;  %v3727_v8 = vadd.f32 %v8792_v54, %v8754_v11  ;;  %v3733_v11 = vadd.f32 %v8808_v17, %v8760_v10 }
 0x2f1   : > { %v4030_v9 = vpop.f32.mrf.mxu1 }
 0x2f3   : > { %v6587_v15 = vpop.f32.mrf.mxu1 }
 0x2f4   : > { %v8818_v43 = vpop.f32.mrf.mxu0 }
 0x2f5   : > { %v4033_v31 = vpop.f32.mrf.mxu1 }
 0x2f6   : > { %v8820_v36 = vpop.f32.mrf.mxu0 }
 0x2f7   : > { %v6590_v51 = vpop.f32.mrf.mxu1 }
 0x2f8   : > { %v8822_v22 = vpop.f32.mrf.mxu0 }
 0x2f9   : > { %v4046_v60 = vpop.f32.mrf.mxu1 }
 0x2fa   : > { %v8824_v13 = vpop.f32.mrf.mxu0 }
 0x2fb   : > { %v8826_v32 = vpop.f32.mrf.mxu1 }
 0x2fc   : > { %v8828_v2 = vpop.f32.mrf.mxu0 }
 0x2fd   : > { %9066 = vst [vmem:[#allocation14_spill] sm:$0xff] %v8828_v2  ;;  %v4049_v38 = vpop.f32.mrf.mxu1 }
 0x2fe   : > { %v8830_v52 = vpop.f32.mrf.mxu0 }
 0x2ff   : > { %9067 = vst [vmem:[#allocation5_spill] sm:$0xff] %v8830_v52  ;;  %v8832_v35 = vpop.f32.mrf.mxu1 }
 0x300   : > { %v8834_v50 = vpop.f32.mrf.mxu0 }
 0x301   : > { %9068 = vst [vmem:[#allocation9_spill] sm:$0xff] %v8834_v50  ;;  %v8836_v34 = vpop.f32.mrf.mxu1 }
 0x302   : > { %v8838_v27 = vpop.f32.mrf.mxu0 }
 0x303   : > { %9069 = vst [vmem:[#allocation7_spill] sm:$0xff] %v8838_v27  ;;  %v8840_v41 = vpop.f32.mrf.mxu1 }
 0x304   : > { %9070 = vst [vmem:[#allocation2_spill] sm:$0xff] %v8840_v41  ;;  %v8842_v28 = vpop.f32.mrf.mxu0 }
 0x305   : > { %9071 = vst [vmem:[#allocation3_spill] sm:$0xff] %v8842_v28  ;;  %v8844_v39 = vpop.f32.mrf.mxu1 }
 0x306   : > { %9072 = vst [vmem:[#allocation4_spill] sm:$0xff] %v8844_v39  ;;  %v8846_v20 = vpop.f32.mrf.mxu0  ;;  %v3722_v39 = vadd.f32 %v8768_v53, %v8738_v40 }
 0x307   : > { %9073 = vst [vmem:[#allocation28_spill] sm:$0xff] %v8846_v20 }
 0x308   : > { %v8848_v25 = vpop.f32.mrf.mxu0 }
 0x309   : > { %9074 = vst [vmem:[#allocation6_spill] sm:$0xff] %v8848_v25  ;;  %v3725_v25 = vadd.f32 %v8774_v7, %v8742_v12 }
 0x30a   : > { %v8850_v50 = vpop.f32.mrf.mxu0 }
 0x30b   : > { %9075 = vst [vmem:[#allocation8_spill] sm:$0xff] %v8850_v50  ;;  %v3723_v50 = vadd.f32 %v8778_v29, %v8746_v16  ;;  %v3919_v53 = vadd.f32 %v8744_v19, %v3725_v25  ;;  %v4237_v29 = vadd.f32 %v8776_v5, %v4079_v61  ;;  %v3730_v5 = vadd.f32 %v8804_v56, %v8758_v55 }
 0x30c   : > { %v4084_v55 = vadd.f32 %v8826_v32, %v8796_v23 }
 0x30d   : > { %v4080_v12 = vadd.f32 %v6587_v15, %v3919_v53  ;;  %v3917_v7 = vadd.f32 %v8748_v48, %v3723_v50  ;;  %v4081_v48 = vadd.f32 %v4046_v60, %v8790_v1  ;;  %v3731_v1 = vadd.f32 %v8812_v14, %v8762_v18 }
 0x30e   : > { %v4087_v18 = vadd.f32 %v8832_v35, %v8802_v57  ;;  %v3927_v14 = vadd.f32 %v8766_v58, %v3733_v11  ;;  %v9083_v58 = vld [vmem:[#allocation14_spill] sm:$0xff] }
 0x30f   : > { %v6642_v49 = vpop.f32.mrf.mxu1  ;;  %v3925_v32 = vadd.f32 %v8770_v26, %v3731_v1 }
 0x310   : > { %v4408_v19 = vadd.f32 %v6642_v49, %v4237_v29 }
 0x311   : > { %v4359_v47 = vpop.f32.mrf.mxu1 }
 0x313   : > { %v6643_v6 = vpop.f32.mrf.mxu1 }
 0x314   : > { %v8852_v2 = vpop.f32.mrf.mxu0 }
 0x315   : > { %v4362_v30 = vpop.f32.mrf.mxu1  ;;  %9076 = vst [vmem:[#allocation21_spill] sm:$0xff] %v8852_v2  ;;  %v3916_v2 = vadd.f32 %v8740_v3, %v3722_v39  ;;  %v4078_v3 = vadd.f32 %v4033_v31, %v3917_v7 }
 0x316   : > { %v4863_v28 = vpop.f32.mrf.mxu0 }
 0x317   : > { %v6646_v52 = vpop.f32.mrf.mxu1  ;;  %v4077_v40 = vadd.f32 %v4030_v9, %v3916_v2  ;;  %v4238_v9 = vadd.f32 %v8784_v46, %v4080_v12  ;;  %v4236_v31 = vadd.f32 %v8786_v44, %v4078_v3  ;;  %v4576_v44 = vadd.f32 %v8818_v43, %v4408_v19  ;;  %v9088_v12 = vld [vmem:[#allocation15_spill] sm:$0xff] }
 0x318   : > { %v8864_v59 = vpop.f32.mrf.mxu0  ;;  %v4245_v7 = vadd.f32 %v9088_v12, %v4087_v18  ;;  %v9096_v18 = vld [vmem:[#allocation7_spill] sm:$0xff] }
 0x319   : > { %v4375_v0 = vpop.f32.mrf.mxu1  ;;  %9080 = vst [vmem:[#allocation11_spill] sm:$0xff] %v8864_v59  ;;  %v4409_v15 = vadd.f32 %v6643_v6, %v4238_v9 }
 0x31b   : > { %v8854_v27 = vpop.f32.mrf.mxu1  ;;  %v4577_v60 = vadd.f32 %v8822_v22, %v4409_v15  ;;  %v9081_v22 = vld [vmem:[#allocation12_spill] sm:$0xff] }
 0x31c   : > { %9077 = vst [vmem:[#allocation10_spill] sm:$0xff] %v8854_v27  ;;  %v3728_v27 = vadd.f32 %v8782_v4, %v8750_v33  ;;  %v4235_v33 = vadd.f32 %v8780_v45, %v4077_v40  ;;  %v3921_v45 = vadd.f32 %v8756_v24, %v3727_v8  ;;  %v4239_v24 = vadd.f32 %v8794_v62, %v4081_v48  ;;  %v9084_v26 = vld [vmem:[#allocation21_spill] sm:$0xff]  ;;  %v9091_v15 = vld [vmem:[#allocation4_spill] sm:$0xff] }
 0x31d   : > { %v8856_v41 = vpop.f32.mrf.mxu1  ;;  %v4242_v50 = vadd.f32 %v9081_v22, %v4084_v55  ;;  %v9094_v55 = vld [vmem:[#allocation18_spill] sm:$0xff] }
 0x31e   : > { %9078 = vst [vmem:[#allocation22_spill] sm:$0xff] %v8856_v41  ;;  %v3922_v59 = vadd.f32 %v8752_v37, %v3728_v27  ;;  %v4406_v25 = vadd.f32 %v4359_v47, %v4235_v33  ;;  %v4082_v56 = vadd.f32 %v4049_v38, %v3921_v45  ;;  %v4410_v43 = vadd.f32 %v4375_v0, %v4239_v24  ;;  %v9082_v27 = vld [vmem:[#allocation13_spill] sm:$0xff] }
 0x31f   : > { %v8860_v20 = vpop.f32.mrf.mxu1  ;;  %v9089_v33 = vld [vmem:[#allocation5_spill] sm:$0xff] }
 0x320   : > { %9079 = vst [vmem:[#allocation25_spill] sm:$0xff] %v8860_v20  ;;  %v8875_v20 = vpop.f32.mrf.mxu0  ;;  %v4083_v4 = vadd.f32 %v6590_v51, %v3922_v59  ;;  %v4407_v59 = vadd.f32 %v4362_v30, %v4236_v31  ;;  %v4574_v6 = vadd.f32 %v8820_v36, %v4406_v25  ;;  %v3924_v30 = vadd.f32 %v8764_v63, %v3730_v5  ;;  %v9085_v39 = vld [vmem:[#allocation11_spill] sm:$0xff]  ;;  %v9093_v45 = vld [vmem:[#allocation17_spill] sm:$0xff] }
 0x321   : > { %v8871_v41 = vpop.f32.mrf.mxu1  ;;  %v4240_v57 = vadd.f32 %v9082_v27, %v4082_v56  ;;  %v4578_v8 = vadd.f32 %v9089_v33, %v4410_v43  ;;  %v4086_v31 = vadd.f32 %v9091_v15, %v3925_v32  ;;  %v9095_v24 = vld [vmem:[#allocation9_spill] sm:$0xff]  ;;  %v9097_v43 = vld [vmem:[#allocation16_spill] sm:$0xff] }
 0x322   : > { %v8885_v42 = vpop.f32.mrf.mxu0  ;;  %v4241_v54 = vadd.f32 %v8788_v21, %v4083_v4  ;;  %v4575_v38 = vadd.f32 %v8824_v13, %v4407_v59 }
 0x323   : > { %v8879_v16 = vpop.f32.mrf.mxu1  ;;  %v9087_v40 = vld [vmem:[#allocation10_spill] sm:$0xff] }
 0x324   : > { %v8898_v61 = vpop.f32.mrf.mxu0  ;;  %v4412_v10 = vadd.f32 %v6646_v52, %v4241_v54  ;;  %v4085_v52 = vadd.f32 %v8836_v34, %v3924_v30  ;;  %v9086_v34 = vld [vmem:[#allocation2_spill] sm:$0xff]  ;;  %v4413_v53 = vadd.f32 %v9087_v40, %v4242_v50 }
 0x325   : > { %v8889_v37 = vpop.f32.mrf.mxu1  ;;  %v4088_v47 = vadd.f32 %v9086_v34, %v3927_v14  ;;  %v9090_v4 = vld [vmem:[#allocation22_spill] sm:$0xff] }
 0x326   : > { %v8913_v36 = vpop.f32.mrf.mxu0  ;;  %v4580_v0 = vadd.f32 %v9083_v58, %v4412_v10  ;;  %v4411_v19 = vadd.f32 %v9090_v4, %v4240_v57  ;;  %v4243_v54 = vadd.f32 %v9093_v45, %v4085_v52  ;;  %v9098_v52 = vld [vmem:[#allocation3_spill] sm:$0xff]  ;;  %v9099_v58 = vld [vmem:[#allocation28_spill] sm:$0xff] }
 0x327   : > { %v9092_v5 = vld [vmem:[#allocation25_spill] sm:$0xff]  ;;  %v4246_v56 = vadd.f32 %v9094_v55, %v4088_v47  ;;  %v9101_v47 = vld [vmem:[#allocation8_spill] sm:$0xff] }
 0x328   : > { %v4882_v3 = vpop.f32.mrf.mxu0  ;;  %v4416_v11 = vadd.f32 %v9092_v5, %v4245_v7  ;;  %v4579_v30 = vadd.f32 %v9096_v18, %v4411_v19 }
 0x329   : > { %v4417_v14 = vadd.f32 %v8879_v16, %v4246_v56 }
 0x32a   : > { %v6734_v10 = vpop.f32.mrf.mxu0  ;;  %v4584_v22 = vadd.f32 %v9098_v52, %v4416_v11 }
 0x32c   : > { %v4895_v50 = vpop.f32.mrf.mxu0 }
 0x32f   : > { %v6698_v46 = vpop.f32.mrf.mxu1 }
 0x330   : > { %v4750_v21 = vadd.f32 %v6698_v46, %v4576_v44 }
 0x331   : > { %v4701_v17 = vpop.f32.mrf.mxu1 }
 0x332   : > { %v4748_v51 = vadd.f32 %v4701_v17, %v4574_v6  ;;  %v4912_v35 = vadd.f32 %v9084_v26, %v4750_v21  ;;  %v4414_v21 = vadd.f32 %v8871_v41, %v4243_v54  ;;  %v9100_v26 = vld [vmem:[#allocation6_spill] sm:$0xff] }
 0x333   : > { %v6699_v23 = vpop.f32.mrf.mxu1 }
 0x334   : > { %v4910_v62 = vadd.f32 %v4863_v28, %v4748_v51  ;;  %v4751_v2 = vadd.f32 %v6699_v23, %v4577_v60  ;;  %v4926_v1 = vrot.slane %v4912_v35, 4  ;;  %v4244_v23 = vadd.f32 %v9097_v43, %v4086_v31 }
 0x335   : > { %v4704_v63 = vpop.f32.mrf.mxu1  ;;  %v4582_v16 = vadd.f32 %v9099_v58, %v4414_v21  ;;  %v4585_v35 = vadd.f32 %v9100_v26, %v4417_v14 }
 0x336   : > { %v4947_v28 = vmax.f32 %v4910_v62, 0.0  ;;  %v4913_v13 = vadd.f32 %v9085_v39, %v4751_v2  ;;  %v4749_v49 = vadd.f32 %v4704_v63, %v4575_v38  ;;  %v4415_v41 = vadd.f32 %v8889_v37, %v4244_v23 }
 0x337   : > { %v6702_v29 = vpop.f32.mrf.mxu1 }
 0x338   : > { %4955 = vst [vmem:[%s8923_s20] sm:$0xff] %v4947_v28  ;;  %v4949_v25 = vmax.f32 %v4913_v13, 0.0  ;;  %v4911_v9 = vadd.f32 %v8875_v20, %v4749_v49  ;;  %v4754_v48 = vadd.f32 %v6702_v29, %v4580_v0  ;;  %v4581_v20 = vadd.f32 %v9095_v24, %v4413_v53  ;;  %v6735_v49 = vpop.f32.mrf.mxu0 }
 0x339   : > { %v4717_v46 = vpop.f32.mrf.mxu1  ;;  %v4583_v37 = vadd.f32 %v9101_v47, %v4415_v41 }
 0x33a   : > { %4957 = vst [vmem:[%s8923_s20 + $0x10] sm:$0xff] %v4949_v25  ;;  %v4925_v59 = vrot.slane %v4911_v9, 4  ;;  %v4916_v44 = vadd.f32 %v8885_v42, %v4754_v48  ;;  %v4752_v6 = vadd.f32 %v4717_v46, %v4578_v8  ;;  %v4898_v19 = vpop.f32.mrf.mxu0 }
 0x33b   : > { %v6703_v17 = vpop.f32.mrf.mxu1 }
 0x33c   : > { %v4927_v51 = vsel %vm2308_vm14, %v4925_v59, %v4926_v1  ;;  %v4951_v60 = vmax.f32 %v4916_v44, 0.0  ;;  %v4914_v62 = vadd.f32 %v8898_v61, %v4752_v6  ;;  %v4755_v2 = vadd.f32 %v6703_v17, %v4581_v20 }
 0x33d   : > { %v4948_v42 = vmax.f32 %v4927_v51, 0.0  ;;  %v4720_v32 = vpop.f32.mrf.mxu1 }
 0x33e   : > { %4959 = vst [vmem:[%s8923_s20 + $0x20] sm:$0xff] %v4951_v60  ;;  %v4753_v38 = vadd.f32 %v4720_v32, %v4579_v30  ;;  %v4931_v28 = vrot.slane %v4914_v62, 4  ;;  %v4917_v39 = vadd.f32 %v8913_v36, %v4755_v2 }
 0x33f   : > { %4956 = vst [vmem:[%s8923_s20 + $0x8] sm:$0xff] %v4948_v42  ;;  %v6706_v27 = vpop.f32.mrf.mxu1 }
 0x340   : > { %v4915_v57 = vadd.f32 %v4882_v3, %v4753_v38  ;;  %v4758_v63 = vadd.f32 %v6706_v27, %v4584_v22  ;;  %v4937_v33 = vrot.slane %v4917_v39, 4 }
 0x341   : > { %v4733_v0 = vpop.f32.mrf.mxu1 }
 0x342   : > { %v4932_v61 = vrot.slane %v4915_v57, 4  ;;  %v4756_v13 = vadd.f32 %v4733_v0, %v4582_v16  ;;  %v4920_v53 = vadd.f32 %v6734_v10, %v4758_v63 }
 0x343   : > { %v6707_v34 = vpop.f32.mrf.mxu1 }
 0x344   : > { %v4933_v40 = vsel %vm2308_vm14, %v4931_v28, %v4932_v61  ;;  %v4918_v12 = vadd.f32 %v4895_v50, %v4756_v13  ;;  %v4759_v7 = vadd.f32 %v6707_v34, %v4585_v35  ;;  %v4943_v25 = vrot.slane %v4920_v53, 4 }
 0x345   : > { %v4950_v3 = vmax.f32 %v4933_v40, 0.0  ;;  %v4736_v29 = vpop.f32.mrf.mxu1 }
 0x346   : > { %v4938_v8 = vrot.slane %v4918_v12, 4  ;;  %v4921_v36 = vadd.f32 %v6735_v49, %v4759_v7  ;;  %v4757_v4 = vadd.f32 %v4736_v29, %v4583_v37 }
 0x347   : > { %4958 = vst [vmem:[%s8923_s20 + $0x18] sm:$0xff] %v4950_v3 }
 0x348   : > { %v4939_v9 = vsel %vm2308_vm14, %v4937_v33, %v4938_v8  ;;  %v4944_v48 = vrot.slane %v4921_v36, 4  ;;  %v4919_v15 = vadd.f32 %v4898_v19, %v4757_v4 }
 0x349   : > { %v4952_v31 = vmax.f32 %v4939_v9, 0.0 }
 0x34a   : > { %v4945_v5 = vsel %vm2308_vm14, %v4943_v25, %v4944_v48  ;;  %v4953_v11 = vmax.f32 %v4919_v15, 0.0 }
 0x34b   : > { %4960 = vst [vmem:[%s8923_s20 + $0x28] sm:$0xff] %v4952_v31  ;;  %v4954_v45 = vmax.f32 %v4945_v5, 0.0 }
 0x34c   : > { %4961 = vst [vmem:[%s8923_s20 + $0x30] sm:$0xff] %v4953_v11 }
 0x34d   : > { %4962 = vst [vmem:[%s8923_s20 + $0x38] sm:$0xff] %v4954_v45 }
 0x34e PF: > { %s15_s18 = sadd.s32 1, %s6964_s18  }
 0x34f   : > { %p12_p4 = scmp.ge.s32.totalorder %s15_s18, 4  }
 0x351   :  { %14 = sbr.rel (!%p12_p4) target bundleno = 1 (0x1), region = 94 }

</bundles_post_ra>
